<compile_context>
chip_gen: v7x
topology: tpu7x:2x2x1
jax: 0.10.0
libtpu: 0.0.40
codegen_flags: <defaults>
</compile_context>

<pallas_src>
import numpy as np
import jax
import jax.numpy as jnp
from jax.experimental import pallas as pl
from jax.experimental.pallas import tpu as pltpu


# ---------------------------------------------------------------------------
# p4m (D4) group machinery: 8 elements, index s -> (mirror m = s // 4, rot r = s % 4)
# Host-side numpy parameter setup (deterministic, runs once).
# ---------------------------------------------------------------------------
def _d4_spatial(f, s):
    m, r = divmod(int(s), 4)
    if m:
        f = f[..., ::-1]                       # mirror (flip last / W axis)
    return np.rot90(f, k=r, axes=(-2, -1))     # rotate by r * 90 degrees


def _d4_tables():
    probe = np.arange(25, dtype=np.int64).reshape(5, 5)
    reps = [_d4_spatial(probe, s) for s in range(8)]
    comp = np.zeros((8, 8), dtype=np.int64)
    for a in range(8):
        for b in range(8):
            ab = _d4_spatial(reps[b], a)
            for c in range(8):
                if np.array_equal(ab, reps[c]):
                    comp[a, b] = c
                    break
    inv = np.zeros(8, dtype=np.int64)
    for a in range(8):
        for b in range(8):
            if comp[a, b] == 0:                # s = 0 is the identity
                inv[a] = b
    return comp, inv


_COMP, _INV = _d4_tables()


def expand_z2_p4m_filters(w):
    # w: (oc, ic, 1, k, k) -> (oc*8, ic, k, k); out-channel index = oc*8 + g
    oc, ic, _, k, _ = w.shape
    base = w[:, :, 0]
    tw = np.stack([_d4_spatial(base, g) for g in range(8)], axis=1)
    return tw.reshape(oc * 8, ic, k, k)


def expand_p4m_p4m_filters(w):
    # w: (oc, ic, 8, k, k) -> (oc*8, ic*8, k, k); tw[oc, g, ic, h] = T_g(w[oc, ic, g^-1 h])
    oc, ic, _, k, _ = w.shape
    tw = np.zeros((oc, 8, ic, 8, k, k), dtype=w.dtype)
    for g in range(8):
        ginv = _INV[g]
        for h in range(8):
            hp = _COMP[ginv, h]
            tw[:, g, :, h] = _d4_spatial(w[:, :, hp], g)
    return tw.reshape(oc * 8, ic * 8, k, k)


def conv_weight_to_matmul(tw):
    # (Cout, Cin, k, k) -> (k*k*Cin, Cout); row order (kh, kw, cin).
    Cout, Cin, k, _ = tw.shape
    return tw.transpose(2, 3, 1, 0).reshape(k * k * Cin, Cout)


def _round_up(x, m):
    return ((x + m - 1) // m) * m


# ---------------------------------------------------------------------------
# Kernel 1: conv1 matmul + bias + ReLU + 2x2 max-pool (fused epilogue).
# Input rows are pre-grouped into the 4 quadrants of each 2x2 pool window, so
# pooling is a max over 4 contiguous slices of the matmul output.
# ---------------------------------------------------------------------------
def _conv1_pool_kernel(a_ref, w_ref, b_ref, o_ref):
    q, tp, kp = a_ref.shape                     # (4, TP, 32)
    a = a_ref[...].reshape(q * tp, kp)          # clean sublane merge (TP % 8 == 0)
    z = jnp.dot(a, w_ref[...], preferred_element_type=jnp.float32) + b_ref[...]
    z = z.reshape(q, tp, z.shape[-1])
    m = jnp.maximum(jnp.maximum(z[0], z[1]), jnp.maximum(z[2], z[3]))
    o_ref[...] = jnp.maximum(m, 0.0)            # relu(pool(conv+bias))


def conv1_fused(aq, w, b, n_pos, tp):
    # aq: (4, Ppad, 32) f32, w: (32, 64) f32, b: (1, 64) f32 -> (n_pos, 64) f32
    ppad = aq.shape[1]
    out = pl.pallas_call(
        _conv1_pool_kernel,
        out_shape=jax.ShapeDtypeStruct((ppad, 64), jnp.float32),
        grid_spec=pltpu.PrefetchScalarGridSpec(
            num_scalar_prefetch=0,
            grid=(ppad // tp,),
            in_specs=[
                pl.BlockSpec((4, tp, 32), lambda i: (0, i, 0)),
                pl.BlockSpec((32, 64), lambda i: (0, 0)),     # resident weights
                pl.BlockSpec((1, 64), lambda i: (0, 0)),      # resident bias
            ],
            out_specs=pl.BlockSpec((tp, 64), lambda i: (i, 0)),
        ),
        compiler_params=pltpu.CompilerParams(dimension_semantics=("parallel",)),
    )(aq, w, b)
    return out[:n_pos]


# ---------------------------------------------------------------------------
# Kernel 2: conv2 with im2col fused in-kernel (25 shifted dots on a width-padded
# halo block) + bias + ReLU + 2x2 max-pool epilogue.
# ---------------------------------------------------------------------------
def _conv2_fused_kernel(x_ref, w_ref, b_ref, o_ref):
    # x_ref: (1, 14, 24, 64) f32  -- pooled conv1 output, width zero-padded 14->24
    # w_ref: (1600, 64) bf16      -- rows ordered (kh, kw, cin), resident
    # o_ref: (1, 5, 15, 64) f32   -- pooled output; valid at even w columns
    x = x_ref[0]
    acc = jnp.zeros((160, 64), jnp.float32)
    for kh in range(5):
        for kw in range(5):
            t = kh * 5 + kw
            # contiguous (10, 16, 64) slab; width 16 keeps the reshape tile-aligned
            patch = x[kh:kh + 10, kw:kw + 16, :].reshape(160, 64)
            acc = acc + jnp.dot(patch.astype(jnp.bfloat16),
                                w_ref[t * 64:(t + 1) * 64, :],
                                preferred_element_type=jnp.float32)
    # acc row r = h*16 + w is the conv output at (h, w) for w in 0..9 (rest unused)
    acc = jnp.maximum(acc + b_ref[...], 0.0)
    a = acc.reshape(5, 2, 16, 64)                       # (ph, dh, w, c)
    v = jnp.maximum(a[:, 0], a[:, 1])                   # vertical 2-max: (5, 16, 64)
    o_ref[0] = jnp.maximum(v[:, 0:15, :], v[:, 1:16, :])  # horizontal 2-max (even w valid)


def conv2_fused(x, w, b):
    n = x.shape[0]
    return pl.pallas_call(
        _conv2_fused_kernel,
        out_shape=jax.ShapeDtypeStruct((n, 5, 15, 64), jnp.float32),
        grid_spec=pltpu.PrefetchScalarGridSpec(
            num_scalar_prefetch=0,
            grid=(n,),
            in_specs=[
                pl.BlockSpec((1, 14, 24, 64), lambda i: (i, 0, 0, 0)),
                pl.BlockSpec((1600, 64), lambda i: (0, 0)),   # resident weights
                pl.BlockSpec((1, 64), lambda i: (0, 0)),      # resident bias
            ],
            out_specs=pl.BlockSpec((1, 5, 15, 64), lambda i: (i, 0, 0, 0)),
        ),
        compiler_params=pltpu.CompilerParams(dimension_semantics=("parallel",)),
    )(x, w, b)


# ---------------------------------------------------------------------------
# Kernel 3: fc1 -> fc2 -> fc3 -> log_softmax, batch-tiled, 128-lane padded.
# Padded logit lanes carry a -1e30 bias so exp() of them is exactly 0.
# ---------------------------------------------------------------------------
def _head_kernel(x_ref, w1_ref, b1_ref, w2_ref, b2_ref, w3_ref, b3_ref, o_ref):
    h = jnp.dot(x_ref[...], w1_ref[...], preferred_element_type=jnp.float32) + b1_ref[...]
    h = jnp.dot(h.astype(jnp.bfloat16), w2_ref[...],
                preferred_element_type=jnp.float32) + b2_ref[...]
    z = jnp.dot(h.astype(jnp.bfloat16), w3_ref[...],
                preferred_element_type=jnp.float32) + b3_ref[...]
    z = z - jnp.max(z, axis=-1, keepdims=True)
    o_ref[...] = z - jnp.log(jnp.sum(jnp.exp(z), axis=-1, keepdims=True))


def head_fused(y, params, tb):
    npad = y.shape[0]
    return pl.pallas_call(
        _head_kernel,
        out_shape=jax.ShapeDtypeStruct((npad, 128), jnp.float32),
        grid_spec=pltpu.PrefetchScalarGridSpec(
            num_scalar_prefetch=0,
            grid=(npad // tb,),
            in_specs=[
                pl.BlockSpec((tb, 1600), lambda i: (i, 0)),
                pl.BlockSpec((1600, 128), lambda i: (0, 0)),
                pl.BlockSpec((1, 128), lambda i: (0, 0)),
                pl.BlockSpec((128, 128), lambda i: (0, 0)),
                pl.BlockSpec((1, 128), lambda i: (0, 0)),
                pl.BlockSpec((128, 128), lambda i: (0, 0)),
                pl.BlockSpec((1, 128), lambda i: (0, 0)),
            ],
            out_specs=pl.BlockSpec((tb, 128), lambda i: (i, 0)),
        ),
        compiler_params=pltpu.CompilerParams(dimension_semantics=("parallel",)),
    )(y, params["fc1_w"], params["fc1_b"], params["fc2_w"], params["fc2_b"],
      params["fc3_w"], params["fc3_b"])


# ---------------------------------------------------------------------------
# Forward pass.  Glue (im2col for conv1, zero-padding, pool-lane compaction) is
# pure data movement left to XLA; all compute runs in the Pallas kernels above.
# ---------------------------------------------------------------------------
def p4m_lenet_forward(x_nchw, params):
    N = x_nchw.shape[0]
    x = jnp.transpose(x_nchw, (0, 2, 3, 1))                  # NHWC (N, 28, 28, 1)

    # ---- conv1 = P4MConvZ2(1, 8, 5, padding=2) + 2x2 pool + ReLU (fused) ----
    xp = jnp.pad(x, ((0, 0), (2, 2), (2, 2), (0, 0)))        # (N, 32, 32, 1)
    cols = [xp[:, kh:kh + 28, kw:kw + 28, 0] for kh in range(5) for kw in range(5)]
    cols += [jnp.zeros_like(cols[0])] * 7                    # pad K: 25 -> 32
    patches = jnp.stack(cols, axis=-1)                       # (N, 28, 28, 32)
    # quadrant ordering: (q = 2*dh + dw, pooled position (n, ph, pw), feature)
    aq = patches.reshape(N, 14, 2, 14, 2, 32).transpose(2, 4, 0, 1, 3, 5)
    aq = aq.reshape(4, N * 196, 32)
    p1 = N * 196
    tp = 256
    p1pad = _round_up(p1, tp)
    aq = jnp.pad(aq, ((0, 0), (0, p1pad - p1), (0, 0)))
    y1 = conv1_fused(aq, params["conv1_B"], params["conv1_b"], p1, tp)
    y1 = y1.reshape(N, 14, 14, 64)                           # pooled conv1, NHWC

    # ---- conv2 = P4MConvP4M(8, 8, 5, padding=0) + 2x2 pool + ReLU (im2col fused) ----
    x2 = jnp.pad(y1, ((0, 0), (0, 0), (0, 10), (0, 0)))      # width 14 -> 24 halo pad
    o2 = conv2_fused(x2, params["conv2_B"], params["conv2_b"])  # (N, 5, 15, 64)
    y2 = o2[:, :, 0:10:2, :]                                 # keep even-w pooled cols
    feats = y2.reshape(N, 1600).astype(jnp.bfloat16)         # (h, w, c*8+g) order

    # ---- fc1 -> fc2 -> fc3 -> log_softmax (fused, batch-tiled) ----
    tb = min(512, _round_up(N, 8))
    npad = _round_up(N, tb)
    feats = jnp.pad(feats, ((0, npad - N), (0, 0)))
    logp = head_fused(feats, params, tb)
    return logp[:N, :10]


# ---------------------------------------------------------------------------
# Deterministic parameter initialization (synthetic; shapes from __init__).
# All padding / permutation of weights happens here, once, host-side.
# ---------------------------------------------------------------------------
def init_params(key):
    ks = jax.random.split(key, 10)

    def u(k, shape, fan_in):
        bound = 1.0 / float(np.sqrt(fan_in))
        return np.asarray(jax.random.uniform(k, shape, jnp.float32, -bound, bound))

    w1 = u(ks[0], (8, 1, 1, 5, 5), 1 * 25)                   # P4MConvZ2 weight
    b1 = u(ks[1], (8,), 1 * 25)
    w2 = u(ks[2], (8, 8, 8, 5, 5), 8 * 8 * 25)               # P4MConvP4M weight
    b2 = u(ks[3], (8,), 8 * 8 * 25)

    conv1_B = conv_weight_to_matmul(expand_z2_p4m_filters(w1))   # (25, 64)
    conv1_B = np.pad(conv1_B, ((0, 7), (0, 0)))                  # K 25 -> 32 (zeros)
    conv2_B = conv_weight_to_matmul(expand_p4m_p4m_filters(w2))  # (1600, 64), rows (kh,kw,cin)
    conv1_b = np.repeat(b1, 8)[None, :]                          # bias over group axis
    conv2_b = np.repeat(b2, 8)[None, :]

    fc1_w = u(ks[4], (1600, 120), 1600)   # torch flatten order (c, g, h, w)
    fc1_b = u(ks[5], (120,), 1600)
    fc2_w = u(ks[6], (120, 84), 120)
    fc2_b = u(ks[7], (84,), 120)
    fc3_w = u(ks[8], (84, 10), 84)
    fc3_b = u(ks[9], (10,), 84)

    # permute fc1 rows torch (c, g, h, w) -> kernel (h, w, c*8+g); pad lanes to 128
    fc1_wp = fc1_w.reshape(8, 8, 5, 5, 120).transpose(2, 3, 0, 1, 4).reshape(1600, 120)
    fc1_wp = np.pad(fc1_wp, ((0, 0), (0, 8)))                    # (1600, 128)
    fc1_bp = np.pad(fc1_b, (0, 8))[None, :]
    fc2_wp = np.pad(fc2_w, ((0, 8), (0, 44)))                    # (128, 128)
    fc2_bp = np.pad(fc2_b, (0, 44))[None, :]
    fc3_wp = np.pad(fc3_w, ((0, 44), (0, 118)))                  # (128, 128)
    fc3_bp = np.full((1, 128), -1e30, np.float32)                # padded logit lanes -> exp()==0
    fc3_bp[0, :10] = fc3_b

    return {
        "conv1_B": jnp.asarray(conv1_B, jnp.float32),
        "conv1_b": jnp.asarray(conv1_b, jnp.float32),
        "conv2_B": jnp.asarray(conv2_B, jnp.bfloat16),
        "conv2_b": jnp.asarray(conv2_b, jnp.float32),
        "fc1_w": jnp.asarray(fc1_wp, jnp.bfloat16),
        "fc1_b": jnp.asarray(fc1_bp, jnp.float32),
        "fc2_w": jnp.asarray(fc2_wp, jnp.bfloat16),
        "fc2_b": jnp.asarray(fc2_bp, jnp.float32),
        "fc3_w": jnp.asarray(fc3_wp, jnp.bfloat16),
        "fc3_b": jnp.asarray(fc3_bp, jnp.float32),
    }


if __name__ == "__main__":
    key = jax.random.PRNGKey(0)
    xkey, pkey = jax.random.split(key)
    # LeNet-style input: fc1 expects 8*8*5*5 = 1600 features -> 28x28 input, 1 channel.
    x = jax.random.normal(xkey, (2, 1, 28, 28), jnp.float32)
    params = init_params(pkey)

    fwd = jax.jit(lambda inp: p4m_lenet_forward(inp, params))
    out = jax.block_until_ready(fwd(x))

    assert out.shape == (2, 10)
    out_np = np.asarray(out)
    assert np.all(np.isfinite(out_np))
    # log_softmax rows must exponentiate to probability distributions
    assert np.allclose(np.exp(out_np).sum(axis=1), 1.0, atol=1e-4)
    print("KERNEL_OK")
</pallas_src>

<mosaic_0001>
module attributes {stable_mosaic.version = 11 : i64} {
  func.func @_conv1_pool_kernel(%arg0: i32, %arg1: memref<4x256x32xf32, #tpu.memory_space<vmem>>, %arg2: memref<32x64xf32, #tpu.memory_space<vmem>>, %arg3: memref<1x64xf32, #tpu.memory_space<vmem>>, %arg4: memref<256x64xf32, #tpu.memory_space<vmem>>) attributes {dimension_semantics = [#tpu.dimension_semantics<parallel>], iteration_bounds = array<i64: 2>, scalar_prefetch = 0 : i64, scratch_operands = 0 : i64, tpu.core_type = #tpu.core_type<tc>, window_params = [{transform_indices = @transform_0, window_bounds = array<i64: 4, 256, 32>}, {pipeline_mode = #tpu.pipeline_mode<synchronous>, transform_indices = @transform_1, window_bounds = array<i64: 32, 64>}, {pipeline_mode = #tpu.pipeline_mode<synchronous>, transform_indices = @transform_2, window_bounds = array<i64: 1, 64>}, {transform_indices = @transform_3, window_bounds = array<i64: 256, 64>}]} {
    %c0 = arith.constant 0 : index
    %c0_0 = arith.constant 0 : index
    %c0_1 = arith.constant 0 : index
    %0 = vector.load %arg1[%c0, %c0_0, %c0_1] : memref<4x256x32xf32, #tpu.memory_space<vmem>>, vector<4x256x32xf32>
    %1 = vector.shape_cast %0 : vector<4x256x32xf32> to vector<1024x32xf32>
    %c0_2 = arith.constant 0 : index
    %c0_3 = arith.constant 0 : index
    %2 = vector.load %arg2[%c0_2, %c0_3] : memref<32x64xf32, #tpu.memory_space<vmem>>, vector<32x64xf32>
    %cst = arith.constant dense<0.000000e+00> : vector<1024x64xf32>
    %3 = tpu.matmul %1, %2, %cst {dimension_numbers = #tpu.dot_dimension_numbers<[1], [0], [0], [1], [0, 0, 1, 1], [], []>} : vector<1024x32xf32>, vector<32x64xf32>, vector<1024x64xf32> -> vector<1024x64xf32>
    %c0_4 = arith.constant 0 : index
    %c0_5 = arith.constant 0 : index
    %4 = vector.load %arg3[%c0_4, %c0_5] : memref<1x64xf32, #tpu.memory_space<vmem>>, vector<1x64xf32>
    %5 = vector.broadcast %4 : vector<1x64xf32> to vector<1024x64xf32>
    %6 = arith.addf %3, %5 : vector<1024x64xf32>
    %7 = vector.shape_cast %6 : vector<1024x64xf32> to vector<4x256x64xf32>
    %8 = vector.extract_strided_slice %7 {offsets = [0, 0, 0], sizes = [1, 256, 64], strides = [1, 1, 1]} : vector<4x256x64xf32> to vector<1x256x64xf32>
    %9 = vector.shape_cast %8 : vector<1x256x64xf32> to vector<256x64xf32>
    %10 = vector.extract_strided_slice %7 {offsets = [1, 0, 0], sizes = [1, 256, 64], strides = [1, 1, 1]} : vector<4x256x64xf32> to vector<1x256x64xf32>
    %11 = vector.shape_cast %10 : vector<1x256x64xf32> to vector<256x64xf32>
    %12 = arith.maximumf %9, %11 : vector<256x64xf32>
    %13 = vector.extract_strided_slice %7 {offsets = [2, 0, 0], sizes = [1, 256, 64], strides = [1, 1, 1]} : vector<4x256x64xf32> to vector<1x256x64xf32>
    %14 = vector.shape_cast %13 : vector<1x256x64xf32> to vector<256x64xf32>
    %15 = vector.extract_strided_slice %7 {offsets = [3, 0, 0], sizes = [1, 256, 64], strides = [1, 1, 1]} : vector<4x256x64xf32> to vector<1x256x64xf32>
    %16 = vector.shape_cast %15 : vector<1x256x64xf32> to vector<256x64xf32>
    %17 = arith.maximumf %14, %16 : vector<256x64xf32>
    %18 = arith.maximumf %12, %17 : vector<256x64xf32>
    %cst_6 = arith.constant 0.000000e+00 : f32
    %19 = vector.broadcast %cst_6 : f32 to vector<256x64xf32>
    %20 = arith.maximumf %18, %19 : vector<256x64xf32>
    %c0_7 = arith.constant 0 : index
    %c0_8 = arith.constant 0 : index
    %21 = vector.load %arg4[%c0_7, %c0_8] : memref<256x64xf32, #tpu.memory_space<vmem>>, vector<256x64xf32>
    tpu.vector_store %arg4[%c0_7, %c0_8], %20 {strides = array<i32>} : memref<256x64xf32, #tpu.memory_space<vmem>>, vector<256x64xf32>,
    return
  }
  func.func @transform_0(%arg0: i32) -> (i32, i32, i32) {
    %c0_i32 = arith.constant 0 : i32
    %c0_i32_0 = arith.constant 0 : i32
    %c0_i32_1 = arith.constant 0 : i32
    return %c0_i32, %arg0, %c0_i32_0 : i32, i32, i32
  }
  func.func @transform_1(%arg0: i32) -> (i32, i32) {
    %c0_i32 = arith.constant 0 : i32
    %c0_i32_0 = arith.constant 0 : i32
    %c0_i32_1 = arith.constant 0 : i32
    return %c0_i32, %c0_i32_0 : i32, i32
  }
  func.func @transform_2(%arg0: i32) -> (i32, i32) {
    %c0_i32 = arith.constant 0 : i32
    %c0_i32_0 = arith.constant 0 : i32
    %c0_i32_1 = arith.constant 0 : i32
    return %c0_i32, %c0_i32_0 : i32, i32
  }
  func.func @transform_3(%arg0: i32) -> (i32, i32) {
    %c0_i32 = arith.constant 0 : i32
    %c0_i32_0 = arith.constant 0 : i32
    return %arg0, %c0_i32 : i32, i32
  }
}

module attributes {stable_mosaic.version = 11 : i64} {
  func.func @_conv2_fused_kernel(%arg0: i32, %arg1: memref<1x14x24x64xf32, #tpu.memory_space<vmem>>, %arg2: memref<1600x64xbf16, #tpu.memory_space<vmem>>, %arg3: memref<1x64xf32, #tpu.memory_space<vmem>>, %arg4: memref<1x5x15x64xf32, #tpu.memory_space<vmem>>) attributes {dimension_semantics = [#tpu.dimension_semantics<parallel>], iteration_bounds = array<i64: 2>, scalar_prefetch = 0 : i64, scratch_operands = 0 : i64, tpu.core_type = #tpu.core_type<tc>, window_params = [{transform_indices = @transform_0, window_bounds = array<i64: 1, 14, 24, 64>}, {pipeline_mode = #tpu.pipeline_mode<synchronous>, transform_indices = @transform_1, window_bounds = array<i64: 1600, 64>}, {pipeline_mode = #tpu.pipeline_mode<synchronous>, transform_indices = @transform_2, window_bounds = array<i64: 1, 64>}, {transform_indices = @transform_3, window_bounds = array<i64: 1, 5, 15, 64>}]} {
    %c0 = arith.constant 0 : index
    %c0_0 = arith.constant 0 : index
    %c0_1 = arith.constant 0 : index
    %c0_2 = arith.constant 0 : index
    %0 = vector.load %arg1[%c0, %c0_0, %c0_1, %c0_2] : memref<1x14x24x64xf32, #tpu.memory_space<vmem>>, vector<1x14x24x64xf32>
    %1 = vector.shape_cast %0 : vector<1x14x24x64xf32> to vector<14x24x64xf32>
    %cst = arith.constant 0.000000e+00 : f32
    %2 = vector.broadcast %cst : f32 to vector<160x64xf32>
    %3 = vector.extract_strided_slice %1 {offsets = [0, 0, 0], sizes = [10, 16, 64], strides = [1, 1, 1]} : vector<14x24x64xf32> to vector<10x16x64xf32>
    %4 = vector.shape_cast %3 : vector<10x16x64xf32> to vector<160x64xf32>
    %5 = arith.truncf %4 : vector<160x64xf32> to vector<160x64xbf16>
    %c0_3 = arith.constant 0 : index
    %c0_4 = arith.constant 0 : index
    %6 = vector.load %arg2[%c0_3, %c0_4] : memref<1600x64xbf16, #tpu.memory_space<vmem>>, vector<64x64xbf16>
    %cst_5 = arith.constant dense<0.000000e+00> : vector<160x64xf32>
    %7 = tpu.matmul %5, %6, %cst_5 {dimension_numbers = #tpu.dot_dimension_numbers<[1], [0], [0], [1], [0, 0, 1, 1], [], []>} : vector<160x64xbf16>, vector<64x64xbf16>, vector<160x64xf32> -> vector<160x64xf32>
    %8 = arith.addf %2, %7 : vector<160x64xf32>
    %9 = vector.extract_strided_slice %1 {offsets = [0, 1, 0], sizes = [10, 16, 64], strides = [1, 1, 1]} : vector<14x24x64xf32> to vector<10x16x64xf32>
    %10 = vector.shape_cast %9 : vector<10x16x64xf32> to vector<160x64xf32>
    %11 = arith.truncf %10 : vector<160x64xf32> to vector<160x64xbf16>
    %c64 = arith.constant 64 : index
    %c0_6 = arith.constant 0 : index
    %12 = vector.load %arg2[%c64, %c0_6] : memref<1600x64xbf16, #tpu.memory_space<vmem>>, vector<64x64xbf16>
    %cst_7 = arith.constant dense<0.000000e+00> : vector<160x64xf32>
    %13 = tpu.matmul %11, %12, %cst_7 {dimension_numbers = #tpu.dot_dimension_numbers<[1], [0], [0], [1], [0, 0, 1, 1], [], []>} : vector<160x64xbf16>, vector<64x64xbf16>, vector<160x64xf32> -> vector<160x64xf32>
    %14 = arith.addf %8, %13 : vector<160x64xf32>
    %15 = vector.extract_strided_slice %1 {offsets = [0, 2, 0], sizes = [10, 16, 64], strides = [1, 1, 1]} : vector<14x24x64xf32> to vector<10x16x64xf32>
    %16 = vector.shape_cast %15 : vector<10x16x64xf32> to vector<160x64xf32>
    %17 = arith.truncf %16 : vector<160x64xf32> to vector<160x64xbf16>
    %c128 = arith.constant 128 : index
    %c0_8 = arith.constant 0 : index
    %18 = vector.load %arg2[%c128, %c0_8] : memref<1600x64xbf16, #tpu.memory_space<vmem>>, vector<64x64xbf16>
    %cst_9 = arith.constant dense<0.000000e+00> : vector<160x64xf32>
    %19 = tpu.matmul %17, %18, %cst_9 {dimension_numbers = #tpu.dot_dimension_numbers<[1], [0], [0], [1], [0, 0, 1, 1], [], []>} : vector<160x64xbf16>, vector<64x64xbf16>, vector<160x64xf32> -> vector<160x64xf32>
    %20 = arith.addf %14, %19 : vector<160x64xf32>
    %21 = vector.extract_strided_slice %1 {offsets = [0, 3, 0], sizes = [10, 16, 64], strides = [1, 1, 1]} : vector<14x24x64xf32> to vector<10x16x64xf32>
    %22 = vector.shape_cast %21 : vector<10x16x64xf32> to vector<160x64xf32>
    %23 = arith.truncf %22 : vector<160x64xf32> to vector<160x64xbf16>
    %c192 = arith.constant 192 : index
    %c0_10 = arith.constant 0 : index
    %24 = vector.load %arg2[%c192, %c0_10] : memref<1600x64xbf16, #tpu.memory_space<vmem>>, vector<64x64xbf16>
    %cst_11 = arith.constant dense<0.000000e+00> : vector<160x64xf32>
    %25 = tpu.matmul %23, %24, %cst_11 {dimension_numbers = #tpu.dot_dimension_numbers<[1], [0], [0], [1], [0, 0, 1, 1], [], []>} : vector<160x64xbf16>, vector<64x64xbf16>, vector<160x64xf32> -> vector<160x64xf32>
    %26 = arith.addf %20, %25 : vector<160x64xf32>
    %27 = vector.extract_strided_slice %1 {offsets = [0, 4, 0], sizes = [10, 16, 64], strides = [1, 1, 1]} : vector<14x24x64xf32> to vector<10x16x64xf32>
    %28 = vector.shape_cast %27 : vector<10x16x64xf32> to vector<160x64xf32>
    %29 = arith.truncf %28 : vector<160x64xf32> to vector<160x64xbf16>
    %c256 = arith.constant 256 : index
    %c0_12 = arith.constant 0 : index
    %30 = vector.load %arg2[%c256, %c0_12] : memref<1600x64xbf16, #tpu.memory_space<vmem>>, vector<64x64xbf16>
    %cst_13 = arith.constant dense<0.000000e+00> : vector<160x64xf32>
    %31 = tpu.matmul %29, %30, %cst_13 {dimension_numbers = #tpu.dot_dimension_numbers<[1], [0], [0], [1], [0, 0, 1, 1], [], []>} : vector<160x64xbf16>, vector<64x64xbf16>, vector<160x64xf32> -> vector<160x64xf32>
    %32 = arith.addf %26, %31 : vector<160x64xf32>
    %33 = vector.extract_strided_slice %1 {offsets = [1, 0, 0], sizes = [10, 16, 64], strides = [1, 1, 1]} : vector<14x24x64xf32> to vector<10x16x64xf32>
    %34 = vector.shape_cast %33 : vector<10x16x64xf32> to vector<160x64xf32>
    %35 = arith.truncf %34 : vector<160x64xf32> to vector<160x64xbf16>
    %c320 = arith.constant 320 : index
    %c0_14 = arith.constant 0 : index
    %36 = vector.load %arg2[%c320, %c0_14] : memref<1600x64xbf16, #tpu.memory_space<vmem>>, vector<64x64xbf16>
    %cst_15 = arith.constant dense<0.000000e+00> : vector<160x64xf32>
    %37 = tpu.matmul %35, %36, %cst_15 {dimension_numbers = #tpu.dot_dimension_numbers<[1], [0], [0], [1], [0, 0, 1, 1], [], []>} : vector<160x64xbf16>, vector<64x64xbf16>, vector<160x64xf32> -> vector<160x64xf32>
    %38 = arith.addf %32, %37 : vector<160x64xf32>
    %39 = vector.extract_strided_slice %1 {offsets = [1, 1, 0], sizes = [10, 16, 64], strides = [1, 1, 1]} : vector<14x24x64xf32> to vector<10x16x64xf32>
    %40 = vector.shape_cast %39 : vector<10x16x64xf32> to vector<160x64xf32>
    %41 = arith.truncf %40 : vector<160x64xf32> to vector<160x64xbf16>
    %c384 = arith.constant 384 : index
    %c0_16 = arith.constant 0 : index
    %42 = vector.load %arg2[%c384, %c0_16] : memref<1600x64xbf16, #tpu.memory_space<vmem>>, vector<64x64xbf16>
    %cst_17 = arith.constant dense<0.000000e+00> : vector<160x64xf32>
    %43 = tpu.matmul %41, %42, %cst_17 {dimension_numbers = #tpu.dot_dimension_numbers<[1], [0], [0], [1], [0, 0, 1, 1], [], []>} : vector<160x64xbf16>, vector<64x64xbf16>, vector<160x64xf32> -> vector<160x64xf32>
    %44 = arith.addf %38, %43 : vector<160x64xf32>
    %45 = vector.extract_strided_slice %1 {offsets = [1, 2, 0], sizes = [10, 16, 64], strides = [1, 1, 1]} : vector<14x24x64xf32> to vector<10x16x64xf32>
    %46 = vector.shape_cast %45 : vector<10x16x64xf32> to vector<160x64xf32>
    %47 = arith.truncf %46 : vector<160x64xf32> to vector<160x64xbf16>
    %c448 = arith.constant 448 : index
    %c0_18 = arith.constant 0 : index
    %48 = vector.load %arg2[%c448, %c0_18] : memref<1600x64xbf16, #tpu.memory_space<vmem>>, vector<64x64xbf16>
    %cst_19 = arith.constant dense<0.000000e+00> : vector<160x64xf32>
    %49 = tpu.matmul %47, %48, %cst_19 {dimension_numbers = #tpu.dot_dimension_numbers<[1], [0], [0], [1], [0, 0, 1, 1], [], []>} : vector<160x64xbf16>, vector<64x64xbf16>, vector<160x64xf32> -> vector<160x64xf32>
    %50 = arith.addf %44, %49 : vector<160x64xf32>
    %51 = vector.extract_strided_slice %1 {offsets = [1, 3, 0], sizes = [10, 16, 64], strides = [1, 1, 1]} : vector<14x24x64xf32> to vector<10x16x64xf32>
    %52 = vector.shape_cast %51 : vector<10x16x64xf32> to vector<160x64xf32>
    %53 = arith.truncf %52 : vector<160x64xf32> to vector<160x64xbf16>
    %c512 = arith.constant 512 : index
    %c0_20 = arith.constant 0 : index
    %54 = vector.load %arg2[%c512, %c0_20] : memref<1600x64xbf16, #tpu.memory_space<vmem>>, vector<64x64xbf16>
    %cst_21 = arith.constant dense<0.000000e+00> : vector<160x64xf32>
    %55 = tpu.matmul %53, %54, %cst_21 {dimension_numbers = #tpu.dot_dimension_numbers<[1], [0], [0], [1], [0, 0, 1, 1], [], []>} : vector<160x64xbf16>, vector<64x64xbf16>, vector<160x64xf32> -> vector<160x64xf32>
    %56 = arith.addf %50, %55 : vector<160x64xf32>
    %57 = vector.extract_strided_slice %1 {offsets = [1, 4, 0], sizes = [10, 16, 64], strides = [1, 1, 1]} : vector<14x24x64xf32> to vector<10x16x64xf32>
    %58 = vector.shape_cast %57 : vector<10x16x64xf32> to vector<160x64xf32>
    %59 = arith.truncf %58 : vector<160x64xf32> to vector<160x64xbf16>
    %c576 = arith.constant 576 : index
    %c0_22 = arith.constant 0 : index
    %60 = vector.load %arg2[%c576, %c0_22] : memref<1600x64xbf16, #tpu.memory_space<vmem>>, vector<64x64xbf16>
    %cst_23 = arith.constant dense<0.000000e+00> : vector<160x64xf32>
    %61 = tpu.matmul %59, %60, %cst_23 {dimension_numbers = #tpu.dot_dimension_numbers<[1], [0], [0], [1], [0, 0, 1, 1], [], []>} : vector<160x64xbf16>, vector<64x64xbf16>, vector<160x64xf32> -> vector<160x64xf32>
    %62 = arith.addf %56, %61 : vector<160x64xf32>
    %63 = vector.extract_strided_slice %1 {offsets = [2, 0, 0], sizes = [10, 16, 64], strides = [1, 1, 1]} : vector<14x24x64xf32> to vector<10x16x64xf32>
    %64 = vector.shape_cast %63 : vector<10x16x64xf32> to vector<160x64xf32>
    %65 = arith.truncf %64 : vector<160x64xf32> to vector<160x64xbf16>
    %c640 = arith.constant 640 : index
    %c0_24 = arith.constant 0 : index
    %66 = vector.load %arg2[%c640, %c0_24] : memref<1600x64xbf16, #tpu.memory_space<vmem>>, vector<64x64xbf16>
    %cst_25 = arith.constant dense<0.000000e+00> : vector<160x64xf32>
    %67 = tpu.matmul %65, %66, %cst_25 {dimension_numbers = #tpu.dot_dimension_numbers<[1], [0], [0], [1], [0, 0, 1, 1], [], []>} : vector<160x64xbf16>, vector<64x64xbf16>, vector<160x64xf32> -> vector<160x64xf32>
    %68 = arith.addf %62, %67 : vector<160x64xf32>
    %69 = vector.extract_strided_slice %1 {offsets = [2, 1, 0], sizes = [10, 16, 64], strides = [1, 1, 1]} : vector<14x24x64xf32> to vector<10x16x64xf32>
    %70 = vector.shape_cast %69 : vector<10x16x64xf32> to vector<160x64xf32>
    %71 = arith.truncf %70 : vector<160x64xf32> to vector<160x64xbf16>
    %c704 = arith.constant 704 : index
    %c0_26 = arith.constant 0 : index
    %72 = vector.load %arg2[%c704, %c0_26] : memref<1600x64xbf16, #tpu.memory_space<vmem>>, vector<64x64xbf16>
    %cst_27 = arith.constant dense<0.000000e+00> : vector<160x64xf32>
    %73 = tpu.matmul %71, %72, %cst_27 {dimension_numbers = #tpu.dot_dimension_numbers<[1], [0], [0], [1], [0, 0, 1, 1], [], []>} : vector<160x64xbf16>, vector<64x64xbf16>, vector<160x64xf32> -> vector<160x64xf32>
    %74 = arith.addf %68, %73 : vector<160x64xf32>
    %75 = vector.extract_strided_slice %1 {offsets = [2, 2, 0], sizes = [10, 16, 64], strides = [1, 1, 1]} : vector<14x24x64xf32> to vector<10x16x64xf32>
    %76 = vector.shape_cast %75 : vector<10x16x64xf32> to vector<160x64xf32>
    %77 = arith.truncf %76 : vector<160x64xf32> to vector<160x64xbf16>
    %c768 = arith.constant 768 : index
    %c0_28 = arith.constant 0 : index
    %78 = vector.load %arg2[%c768, %c0_28] : memref<1600x64xbf16, #tpu.memory_space<vmem>>, vector<64x64xbf16>
    %cst_29 = arith.constant dense<0.000000e+00> : vector<160x64xf32>
    %79 = tpu.matmul %77, %78, %cst_29 {dimension_numbers = #tpu.dot_dimension_numbers<[1], [0], [0], [1], [0, 0, 1, 1], [], []>} : vector<160x64xbf16>, vector<64x64xbf16>, vector<160x64xf32> -> vector<160x64xf32>
    %80 = arith.addf %74, %79 : vector<160x64xf32>
    %81 = vector.extract_strided_slice %1 {offsets = [2, 3, 0], sizes = [10, 16, 64], strides = [1, 1, 1]} : vector<14x24x64xf32> to vector<10x16x64xf32>
    %82 = vector.shape_cast %81 : vector<10x16x64xf32> to vector<160x64xf32>
    %83 = arith.truncf %82 : vector<160x64xf32> to vector<160x64xbf16>
    %c832 = arith.constant 832 : index
    %c0_30 = arith.constant 0 : index
    %84 = vector.load %arg2[%c832, %c0_30] : memref<1600x64xbf16, #tpu.memory_space<vmem>>, vector<64x64xbf16>
    %cst_31 = arith.constant dense<0.000000e+00> : vector<160x64xf32>
    %85 = tpu.matmul %83, %84, %cst_31 {dimension_numbers = #tpu.dot_dimension_numbers<[1], [0], [0], [1], [0, 0, 1, 1], [], []>} : vector<160x64xbf16>, vector<64x64xbf16>, vector<160x64xf32> -> vector<160x64xf32>
    %86 = arith.addf %80, %85 : vector<160x64xf32>
    %87 = vector.extract_strided_slice %1 {offsets = [2, 4, 0], sizes = [10, 16, 64], strides = [1, 1, 1]} : vector<14x24x64xf32> to vector<10x16x64xf32>
    %88 = vector.shape_cast %87 : vector<10x16x64xf32> to vector<160x64xf32>
    %89 = arith.truncf %88 : vector<160x64xf32> to vector<160x64xbf16>
    %c896 = arith.constant 896 : index
    %c0_32 = arith.constant 0 : index
    %90 = vector.load %arg2[%c896, %c0_32] : memref<1600x64xbf16, #tpu.memory_space<vmem>>, vector<64x64xbf16>
    %cst_33 = arith.constant dense<0.000000e+00> : vector<160x64xf32>
    %91 = tpu.matmul %89, %90, %cst_33 {dimension_numbers = #tpu.dot_dimension_numbers<[1], [0], [0], [1], [0, 0, 1, 1], [], []>} : vector<160x64xbf16>, vector<64x64xbf16>, vector<160x64xf32> -> vector<160x64xf32>
    %92 = arith.addf %86, %91 : vector<160x64xf32>
    %93 = vector.extract_strided_slice %1 {offsets = [3, 0, 0], sizes = [10, 16, 64], strides = [1, 1, 1]} : vector<14x24x64xf32> to vector<10x16x64xf32>
    %94 = vector.shape_cast %93 : vector<10x16x64xf32> to vector<160x64xf32>
    %95 = arith.truncf %94 : vector<160x64xf32> to vector<160x64xbf16>
    %c960 = arith.constant 960 : index
    %c0_34 = arith.constant 0 : index
    %96 = vector.load %arg2[%c960, %c0_34] : memref<1600x64xbf16, #tpu.memory_space<vmem>>, vector<64x64xbf16>
    %cst_35 = arith.constant dense<0.000000e+00> : vector<160x64xf32>
    %97 = tpu.matmul %95, %96, %cst_35 {dimension_numbers = #tpu.dot_dimension_numbers<[1], [0], [0], [1], [0, 0, 1, 1], [], []>} : vector<160x64xbf16>, vector<64x64xbf16>, vector<160x64xf32> -> vector<160x64xf32>
    %98 = arith.addf %92, %97 : vector<160x64xf32>
    %99 = vector.extract_strided_slice %1 {offsets = [3, 1, 0], sizes = [10, 16, 64], strides = [1, 1, 1]} : vector<14x24x64xf32> to vector<10x16x64xf32>
    %100 = vector.shape_cast %99 : vector<10x16x64xf32> to vector<160x64xf32>
    %101 = arith.truncf %100 : vector<160x64xf32> to vector<160x64xbf16>
    %c1024 = arith.constant 1024 : index
    %c0_36 = arith.constant 0 : index
    %102 = vector.load %arg2[%c1024, %c0_36] : memref<1600x64xbf16, #tpu.memory_space<vmem>>, vector<64x64xbf16>
    %cst_37 = arith.constant dense<0.000000e+00> : vector<160x64xf32>
    %103 = tpu.matmul %101, %102, %cst_37 {dimension_numbers = #tpu.dot_dimension_numbers<[1], [0], [0], [1], [0, 0, 1, 1], [], []>} : vector<160x64xbf16>, vector<64x64xbf16>, vector<160x64xf32> -> vector<160x64xf32>
    %104 = arith.addf %98, %103 : vector<160x64xf32>
    %105 = vector.extract_strided_slice %1 {offsets = [3, 2, 0], sizes = [10, 16, 64], strides = [1, 1, 1]} : vector<14x24x64xf32> to vector<10x16x64xf32>
    %106 = vector.shape_cast %105 : vector<10x16x64xf32> to vector<160x64xf32>
    %107 = arith.truncf %106 : vector<160x64xf32> to vector<160x64xbf16>
    %c1088 = arith.constant 1088 : index
    %c0_38 = arith.constant 0 : index
    %108 = vector.load %arg2[%c1088, %c0_38] : memref<1600x64xbf16, #tpu.memory_space<vmem>>, vector<64x64xbf16>
    %cst_39 = arith.constant dense<0.000000e+00> : vector<160x64xf32>
    %109 = tpu.matmul %107, %108, %cst_39 {dimension_numbers = #tpu.dot_dimension_numbers<[1], [0], [0], [1], [0, 0, 1, 1], [], []>} : vector<160x64xbf16>, vector<64x64xbf16>, vector<160x64xf32> -> vector<160x64xf32>
    %110 = arith.addf %104, %109 : vector<160x64xf32>
    %111 = vector.extract_strided_slice %1 {offsets = [3, 3, 0], sizes = [10, 16, 64], strides = [1, 1, 1]} : vector<14x24x64xf32> to vector<10x16x64xf32>
    %112 = vector.shape_cast %111 : vector<10x16x64xf32> to vector<160x64xf32>
    %113 = arith.truncf %112 : vector<160x64xf32> to vector<160x64xbf16>
    %c1152 = arith.constant 1152 : index
    %c0_40 = arith.constant 0 : index
    %114 = vector.load %arg2[%c1152, %c0_40] : memref<1600x64xbf16, #tpu.memory_space<vmem>>, vector<64x64xbf16>
    %cst_41 = arith.constant dense<0.000000e+00> : vector<160x64xf32>
    %115 = tpu.matmul %113, %114, %cst_41 {dimension_numbers = #tpu.dot_dimension_numbers<[1], [0], [0], [1], [0, 0, 1, 1], [], []>} : vector<160x64xbf16>, vector<64x64xbf16>, vector<160x64xf32> -> vector<160x64xf32>
    %116 = arith.addf %110, %115 : vector<160x64xf32>
    %117 = vector.extract_strided_slice %1 {offsets = [3, 4, 0], sizes = [10, 16, 64], strides = [1, 1, 1]} : vector<14x24x64xf32> to vector<10x16x64xf32>
    %118 = vector.shape_cast %117 : vector<10x16x64xf32> to vector<160x64xf32>
    %119 = arith.truncf %118 : vector<160x64xf32> to vector<160x64xbf16>
    %c1216 = arith.constant 1216 : index
    %c0_42 = arith.constant 0 : index
    %120 = vector.load %arg2[%c1216, %c0_42] : memref<1600x64xbf16, #tpu.memory_space<vmem>>, vector<64x64xbf16>
    %cst_43 = arith.constant dense<0.000000e+00> : vector<160x64xf32>
    %121 = tpu.matmul %119, %120, %cst_43 {dimension_numbers = #tpu.dot_dimension_numbers<[1], [0], [0], [1], [0, 0, 1, 1], [], []>} : vector<160x64xbf16>, vector<64x64xbf16>, vector<160x64xf32> -> vector<160x64xf32>
    %122 = arith.addf %116, %121 : vector<160x64xf32>
    %123 = vector.extract_strided_slice %1 {offsets = [4, 0, 0], sizes = [10, 16, 64], strides = [1, 1, 1]} : vector<14x24x64xf32> to vector<10x16x64xf32>
    %124 = vector.shape_cast %123 : vector<10x16x64xf32> to vector<160x64xf32>
    %125 = arith.truncf %124 : vector<160x64xf32> to vector<160x64xbf16>
    %c1280 = arith.constant 1280 : index
    %c0_44 = arith.constant 0 : index
    %126 = vector.load %arg2[%c1280, %c0_44] : memref<1600x64xbf16, #tpu.memory_space<vmem>>, vector<64x64xbf16>
    %cst_45 = arith.constant dense<0.000000e+00> : vector<160x64xf32>
    %127 = tpu.matmul %125, %126, %cst_45 {dimension_numbers = #tpu.dot_dimension_numbers<[1], [0], [0], [1], [0, 0, 1, 1], [], []>} : vector<160x64xbf16>, vector<64x64xbf16>, vector<160x64xf32> -> vector<160x64xf32>
    %128 = arith.addf %122, %127 : vector<160x64xf32>
    %129 = vector.extract_strided_slice %1 {offsets = [4, 1, 0], sizes = [10, 16, 64], strides = [1, 1, 1]} : vector<14x24x64xf32> to vector<10x16x64xf32>
    %130 = vector.shape_cast %129 : vector<10x16x64xf32> to vector<160x64xf32>
    %131 = arith.truncf %130 : vector<160x64xf32> to vector<160x64xbf16>
    %c1344 = arith.constant 1344 : index
    %c0_46 = arith.constant 0 : index
    %132 = vector.load %arg2[%c1344, %c0_46] : memref<1600x64xbf16, #tpu.memory_space<vmem>>, vector<64x64xbf16>
    %cst_47 = arith.constant dense<0.000000e+00> : vector<160x64xf32>
    %133 = tpu.matmul %131, %132, %cst_47 {dimension_numbers = #tpu.dot_dimension_numbers<[1], [0], [0], [1], [0, 0, 1, 1], [], []>} : vector<160x64xbf16>, vector<64x64xbf16>, vector<160x64xf32> -> vector<160x64xf32>
    %134 = arith.addf %128, %133 : vector<160x64xf32>
    %135 = vector.extract_strided_slice %1 {offsets = [4, 2, 0], sizes = [10, 16, 64], strides = [1, 1, 1]} : vector<14x24x64xf32> to vector<10x16x64xf32>
    %136 = vector.shape_cast %135 : vector<10x16x64xf32> to vector<160x64xf32>
    %137 = arith.truncf %136 : vector<160x64xf32> to vector<160x64xbf16>
    %c1408 = arith.constant 1408 : index
    %c0_48 = arith.constant 0 : index
    %138 = vector.load %arg2[%c1408, %c0_48] : memref<1600x64xbf16, #tpu.memory_space<vmem>>, vector<64x64xbf16>
    %cst_49 = arith.constant dense<0.000000e+00> : vector<160x64xf32>
    %139 = tpu.matmul %137, %138, %cst_49 {dimension_numbers = #tpu.dot_dimension_numbers<[1], [0], [0], [1], [0, 0, 1, 1], [], []>} : vector<160x64xbf16>, vector<64x64xbf16>, vector<160x64xf32> -> vector<160x64xf32>
    %140 = arith.addf %134, %139 : vector<160x64xf32>
    %141 = vector.extract_strided_slice %1 {offsets = [4, 3, 0], sizes = [10, 16, 64], strides = [1, 1, 1]} : vector<14x24x64xf32> to vector<10x16x64xf32>
    %142 = vector.shape_cast %141 : vector<10x16x64xf32> to vector<160x64xf32>
    %143 = arith.truncf %142 : vector<160x64xf32> to vector<160x64xbf16>
    %c1472 = arith.constant 1472 : index
    %c0_50 = arith.constant 0 : index
    %144 = vector.load %arg2[%c1472, %c0_50] : memref<1600x64xbf16, #tpu.memory_space<vmem>>, vector<64x64xbf16>
    %cst_51 = arith.constant dense<0.000000e+00> : vector<160x64xf32>
    %145 = tpu.matmul %143, %144, %cst_51 {dimension_numbers = #tpu.dot_dimension_numbers<[1], [0], [0], [1], [0, 0, 1, 1], [], []>} : vector<160x64xbf16>, vector<64x64xbf16>, vector<160x64xf32> -> vector<160x64xf32>
    %146 = arith.addf %140, %145 : vector<160x64xf32>
    %147 = vector.extract_strided_slice %1 {offsets = [4, 4, 0], sizes = [10, 16, 64], strides = [1, 1, 1]} : vector<14x24x64xf32> to vector<10x16x64xf32>
    %148 = vector.shape_cast %147 : vector<10x16x64xf32> to vector<160x64xf32>
    %149 = arith.truncf %148 : vector<160x64xf32> to vector<160x64xbf16>
    %c1536 = arith.constant 1536 : index
    %c0_52 = arith.constant 0 : index
    %150 = vector.load %arg2[%c1536, %c0_52] : memref<1600x64xbf16, #tpu.memory_space<vmem>>, vector<64x64xbf16>
    %cst_53 = arith.constant dense<0.000000e+00> : vector<160x64xf32>
    %151 = tpu.matmul %149, %150, %cst_53 {dimension_numbers = #tpu.dot_dimension_numbers<[1], [0], [0], [1], [0, 0, 1, 1], [], []>} : vector<160x64xbf16>, vector<64x64xbf16>, vector<160x64xf32> -> vector<160x64xf32>
    %152 = arith.addf %146, %151 : vector<160x64xf32>
    %c0_54 = arith.constant 0 : index
    %c0_55 = arith.constant 0 : index
    %153 = vector.load %arg3[%c0_54, %c0_55] : memref<1x64xf32, #tpu.memory_space<vmem>>, vector<1x64xf32>
    %154 = vector.broadcast %153 : vector<1x64xf32> to vector<160x64xf32>
    %155 = arith.addf %152, %154 : vector<160x64xf32>
    %cst_56 = arith.constant 0.000000e+00 : f32
    %156 = vector.broadcast %cst_56 : f32 to vector<160x64xf32>
    %157 = arith.maximumf %155, %156 : vector<160x64xf32>
    %158 = vector.shape_cast %157 : vector<160x64xf32> to vector<5x2x16x64xf32>
    %159 = vector.extract_strided_slice %158 {offsets = [0, 0, 0, 0], sizes = [5, 1, 16, 64], strides = [1, 1, 1, 1]} : vector<5x2x16x64xf32> to vector<5x1x16x64xf32>
    %160 = vector.shape_cast %159 : vector<5x1x16x64xf32> to vector<5x16x64xf32>
    %161 = vector.extract_strided_slice %158 {offsets = [0, 1, 0, 0], sizes = [5, 1, 16, 64], strides = [1, 1, 1, 1]} : vector<5x2x16x64xf32> to vector<5x1x16x64xf32>
    %162 = vector.shape_cast %161 : vector<5x1x16x64xf32> to vector<5x16x64xf32>
    %163 = arith.maximumf %160, %162 : vector<5x16x64xf32>
    %164 = vector.extract_strided_slice %163 {offsets = [0, 0, 0], sizes = [5, 15, 64], strides = [1, 1, 1]} : vector<5x16x64xf32> to vector<5x15x64xf32>
    %165 = vector.extract_strided_slice %163 {offsets = [0, 1, 0], sizes = [5, 15, 64], strides = [1, 1, 1]} : vector<5x16x64xf32> to vector<5x15x64xf32>
    %166 = arith.maximumf %164, %165 : vector<5x15x64xf32>
    %c0_57 = arith.constant 0 : index
    %c0_58 = arith.constant 0 : index
    %c0_59 = arith.constant 0 : index
    %c0_60 = arith.constant 0 : index
    %167 = vector.load %arg4[%c0_57, %c0_58, %c0_59, %c0_60] : memref<1x5x15x64xf32, #tpu.memory_space<vmem>>, vector<1x5x15x64xf32>
    %168 = vector.shape_cast %167 : vector<1x5x15x64xf32> to vector<5x15x64xf32>
    %169 = vector.shape_cast %166 : vector<5x15x64xf32> to vector<1x5x15x64xf32>
    tpu.vector_store %arg4[%c0_57, %c0_58, %c0_59, %c0_60], %169 {strides = array<i32>} : memref<1x5x15x64xf32, #tpu.memory_space<vmem>>, vector<1x5x15x64xf32>,
    return
  }
  func.func @transform_0(%arg0: i32) -> (i32, i32, i32, i32) {
    %c0_i32 = arith.constant 0 : i32
    %c0_i32_0 = arith.constant 0 : i32
    %c0_i32_1 = arith.constant 0 : i32
    %c0_i32_2 = arith.constant 0 : i32
    return %arg0, %c0_i32, %c0_i32_0, %c0_i32_1 : i32, i32, i32, i32
  }
  func.func @transform_1(%arg0: i32) -> (i32, i32) {
    %c0_i32 = arith.constant 0 : i32
    %c0_i32_0 = arith.constant 0 : i32
    %c0_i32_1 = arith.constant 0 : i32
    return %c0_i32, %c0_i32_0 : i32, i32
  }
  func.func @transform_2(%arg0: i32) -> (i32, i32) {
    %c0_i32 = arith.constant 0 : i32
    %c0_i32_0 = arith.constant 0 : i32
    %c0_i32_1 = arith.constant 0 : i32
    return %c0_i32, %c0_i32_0 : i32, i32
  }
  func.func @transform_3(%arg0: i32) -> (i32, i32, i32, i32) {
    %c0_i32 = arith.constant 0 : i32
    %c0_i32_0 = arith.constant 0 : i32
    %c0_i32_1 = arith.constant 0 : i32
    %c0_i32_2 = arith.constant 0 : i32
    return %arg0, %c0_i32, %c0_i32_0, %c0_i32_1 : i32, i32, i32, i32
  }
}

module attributes {stable_mosaic.version = 11 : i64} {
  func.func @_head_kernel(%arg0: i32, %arg1: memref<8x1600xbf16, #tpu.memory_space<vmem>>, %arg2: memref<1600x128xbf16, #tpu.memory_space<vmem>>, %arg3: memref<1x128xf32, #tpu.memory_space<vmem>>, %arg4: memref<128x128xbf16, #tpu.memory_space<vmem>>, %arg5: memref<1x128xf32, #tpu.memory_space<vmem>>, %arg6: memref<128x128xbf16, #tpu.memory_space<vmem>>, %arg7: memref<1x128xf32, #tpu.memory_space<vmem>>, %arg8: memref<8x128xf32, #tpu.memory_space<vmem>>) attributes {dimension_semantics = [#tpu.dimension_semantics<parallel>], iteration_bounds = array<i64: 1>, scalar_prefetch = 0 : i64, scratch_operands = 0 : i64, tpu.core_type = #tpu.core_type<tc>, window_params = [{transform_indices = @transform_0, window_bounds = array<i64: 8, 1600>}, {pipeline_mode = #tpu.pipeline_mode<synchronous>, transform_indices = @transform_1, window_bounds = array<i64: 1600, 128>}, {pipeline_mode = #tpu.pipeline_mode<synchronous>, transform_indices = @transform_2, window_bounds = array<i64: 1, 128>}, {pipeline_mode = #tpu.pipeline_mode<synchronous>, transform_indices = @transform_3, window_bounds = array<i64: 128, 128>}, {pipeline_mode = #tpu.pipeline_mode<synchronous>, transform_indices = @transform_4, window_bounds = array<i64: 1, 128>}, {pipeline_mode = #tpu.pipeline_mode<synchronous>, transform_indices = @transform_5, window_bounds = array<i64: 128, 128>}, {pipeline_mode = #tpu.pipeline_mode<synchronous>, transform_indices = @transform_6, window_bounds = array<i64: 1, 128>}, {transform_indices = @transform_7, window_bounds = array<i64: 8, 128>}]} {
    %c0 = arith.constant 0 : index
    %c0_0 = arith.constant 0 : index
    %0 = vector.load %arg1[%c0, %c0_0] : memref<8x1600xbf16, #tpu.memory_space<vmem>>, vector<8x1600xbf16>
    %c0_1 = arith.constant 0 : index
    %c0_2 = arith.constant 0 : index
    %1 = vector.load %arg2[%c0_1, %c0_2] : memref<1600x128xbf16, #tpu.memory_space<vmem>>, vector<1600x128xbf16>
    %cst = arith.constant dense<0.000000e+00> : vector<8x128xf32>
    %2 = tpu.matmul %0, %1, %cst {dimension_numbers = #tpu.dot_dimension_numbers<[1], [0], [0], [1], [0, 0, 1, 1], [], []>} : vector<8x1600xbf16>, vector<1600x128xbf16>, vector<8x128xf32> -> vector<8x128xf32>
    %c0_3 = arith.constant 0 : index
    %c0_4 = arith.constant 0 : index
    %3 = vector.load %arg3[%c0_3, %c0_4] : memref<1x128xf32, #tpu.memory_space<vmem>>, vector<1x128xf32>
    %4 = vector.broadcast %3 : vector<1x128xf32> to vector<8x128xf32>
    %5 = arith.addf %2, %4 : vector<8x128xf32>
    %6 = arith.truncf %5 : vector<8x128xf32> to vector<8x128xbf16>
    %c0_5 = arith.constant 0 : index
    %c0_6 = arith.constant 0 : index
    %7 = vector.load %arg4[%c0_5, %c0_6] : memref<128x128xbf16, #tpu.memory_space<vmem>>, vector<128x128xbf16>
    %cst_7 = arith.constant dense<0.000000e+00> : vector<8x128xf32>
    %8 = tpu.matmul %6, %7, %cst_7 {dimension_numbers = #tpu.dot_dimension_numbers<[1], [0], [0], [1], [0, 0, 1, 1], [], []>} : vector<8x128xbf16>, vector<128x128xbf16>, vector<8x128xf32> -> vector<8x128xf32>
    %c0_8 = arith.constant 0 : index
    %c0_9 = arith.constant 0 : index
    %9 = vector.load %arg5[%c0_8, %c0_9] : memref<1x128xf32, #tpu.memory_space<vmem>>, vector<1x128xf32>
    %10 = vector.broadcast %9 : vector<1x128xf32> to vector<8x128xf32>
    %11 = arith.addf %8, %10 : vector<8x128xf32>
    %12 = arith.truncf %11 : vector<8x128xf32> to vector<8x128xbf16>
    %c0_10 = arith.constant 0 : index
    %c0_11 = arith.constant 0 : index
    %13 = vector.load %arg6[%c0_10, %c0_11] : memref<128x128xbf16, #tpu.memory_space<vmem>>, vector<128x128xbf16>
    %cst_12 = arith.constant dense<0.000000e+00> : vector<8x128xf32>
    %14 = tpu.matmul %12, %13, %cst_12 {dimension_numbers = #tpu.dot_dimension_numbers<[1], [0], [0], [1], [0, 0, 1, 1], [], []>} : vector<8x128xbf16>, vector<128x128xbf16>, vector<8x128xf32> -> vector<8x128xf32>
    %c0_13 = arith.constant 0 : index
    %c0_14 = arith.constant 0 : index
    %15 = vector.load %arg7[%c0_13, %c0_14] : memref<1x128xf32, #tpu.memory_space<vmem>>, vector<1x128xf32>
    %16 = vector.broadcast %15 : vector<1x128xf32> to vector<8x128xf32>
    %17 = arith.addf %14, %16 : vector<8x128xf32>
    %cst_15 = arith.constant dense<0xFF800000> : vector<8xf32>
    %18 = vector.multi_reduction <maximumf>, %17, %cst_15 [1] : vector<8x128xf32> to vector<8xf32>
    %19 = vector.shape_cast %18 : vector<8xf32> to vector<8x1xf32>
    %20 = vector.broadcast %19 : vector<8x1xf32> to vector<8x128xf32>
    %21 = arith.subf %17, %20 : vector<8x128xf32>
    %22 = math.exp %21 : vector<8x128xf32>
    %cst_16 = arith.constant dense<0.000000e+00> : vector<8xf32>
    %23 = vector.multi_reduction <add>, %22, %cst_16 [1] : vector<8x128xf32> to vector<8xf32>
    %24 = vector.shape_cast %23 : vector<8xf32> to vector<8x1xf32>
    %25 = math.log %24 : vector<8x1xf32>
    %26 = vector.broadcast %25 : vector<8x1xf32> to vector<8x128xf32>
    %27 = arith.subf %21, %26 : vector<8x128xf32>
    %c0_17 = arith.constant 0 : index
    %c0_18 = arith.constant 0 : index
    %28 = vector.load %arg8[%c0_17, %c0_18] : memref<8x128xf32, #tpu.memory_space<vmem>>, vector<8x128xf32>
    tpu.vector_store %arg8[%c0_17, %c0_18], %27 {strides = array<i32>} : memref<8x128xf32, #tpu.memory_space<vmem>>, vector<8x128xf32>,
    return
  }
  func.func @transform_0(%arg0: i32) -> (i32, i32) {
    %c0_i32 = arith.constant 0 : i32
    %c0_i32_0 = arith.constant 0 : i32
    return %arg0, %c0_i32 : i32, i32
  }
  func.func @transform_1(%arg0: i32) -> (i32, i32) {
    %c0_i32 = arith.constant 0 : i32
    %c0_i32_0 = arith.constant 0 : i32
    %c0_i32_1 = arith.constant 0 : i32
    return %c0_i32, %c0_i32_0 : i32, i32
  }
  func.func @transform_2(%arg0: i32) -> (i32, i32) {
    %c0_i32 = arith.constant 0 : i32
    %c0_i32_0 = arith.constant 0 : i32
    %c0_i32_1 = arith.constant 0 : i32
    return %c0_i32, %c0_i32_0 : i32, i32
  }
  func.func @transform_3(%arg0: i32) -> (i32, i32) {
    %c0_i32 = arith.constant 0 : i32
    %c0_i32_0 = arith.constant 0 : i32
    %c0_i32_1 = arith.constant 0 : i32
    return %c0_i32, %c0_i32_0 : i32, i32
  }
  func.func @transform_4(%arg0: i32) -> (i32, i32) {
    %c0_i32 = arith.constant 0 : i32
    %c0_i32_0 = arith.constant 0 : i32
    %c0_i32_1 = arith.constant 0 : i32
    return %c0_i32, %c0_i32_0 : i32, i32
  }
  func.func @transform_5(%arg0: i32) -> (i32, i32) {
    %c0_i32 = arith.constant 0 : i32
    %c0_i32_0 = arith.constant 0 : i32
    %c0_i32_1 = arith.constant 0 : i32
    return %c0_i32, %c0_i32_0 : i32, i32
  }
  func.func @transform_6(%arg0: i32) -> (i32, i32) {
    %c0_i32 = arith.constant 0 : i32
    %c0_i32_0 = arith.constant 0 : i32
    %c0_i32_1 = arith.constant 0 : i32
    return %c0_i32, %c0_i32_0 : i32, i32
  }
  func.func @transform_7(%arg0: i32) -> (i32, i32) {
    %c0_i32 = arith.constant 0 : i32
    %c0_i32_0 = arith.constant 0 : i32
    return %arg0, %c0_i32 : i32, i32
  }
}

</mosaic_0001>

<bundles_post_ra>
// kernel: _lambda_.3
= control target key start
LH: loop header
LB: loop body
LE: loop exit
PB: predicated region body
PF: predicated region fallthrough
CT: control target
= control target key end

     0   :  { %s2723_s12 = smov 0   ;;  %s2725_s13 = smov 0   ;;  %s3699_s0 = inlined_call_operand.vmem [shape: f32[4,512,32], index: 0, kind: input, shape index: {}]   ;;  %s3700_s1 = inlined_call_operand.vmem [shape: f32[32,64], index: 1, kind: input, shape index: {}]   ;;  %s3701_s2 = inlined_call_operand.vmem [shape: f32[1,64], index: 2, kind: input, shape index: {}]   ;;  %s3702_s3 = inlined_call_operand.vmem [shape: f32[512,64], index: 3, kind: output, shape index: {}]  }
   0x1   :  { %s2727_s14 = smov 0  }
   0x2 LB: > { %s2168_s15 = sadd.s32 4294967295, %s2701_s14   ;;  %s2740_s16 = sadd.s32 1, %s2701_s14   ;;  %s2701_s14 = sphi %s2727_s14, %s3739_s14   ;;  %s2697_s13 = sphi %s2725_s13, %s3738_s13   ;;  %s2693_s12 = sphi %s2723_s12, %s3737_s12  }
   0x3   : > { %s17_s17 = ssub.s32 %s2701_s14, %s2740_s16  ;;  %s20_s18 = sadd.s32 1, %s2697_s13 }
   0x4   : > { %p18_p0 = scmp.eq.s32.totalorder %s17_s17, 0  ;;  %p27_p1 = scmp.ne.s32.totalorder %s2697_s13, %s2693_s12 }
   0x5   : > { %p28_p2 = scmp.eq.s32.totalorder %s2701_s14, 0  ;;  %p2171_p4 = scmp.ge.s32.totalorder %s2701_s14, 2 }
   0x6   : > { %s2749_s19 = scalar_select %p18_p0, %s2697_s13, %s20_s18  }
   0x7   : > { %p29_p3 = por %p28_p2, %p27_p1  ;;  %127 = sbr.rel (%p2171_p4) target bundleno = 82 (0x52), region = 24 }
   0xe   : > { %130 = sbr.rel (!%p29_p3) target bundleno = 82 (0x52), region = 28  ;;  %s132_s20 = sand.u32 (%p29_p3), 1, %s2697_s13  }
   0xf   : > { %s2310_s21 = sshll.u32 (%p29_p3), %s2701_s14, 8  ;;  %s2172_s22 = sshll.u32 (%p29_p3), %s132_s20, 10 }
  0x10   : > { %s2757_s25 = scalar_lea.vmem (%p29_p3), %s3699_s0, %s2310_s21  ;;  %s2762_s26 = scalar_lea.vmem (%p29_p3), [#allocation2], %s2172_s22 }
  0x11   : > { %v419_v0 = vld [vmem:[%s2757_s25] sm:$0xff] (%p29_p3)  ;;  %v421_v1 = vld [vmem:[%s2757_s25 + $0x8] sm:$0xff] (%p29_p3)  ;;  %v423_v2 = vld [vmem:[%s2757_s25 + $0x10] sm:$0xff] (%p29_p3) }
  0x12   : > { %420 = vst [vmem:[%s2762_s26] sm:$0xff] (%p29_p3), %v419_v0  ;;  %422 = vst [vmem:[%s2762_s26 + $0x8] sm:$0xff] (%p29_p3), %v421_v1  ;;  %v425_v3 = vld [vmem:[%s2757_s25 + $0x18] sm:$0xff] (%p29_p3)  ;;  %v427_v4 = vld [vmem:[%s2757_s25 + $0x20] sm:$0xff] (%p29_p3) }
  0x13   : > { %424 = vst [vmem:[%s2762_s26 + $0x10] sm:$0xff] (%p29_p3), %v423_v2  ;;  %v429_v5 = vld [vmem:[%s2757_s25 + $0x28] sm:$0xff] (%p29_p3)  ;;  %426 = vst [vmem:[%s2762_s26 + $0x18] sm:$0xff] (%p29_p3), %v425_v3  ;;  %v431_v6 = vld [vmem:[%s2757_s25 + $0x30] sm:$0xff] (%p29_p3) }
  0x14   : > { %428 = vst [vmem:[%s2762_s26 + $0x20] sm:$0xff] (%p29_p3), %v427_v4  ;;  %430 = vst [vmem:[%s2762_s26 + $0x28] sm:$0xff] (%p29_p3), %v429_v5  ;;  %v433_v7 = vld [vmem:[%s2757_s25 + $0x38] sm:$0xff] (%p29_p3)  ;;  %v435_v8 = vld [vmem:[%s2757_s25 + $0x40] sm:$0xff] (%p29_p3) }
  0x15   : > { %432 = vst [vmem:[%s2762_s26 + $0x30] sm:$0xff] %v431_v6  ;;  %434 = vst [vmem:[%s2762_s26 + $0x38] sm:$0xff] %v433_v7  ;;  %v437_v9 = vld [vmem:[%s2757_s25 + $0x48] sm:$0xff]  ;;  %v439_v10 = vld [vmem:[%s2757_s25 + $0x50] sm:$0xff] }
  0x16   : > { %436 = vst [vmem:[%s2762_s26 + $0x40] sm:$0xff] %v435_v8  ;;  %v441_v11 = vld [vmem:[%s2757_s25 + $0x58] sm:$0xff]  ;;  %438 = vst [vmem:[%s2762_s26 + $0x48] sm:$0xff] %v437_v9  ;;  %v443_v12 = vld [vmem:[%s2757_s25 + $0x60] sm:$0xff] }
  0x17   : > { %440 = vst [vmem:[%s2762_s26 + $0x50] sm:$0xff] %v439_v10  ;;  %442 = vst [vmem:[%s2762_s26 + $0x58] sm:$0xff] %v441_v11  ;;  %v445_v13 = vld [vmem:[%s2757_s25 + $0x68] sm:$0xff]  ;;  %v447_v14 = vld [vmem:[%s2757_s25 + $0x70] sm:$0xff] }
  0x18   : > { %444 = vst [vmem:[%s2762_s26 + $0x60] sm:$0xff] %v443_v12  ;;  %446 = vst [vmem:[%s2762_s26 + $0x68] sm:$0xff] %v445_v13  ;;  %v449_v15 = vld [vmem:[%s2757_s25 + $0x78] sm:$0xff]  ;;  %v451_v16 = vld [vmem:[%s2757_s25 + $0x80] sm:$0xff] }
  0x19   : > { %448 = vst [vmem:[%s2762_s26 + $0x70] sm:$0xff] %v447_v14  ;;  %v453_v17 = vld [vmem:[%s2757_s25 + $0x88] sm:$0xff]  ;;  %450 = vst [vmem:[%s2762_s26 + $0x78] sm:$0xff] %v449_v15  ;;  %v455_v18 = vld [vmem:[%s2757_s25 + $0x90] sm:$0xff] }
  0x1a   : > { %452 = vst [vmem:[%s2762_s26 + $0x80] sm:$0xff] %v451_v16  ;;  %454 = vst [vmem:[%s2762_s26 + $0x88] sm:$0xff] %v453_v17  ;;  %v457_v19 = vld [vmem:[%s2757_s25 + $0x98] sm:$0xff]  ;;  %v459_v20 = vld [vmem:[%s2757_s25 + $0xa0] sm:$0xff] }
  0x1b   : > { %456 = vst [vmem:[%s2762_s26 + $0x90] sm:$0xff] %v455_v18  ;;  %458 = vst [vmem:[%s2762_s26 + $0x98] sm:$0xff] %v457_v19  ;;  %v461_v21 = vld [vmem:[%s2757_s25 + $0xa8] sm:$0xff]  ;;  %v463_v22 = vld [vmem:[%s2757_s25 + $0xb0] sm:$0xff] }
  0x1c   : > { %460 = vst [vmem:[%s2762_s26 + $0xa0] sm:$0xff] %v459_v20  ;;  %v465_v23 = vld [vmem:[%s2757_s25 + $0xb8] sm:$0xff]  ;;  %462 = vst [vmem:[%s2762_s26 + $0xa8] sm:$0xff] %v461_v21  ;;  %v467_v24 = vld [vmem:[%s2757_s25 + $0xc0] sm:$0xff] }
  0x1d   : > { %464 = vst [vmem:[%s2762_s26 + $0xb0] sm:$0xff] %v463_v22  ;;  %466 = vst [vmem:[%s2762_s26 + $0xb8] sm:$0xff] %v465_v23  ;;  %v469_v25 = vld [vmem:[%s2757_s25 + $0xc8] sm:$0xff]  ;;  %v471_v26 = vld [vmem:[%s2757_s25 + $0xd0] sm:$0xff] }
  0x1e   : > { %468 = vst [vmem:[%s2762_s26 + $0xc0] sm:$0xff] %v467_v24  ;;  %470 = vst [vmem:[%s2762_s26 + $0xc8] sm:$0xff] %v469_v25  ;;  %v473_v27 = vld [vmem:[%s2757_s25 + $0xd8] sm:$0xff]  ;;  %v475_v28 = vld [vmem:[%s2757_s25 + $0xe0] sm:$0xff] }
  0x1f   : > { %472 = vst [vmem:[%s2762_s26 + $0xd0] sm:$0xff] %v471_v26  ;;  %v477_v29 = vld [vmem:[%s2757_s25 + $0xe8] sm:$0xff]  ;;  %474 = vst [vmem:[%s2762_s26 + $0xd8] sm:$0xff] %v473_v27  ;;  %v479_v30 = vld [vmem:[%s2757_s25 + $0xf0] sm:$0xff] }
  0x20   : > { %476 = vst [vmem:[%s2762_s26 + $0xe0] sm:$0xff] %v475_v28  ;;  %478 = vst [vmem:[%s2762_s26 + $0xe8] sm:$0xff] %v477_v29  ;;  %v481_v31 = vld [vmem:[%s2757_s25 + $0xf8] sm:$0xff]  ;;  %v483_v32 = vld [vmem:[%s2757_s25 + $0x200] sm:$0xff] }
  0x21   : > { %480 = vst [vmem:[%s2762_s26 + $0xf0] sm:$0xff] %v479_v30  ;;  %482 = vst [vmem:[%s2762_s26 + $0xf8] sm:$0xff] %v481_v31  ;;  %v485_v33 = vld [vmem:[%s2757_s25 + $0x208] sm:$0xff]  ;;  %v487_v34 = vld [vmem:[%s2757_s25 + $0x210] sm:$0xff] }
  0x22   : > { %484 = vst [vmem:[%s2762_s26 + $0x100] sm:$0xff] %v483_v32  ;;  %v489_v35 = vld [vmem:[%s2757_s25 + $0x218] sm:$0xff]  ;;  %486 = vst [vmem:[%s2762_s26 + $0x108] sm:$0xff] %v485_v33  ;;  %v491_v36 = vld [vmem:[%s2757_s25 + $0x220] sm:$0xff] }
  0x23   : > { %488 = vst [vmem:[%s2762_s26 + $0x110] sm:$0xff] %v487_v34  ;;  %490 = vst [vmem:[%s2762_s26 + $0x118] sm:$0xff] %v489_v35  ;;  %v493_v37 = vld [vmem:[%s2757_s25 + $0x228] sm:$0xff]  ;;  %v495_v38 = vld [vmem:[%s2757_s25 + $0x230] sm:$0xff] }
  0x24   : > { %492 = vst [vmem:[%s2762_s26 + $0x120] sm:$0xff] %v491_v36  ;;  %494 = vst [vmem:[%s2762_s26 + $0x128] sm:$0xff] %v493_v37  ;;  %v497_v39 = vld [vmem:[%s2757_s25 + $0x238] sm:$0xff]  ;;  %v499_v40 = vld [vmem:[%s2757_s25 + $0x240] sm:$0xff] }
  0x25   : > { %496 = vst [vmem:[%s2762_s26 + $0x130] sm:$0xff] %v495_v38  ;;  %v501_v41 = vld [vmem:[%s2757_s25 + $0x248] sm:$0xff]  ;;  %498 = vst [vmem:[%s2762_s26 + $0x138] sm:$0xff] %v497_v39  ;;  %v503_v42 = vld [vmem:[%s2757_s25 + $0x250] sm:$0xff] }
  0x26   : > { %500 = vst [vmem:[%s2762_s26 + $0x140] sm:$0xff] %v499_v40  ;;  %502 = vst [vmem:[%s2762_s26 + $0x148] sm:$0xff] %v501_v41  ;;  %v505_v43 = vld [vmem:[%s2757_s25 + $0x258] sm:$0xff]  ;;  %v507_v44 = vld [vmem:[%s2757_s25 + $0x260] sm:$0xff] }
  0x27   : > { %504 = vst [vmem:[%s2762_s26 + $0x150] sm:$0xff] %v503_v42  ;;  %506 = vst [vmem:[%s2762_s26 + $0x158] sm:$0xff] %v505_v43  ;;  %v509_v45 = vld [vmem:[%s2757_s25 + $0x268] sm:$0xff]  ;;  %v511_v46 = vld [vmem:[%s2757_s25 + $0x270] sm:$0xff] }
  0x28   : > { %508 = vst [vmem:[%s2762_s26 + $0x160] sm:$0xff] %v507_v44  ;;  %v513_v47 = vld [vmem:[%s2757_s25 + $0x278] sm:$0xff]  ;;  %510 = vst [vmem:[%s2762_s26 + $0x168] sm:$0xff] %v509_v45  ;;  %v515_v48 = vld [vmem:[%s2757_s25 + $0x280] sm:$0xff] }
  0x29   : > { %512 = vst [vmem:[%s2762_s26 + $0x170] sm:$0xff] %v511_v46  ;;  %514 = vst [vmem:[%s2762_s26 + $0x178] sm:$0xff] %v513_v47  ;;  %v517_v49 = vld [vmem:[%s2757_s25 + $0x288] sm:$0xff]  ;;  %v519_v50 = vld [vmem:[%s2757_s25 + $0x290] sm:$0xff] }
  0x2a   : > { %516 = vst [vmem:[%s2762_s26 + $0x180] sm:$0xff] %v515_v48  ;;  %518 = vst [vmem:[%s2762_s26 + $0x188] sm:$0xff] %v517_v49  ;;  %v521_v51 = vld [vmem:[%s2757_s25 + $0x298] sm:$0xff]  ;;  %v523_v52 = vld [vmem:[%s2757_s25 + $0x2a0] sm:$0xff] }
  0x2b   : > { %520 = vst [vmem:[%s2762_s26 + $0x190] sm:$0xff] %v519_v50  ;;  %v525_v53 = vld [vmem:[%s2757_s25 + $0x2a8] sm:$0xff]  ;;  %522 = vst [vmem:[%s2762_s26 + $0x198] sm:$0xff] %v521_v51  ;;  %v527_v54 = vld [vmem:[%s2757_s25 + $0x2b0] sm:$0xff] }
  0x2c   : > { %524 = vst [vmem:[%s2762_s26 + $0x1a0] sm:$0xff] %v523_v52  ;;  %526 = vst [vmem:[%s2762_s26 + $0x1a8] sm:$0xff] %v525_v53  ;;  %v529_v55 = vld [vmem:[%s2757_s25 + $0x2b8] sm:$0xff]  ;;  %v531_v56 = vld [vmem:[%s2757_s25 + $0x2c0] sm:$0xff] }
  0x2d   : > { %528 = vst [vmem:[%s2762_s26 + $0x1b0] sm:$0xff] %v527_v54  ;;  %530 = vst [vmem:[%s2762_s26 + $0x1b8] sm:$0xff] %v529_v55  ;;  %v533_v57 = vld [vmem:[%s2757_s25 + $0x2c8] sm:$0xff]  ;;  %v535_v58 = vld [vmem:[%s2757_s25 + $0x2d0] sm:$0xff] }
  0x2e   : > { %532 = vst [vmem:[%s2762_s26 + $0x1c0] sm:$0xff] %v531_v56  ;;  %v537_v59 = vld [vmem:[%s2757_s25 + $0x2d8] sm:$0xff]  ;;  %534 = vst [vmem:[%s2762_s26 + $0x1c8] sm:$0xff] %v533_v57  ;;  %v539_v60 = vld [vmem:[%s2757_s25 + $0x2e0] sm:$0xff] }
  0x2f   : > { %536 = vst [vmem:[%s2762_s26 + $0x1d0] sm:$0xff] %v535_v58  ;;  %538 = vst [vmem:[%s2762_s26 + $0x1d8] sm:$0xff] %v537_v59  ;;  %v541_v61 = vld [vmem:[%s2757_s25 + $0x2e8] sm:$0xff]  ;;  %v543_v62 = vld [vmem:[%s2757_s25 + $0x2f0] sm:$0xff] }
  0x30   : > { %540 = vst [vmem:[%s2762_s26 + $0x1e0] sm:$0xff] %v539_v60  ;;  %542 = vst [vmem:[%s2762_s26 + $0x1e8] sm:$0xff] %v541_v61  ;;  %v545_v63 = vld [vmem:[%s2757_s25 + $0x2f8] sm:$0xff]  ;;  %v547_v0 = vld [vmem:[%s2757_s25 + $0x400] sm:$0xff] }
  0x31   : > { %544 = vst [vmem:[%s2762_s26 + $0x1f0] sm:$0xff] %v543_v62  ;;  %v549_v1 = vld [vmem:[%s2757_s25 + $0x408] sm:$0xff]  ;;  %546 = vst [vmem:[%s2762_s26 + $0x1f8] sm:$0xff] %v545_v63  ;;  %v551_v2 = vld [vmem:[%s2757_s25 + $0x410] sm:$0xff] }
  0x32   : > { %548 = vst [vmem:[%s2762_s26 + $0x200] sm:$0xff] %v547_v0  ;;  %550 = vst [vmem:[%s2762_s26 + $0x208] sm:$0xff] %v549_v1  ;;  %v553_v3 = vld [vmem:[%s2757_s25 + $0x418] sm:$0xff]  ;;  %v555_v4 = vld [vmem:[%s2757_s25 + $0x420] sm:$0xff] }
  0x33   : > { %552 = vst [vmem:[%s2762_s26 + $0x210] sm:$0xff] %v551_v2  ;;  %554 = vst [vmem:[%s2762_s26 + $0x218] sm:$0xff] %v553_v3  ;;  %v557_v5 = vld [vmem:[%s2757_s25 + $0x428] sm:$0xff]  ;;  %v559_v6 = vld [vmem:[%s2757_s25 + $0x430] sm:$0xff] }
  0x34   : > { %556 = vst [vmem:[%s2762_s26 + $0x220] sm:$0xff] %v555_v4  ;;  %v561_v7 = vld [vmem:[%s2757_s25 + $0x438] sm:$0xff]  ;;  %558 = vst [vmem:[%s2762_s26 + $0x228] sm:$0xff] %v557_v5  ;;  %v563_v8 = vld [vmem:[%s2757_s25 + $0x440] sm:$0xff] }
  0x35   : > { %560 = vst [vmem:[%s2762_s26 + $0x230] sm:$0xff] %v559_v6  ;;  %562 = vst [vmem:[%s2762_s26 + $0x238] sm:$0xff] %v561_v7  ;;  %v565_v9 = vld [vmem:[%s2757_s25 + $0x448] sm:$0xff]  ;;  %v567_v10 = vld [vmem:[%s2757_s25 + $0x450] sm:$0xff] }
  0x36   : > { %564 = vst [vmem:[%s2762_s26 + $0x240] sm:$0xff] %v563_v8  ;;  %566 = vst [vmem:[%s2762_s26 + $0x248] sm:$0xff] %v565_v9  ;;  %v569_v11 = vld [vmem:[%s2757_s25 + $0x458] sm:$0xff]  ;;  %v571_v12 = vld [vmem:[%s2757_s25 + $0x460] sm:$0xff] }
  0x37   : > { %568 = vst [vmem:[%s2762_s26 + $0x250] sm:$0xff] %v567_v10  ;;  %v573_v13 = vld [vmem:[%s2757_s25 + $0x468] sm:$0xff]  ;;  %570 = vst [vmem:[%s2762_s26 + $0x258] sm:$0xff] %v569_v11  ;;  %v575_v14 = vld [vmem:[%s2757_s25 + $0x470] sm:$0xff] }
  0x38   : > { %572 = vst [vmem:[%s2762_s26 + $0x260] sm:$0xff] %v571_v12  ;;  %574 = vst [vmem:[%s2762_s26 + $0x268] sm:$0xff] %v573_v13  ;;  %v577_v15 = vld [vmem:[%s2757_s25 + $0x478] sm:$0xff]  ;;  %v579_v16 = vld [vmem:[%s2757_s25 + $0x480] sm:$0xff] }
  0x39   : > { %576 = vst [vmem:[%s2762_s26 + $0x270] sm:$0xff] %v575_v14  ;;  %578 = vst [vmem:[%s2762_s26 + $0x278] sm:$0xff] %v577_v15  ;;  %v581_v17 = vld [vmem:[%s2757_s25 + $0x488] sm:$0xff]  ;;  %v583_v18 = vld [vmem:[%s2757_s25 + $0x490] sm:$0xff] }
  0x3a   : > { %580 = vst [vmem:[%s2762_s26 + $0x280] sm:$0xff] %v579_v16  ;;  %v585_v19 = vld [vmem:[%s2757_s25 + $0x498] sm:$0xff]  ;;  %582 = vst [vmem:[%s2762_s26 + $0x288] sm:$0xff] %v581_v17  ;;  %v587_v20 = vld [vmem:[%s2757_s25 + $0x4a0] sm:$0xff] }
  0x3b   : > { %584 = vst [vmem:[%s2762_s26 + $0x290] sm:$0xff] %v583_v18  ;;  %586 = vst [vmem:[%s2762_s26 + $0x298] sm:$0xff] %v585_v19  ;;  %v589_v21 = vld [vmem:[%s2757_s25 + $0x4a8] sm:$0xff]  ;;  %v591_v22 = vld [vmem:[%s2757_s25 + $0x4b0] sm:$0xff] }
  0x3c   : > { %588 = vst [vmem:[%s2762_s26 + $0x2a0] sm:$0xff] %v587_v20  ;;  %590 = vst [vmem:[%s2762_s26 + $0x2a8] sm:$0xff] %v589_v21  ;;  %v593_v23 = vld [vmem:[%s2757_s25 + $0x4b8] sm:$0xff]  ;;  %v595_v24 = vld [vmem:[%s2757_s25 + $0x4c0] sm:$0xff] }
  0x3d   : > { %592 = vst [vmem:[%s2762_s26 + $0x2b0] sm:$0xff] %v591_v22  ;;  %v597_v25 = vld [vmem:[%s2757_s25 + $0x4c8] sm:$0xff]  ;;  %594 = vst [vmem:[%s2762_s26 + $0x2b8] sm:$0xff] %v593_v23  ;;  %v599_v26 = vld [vmem:[%s2757_s25 + $0x4d0] sm:$0xff] }
  0x3e   : > { %596 = vst [vmem:[%s2762_s26 + $0x2c0] sm:$0xff] %v595_v24  ;;  %598 = vst [vmem:[%s2762_s26 + $0x2c8] sm:$0xff] %v597_v25  ;;  %v601_v27 = vld [vmem:[%s2757_s25 + $0x4d8] sm:$0xff]  ;;  %v603_v28 = vld [vmem:[%s2757_s25 + $0x4e0] sm:$0xff] }
  0x3f   : > { %600 = vst [vmem:[%s2762_s26 + $0x2d0] sm:$0xff] %v599_v26  ;;  %602 = vst [vmem:[%s2762_s26 + $0x2d8] sm:$0xff] %v601_v27  ;;  %v605_v29 = vld [vmem:[%s2757_s25 + $0x4e8] sm:$0xff]  ;;  %v607_v30 = vld [vmem:[%s2757_s25 + $0x4f0] sm:$0xff] }
  0x40   : > { %604 = vst [vmem:[%s2762_s26 + $0x2e0] sm:$0xff] %v603_v28  ;;  %v609_v31 = vld [vmem:[%s2757_s25 + $0x4f8] sm:$0xff]  ;;  %606 = vst [vmem:[%s2762_s26 + $0x2e8] sm:$0xff] %v605_v29  ;;  %v611_v32 = vld [vmem:[%s2757_s25 + $0x600] sm:$0xff] }
  0x41   : > { %608 = vst [vmem:[%s2762_s26 + $0x2f0] sm:$0xff] %v607_v30  ;;  %610 = vst [vmem:[%s2762_s26 + $0x2f8] sm:$0xff] %v609_v31  ;;  %v613_v33 = vld [vmem:[%s2757_s25 + $0x608] sm:$0xff]  ;;  %v615_v34 = vld [vmem:[%s2757_s25 + $0x610] sm:$0xff] }
  0x42   : > { %612 = vst [vmem:[%s2762_s26 + $0x300] sm:$0xff] %v611_v32  ;;  %614 = vst [vmem:[%s2762_s26 + $0x308] sm:$0xff] %v613_v33  ;;  %v617_v35 = vld [vmem:[%s2757_s25 + $0x618] sm:$0xff]  ;;  %v619_v36 = vld [vmem:[%s2757_s25 + $0x620] sm:$0xff] }
  0x43   : > { %616 = vst [vmem:[%s2762_s26 + $0x310] sm:$0xff] %v615_v34  ;;  %v621_v37 = vld [vmem:[%s2757_s25 + $0x628] sm:$0xff]  ;;  %618 = vst [vmem:[%s2762_s26 + $0x318] sm:$0xff] %v617_v35  ;;  %v623_v38 = vld [vmem:[%s2757_s25 + $0x630] sm:$0xff] }
  0x44   : > { %620 = vst [vmem:[%s2762_s26 + $0x320] sm:$0xff] %v619_v36  ;;  %622 = vst [vmem:[%s2762_s26 + $0x328] sm:$0xff] %v621_v37  ;;  %v625_v39 = vld [vmem:[%s2757_s25 + $0x638] sm:$0xff]  ;;  %v627_v40 = vld [vmem:[%s2757_s25 + $0x640] sm:$0xff] }
  0x45   : > { %624 = vst [vmem:[%s2762_s26 + $0x330] sm:$0xff] %v623_v38  ;;  %626 = vst [vmem:[%s2762_s26 + $0x338] sm:$0xff] %v625_v39  ;;  %v629_v41 = vld [vmem:[%s2757_s25 + $0x648] sm:$0xff]  ;;  %v631_v42 = vld [vmem:[%s2757_s25 + $0x650] sm:$0xff] }
  0x46   : > { %628 = vst [vmem:[%s2762_s26 + $0x340] sm:$0xff] %v627_v40  ;;  %v633_v43 = vld [vmem:[%s2757_s25 + $0x658] sm:$0xff]  ;;  %630 = vst [vmem:[%s2762_s26 + $0x348] sm:$0xff] %v629_v41  ;;  %v635_v44 = vld [vmem:[%s2757_s25 + $0x660] sm:$0xff] }
  0x47   : > { %632 = vst [vmem:[%s2762_s26 + $0x350] sm:$0xff] %v631_v42  ;;  %634 = vst [vmem:[%s2762_s26 + $0x358] sm:$0xff] %v633_v43  ;;  %v637_v45 = vld [vmem:[%s2757_s25 + $0x668] sm:$0xff]  ;;  %v639_v46 = vld [vmem:[%s2757_s25 + $0x670] sm:$0xff] }
  0x48   : > { %636 = vst [vmem:[%s2762_s26 + $0x360] sm:$0xff] %v635_v44  ;;  %638 = vst [vmem:[%s2762_s26 + $0x368] sm:$0xff] %v637_v45  ;;  %v641_v47 = vld [vmem:[%s2757_s25 + $0x678] sm:$0xff]  ;;  %v643_v48 = vld [vmem:[%s2757_s25 + $0x680] sm:$0xff] }
  0x49   : > { %640 = vst [vmem:[%s2762_s26 + $0x370] sm:$0xff] %v639_v46  ;;  %v645_v49 = vld [vmem:[%s2757_s25 + $0x688] sm:$0xff]  ;;  %642 = vst [vmem:[%s2762_s26 + $0x378] sm:$0xff] %v641_v47  ;;  %v647_v50 = vld [vmem:[%s2757_s25 + $0x690] sm:$0xff] }
  0x4a   : > { %644 = vst [vmem:[%s2762_s26 + $0x380] sm:$0xff] %v643_v48  ;;  %646 = vst [vmem:[%s2762_s26 + $0x388] sm:$0xff] %v645_v49  ;;  %v649_v51 = vld [vmem:[%s2757_s25 + $0x698] sm:$0xff]  ;;  %v651_v52 = vld [vmem:[%s2757_s25 + $0x6a0] sm:$0xff] }
  0x4b   : > { %648 = vst [vmem:[%s2762_s26 + $0x390] sm:$0xff] %v647_v50  ;;  %650 = vst [vmem:[%s2762_s26 + $0x398] sm:$0xff] %v649_v51  ;;  %v653_v53 = vld [vmem:[%s2757_s25 + $0x6a8] sm:$0xff]  ;;  %v655_v54 = vld [vmem:[%s2757_s25 + $0x6b0] sm:$0xff] }
  0x4c   : > { %652 = vst [vmem:[%s2762_s26 + $0x3a0] sm:$0xff] %v651_v52  ;;  %v657_v55 = vld [vmem:[%s2757_s25 + $0x6b8] sm:$0xff]  ;;  %654 = vst [vmem:[%s2762_s26 + $0x3a8] sm:$0xff] %v653_v53  ;;  %v659_v56 = vld [vmem:[%s2757_s25 + $0x6c0] sm:$0xff] }
  0x4d   : > { %656 = vst [vmem:[%s2762_s26 + $0x3b0] sm:$0xff] %v655_v54  ;;  %658 = vst [vmem:[%s2762_s26 + $0x3b8] sm:$0xff] %v657_v55  ;;  %v661_v57 = vld [vmem:[%s2757_s25 + $0x6c8] sm:$0xff]  ;;  %v663_v58 = vld [vmem:[%s2757_s25 + $0x6d0] sm:$0xff] }
  0x4e   : > { %660 = vst [vmem:[%s2762_s26 + $0x3c0] sm:$0xff] %v659_v56  ;;  %662 = vst [vmem:[%s2762_s26 + $0x3c8] sm:$0xff] %v661_v57  ;;  %v665_v59 = vld [vmem:[%s2757_s25 + $0x6d8] sm:$0xff]  ;;  %v667_v60 = vld [vmem:[%s2757_s25 + $0x6e0] sm:$0xff] }
  0x4f   : > { %664 = vst [vmem:[%s2762_s26 + $0x3d0] sm:$0xff] %v663_v58  ;;  %v669_v61 = vld [vmem:[%s2757_s25 + $0x6e8] sm:$0xff]  ;;  %666 = vst [vmem:[%s2762_s26 + $0x3d8] sm:$0xff] %v665_v59  ;;  %v671_v62 = vld [vmem:[%s2757_s25 + $0x6f0] sm:$0xff] }
  0x50   : > { %668 = vst [vmem:[%s2762_s26 + $0x3e0] sm:$0xff] %v667_v60  ;;  %670 = vst [vmem:[%s2762_s26 + $0x3e8] sm:$0xff] %v669_v61  ;;  %v673_v63 = vld [vmem:[%s2757_s25 + $0x6f8] sm:$0xff] }
  0x51   : > { %672 = vst [vmem:[%s2762_s26 + $0x3f0] sm:$0xff] %v671_v62  ;;  %674 = vst [vmem:[%s2762_s26 + $0x3f8] sm:$0xff] %v673_v63 }
  0x52 PF: > { %p2175_p5 = scmp.ge.s32.totalorder %s2701_s14, 1  ;;  %p679_p6 = scmp.lt.s32.totalorder %s2701_s14, 3 }
  0x54   : > { %p680_p7 = pnand %p2175_p5, %p679_p6 }
  0x56   : > { %683 = sbr.rel (%p680_p7) target bundleno = 450 (0x1c2), region = 66 }
  0x5d   : > { %v844_v0 = vld [vmem:[%s3700_s1] sm:$0xff]  ;;  %v845_v1 = vld [vmem:[%s3700_s1 + $0x8] sm:$0xff]  ;;  %v846_v2 = vld [vmem:[%s3700_s1 + $0x10] sm:$0xff]  ;;  %s686_s6 = sand.u32 1, %s2693_s12   ;;  %vm855_vm0 = vcmask 261120   ;;  %s2177_s11 = sshll.u32 %s2168_s15, 5 }
  0x5e   : > { %v2643_v3 = vpack.c.bf16 %v845_v1, %v844_v0  ;;  %v847_v4 = vld [vmem:[%s3700_s1 + $0x18] sm:$0xff]  ;;  %s2176_s9 = sshll.u32 %s686_s6, 10  ;;  %p711_p8 = scmp.lt.s32.totalorder %s2177_s11, 63  ;;  %vm2073_vm1 = vcmask 523264  }
  0x5f   : > { %v2647_v5 = vpack.c.bf16 %v847_v4, %v846_v2  ;;  %s3032_s10 = scalar_lea.vmem [#allocation2], %s2176_s9 }
  0x60   : > { %2644 = vmatprep.subr.bf16.mxu0 %v2643_v3  ;;  %2651 = vmatprep.subr.bf16.mxu1 %v2643_v3  ;;  %v716_v6 = vld [vmem:[%s3032_s10] sm:$0xff]  ;;  %v717_v8 = vld [vmem:[%s3032_s10 + $0x8] sm:$0xff]  ;;  %v718_v10 = vld [vmem:[%s3032_s10 + $0x10] sm:$0xff]  ;;  %s3741_s11 = smov (!%p711_p8, %s2177_s11), 63 }
  0x61   : > { %v780_v7 = vld [vmem:[%s3032_s10 + $0x200] sm:$0xff]  ;;  %2646 = vmatpush3.bf16.msra.mxu0 %v2643_v3  ;;  %2653 = vmatpush3.bf16.msra.mxu1 %v2643_v3  ;;  %v781_v9 = vld [vmem:[%s3032_s10 + $0x208] sm:$0xff]  ;;  %v782_v11 = vld [vmem:[%s3032_s10 + $0x210] sm:$0xff]  ;;  %s2178_s14 = sshll.u32 %s3741_s11, 3 }
  0x62   : > { %2648 = vmatprep.subr.bf16.mxu0 %v2647_v5  ;;  %2652 = vmatprep.subr.bf16.mxu1 %v2647_v5  ;;  %v719_v12 = vld [vmem:[%s3032_s10 + $0x18] sm:$0xff]  ;;  %v720_v14 = vld [vmem:[%s3032_s10 + $0x20] sm:$0xff]  ;;  %v721_v16 = vld [vmem:[%s3032_s10 + $0x28] sm:$0xff]  ;;  %s3453_s20 = scalar_lea.vmem %s3702_s3, %s2178_s14 }
  0x63   : > { %2451 = vmatprep.mubr.msk.f32.mxu0 %vm855_vm0, %v716_v6  ;;  %2547 = vmatprep.mubr.msk.f32.mxu1 %vm855_vm0, %v780_v7  ;;  %v783_v13 = vld [vmem:[%s3032_s10 + $0x218] sm:$0xff]  ;;  %v784_v15 = vld [vmem:[%s3032_s10 + $0x220] sm:$0xff]  ;;  %v785_v17 = vld [vmem:[%s3032_s10 + $0x228] sm:$0xff] }
  0x64   : > { %v722_v18 = vld [vmem:[%s3032_s10 + $0x30] sm:$0xff]  ;;  %v723_v20 = vld [vmem:[%s3032_s10 + $0x38] sm:$0xff]  ;;  %v724_v22 = vld [vmem:[%s3032_s10 + $0x40] sm:$0xff] }
  0x65   : > { %2650 = vmatpush3.bf16.msra.mxu0 %v2647_v5  ;;  %2654 = vmatpush3.bf16.msra.mxu1 %v2647_v5  ;;  %v786_v19 = vld [vmem:[%s3032_s10 + $0x230] sm:$0xff]  ;;  %v787_v21 = vld [vmem:[%s3032_s10 + $0x238] sm:$0xff]  ;;  %v788_v23 = vld [vmem:[%s3032_s10 + $0x240] sm:$0xff] }
  0x66   : > { %v725_v24 = vld [vmem:[%s3032_s10 + $0x48] sm:$0xff]  ;;  %v726_v26 = vld [vmem:[%s3032_s10 + $0x50] sm:$0xff]  ;;  %v727_v28 = vld [vmem:[%s3032_s10 + $0x58] sm:$0xff] }
  0x67   : > { %v789_v25 = vld [vmem:[%s3032_s10 + $0x248] sm:$0xff]  ;;  %v790_v27 = vld [vmem:[%s3032_s10 + $0x250] sm:$0xff]  ;;  %v791_v29 = vld [vmem:[%s3032_s10 + $0x258] sm:$0xff] }
  0x68   : > { %2452 = vmatmul.mubr.msk.f32.vlgmr.msra.gmra.mrb[0].mxu0 %vm855_vm0, %v717_v8  ;;  %2548 = vmatmul.mubr.msk.f32.vlgmr.msra.gmra.mrb[0].mxu1 %vm855_vm0, %v781_v9  ;;  %v728_v30 = vld [vmem:[%s3032_s10 + $0x60] sm:$0xff]  ;;  %v729_v32 = vld [vmem:[%s3032_s10 + $0x68] sm:$0xff]  ;;  %v730_v34 = vld [vmem:[%s3032_s10 + $0x70] sm:$0xff] }
  0x69   : > { %2454 = vmatprep.mubr.msk.f32.mxu0 %vm855_vm0, %v718_v10  ;;  %2550 = vmatprep.mubr.msk.f32.mxu1 %vm855_vm0, %v782_v11  ;;  %v792_v31 = vld [vmem:[%s3032_s10 + $0x260] sm:$0xff]  ;;  %v793_v33 = vld [vmem:[%s3032_s10 + $0x268] sm:$0xff]  ;;  %v794_v35 = vld [vmem:[%s3032_s10 + $0x270] sm:$0xff] }
  0x6a   : > { %v731_v36 = vld [vmem:[%s3032_s10 + $0x78] sm:$0xff]  ;;  %v732_v38 = vld [vmem:[%s3032_s10 + $0x80] sm:$0xff]  ;;  %v733_v40 = vld [vmem:[%s3032_s10 + $0x88] sm:$0xff] }
  0x6b   : > { %v795_v37 = vld [vmem:[%s3032_s10 + $0x278] sm:$0xff]  ;;  %v796_v39 = vld [vmem:[%s3032_s10 + $0x280] sm:$0xff]  ;;  %v797_v41 = vld [vmem:[%s3032_s10 + $0x288] sm:$0xff] }
  0x6c   : > { %2455 = vmatmul.mubr.msk.f32.gmra.mrb[2].mxu0 %vm855_vm0, %v719_v12  ;;  %2551 = vmatmul.mubr.msk.f32.gmra.mrb[2].mxu1 %vm855_vm0, %v783_v13  ;;  %v734_v42 = vld [vmem:[%s3032_s10 + $0x90] sm:$0xff]  ;;  %v735_v44 = vld [vmem:[%s3032_s10 + $0x98] sm:$0xff]  ;;  %v736_v46 = vld [vmem:[%s3032_s10 + $0xa0] sm:$0xff] }
  0x6d   : > { %2457 = vmatprep.mubr.msk.f32.mxu0 %vm855_vm0, %v720_v14  ;;  %2553 = vmatprep.mubr.msk.f32.mxu1 %vm855_vm0, %v784_v15  ;;  %v798_v43 = vld [vmem:[%s3032_s10 + $0x290] sm:$0xff]  ;;  %v799_v45 = vld [vmem:[%s3032_s10 + $0x298] sm:$0xff]  ;;  %v800_v47 = vld [vmem:[%s3032_s10 + $0x2a0] sm:$0xff] }
  0x6e   : > { %v737_v48 = vld [vmem:[%s3032_s10 + $0xa8] sm:$0xff]  ;;  %v738_v50 = vld [vmem:[%s3032_s10 + $0xb0] sm:$0xff]  ;;  %v739_v52 = vld [vmem:[%s3032_s10 + $0xb8] sm:$0xff] }
  0x6f   : > { %v801_v49 = vld [vmem:[%s3032_s10 + $0x2a8] sm:$0xff]  ;;  %v802_v51 = vld [vmem:[%s3032_s10 + $0x2b0] sm:$0xff]  ;;  %v803_v53 = vld [vmem:[%s3032_s10 + $0x2b8] sm:$0xff] }
  0x70   : > { %2458 = vmatmul.mubr.msk.f32.gmra.mrb[4].mxu0 %vm855_vm0, %v721_v16  ;;  %2554 = vmatmul.mubr.msk.f32.gmra.mrb[4].mxu1 %vm855_vm0, %v785_v17  ;;  %v740_v54 = vld [vmem:[%s3032_s10 + $0xc0] sm:$0xff]  ;;  %v741_v56 = vld [vmem:[%s3032_s10 + $0xc8] sm:$0xff]  ;;  %v742_v58 = vld [vmem:[%s3032_s10 + $0xd0] sm:$0xff] }
  0x71   : > { %2460 = vmatprep.mubr.msk.f32.mxu0 %vm855_vm0, %v722_v18  ;;  %2556 = vmatprep.mubr.msk.f32.mxu1 %vm855_vm0, %v786_v19  ;;  %v804_v55 = vld [vmem:[%s3032_s10 + $0x2c0] sm:$0xff]  ;;  %v805_v57 = vld [vmem:[%s3032_s10 + $0x2c8] sm:$0xff]  ;;  %v806_v59 = vld [vmem:[%s3032_s10 + $0x2d0] sm:$0xff] }
  0x72   : > { %v743_v60 = vld [vmem:[%s3032_s10 + $0xd8] sm:$0xff]  ;;  %v744_v62 = vld [vmem:[%s3032_s10 + $0xe0] sm:$0xff]  ;;  %v745_v0 = vld [vmem:[%s3032_s10 + $0xe8] sm:$0xff] }
  0x73   : > { %v807_v61 = vld [vmem:[%s3032_s10 + $0x2d8] sm:$0xff]  ;;  %v808_v63 = vld [vmem:[%s3032_s10 + $0x2e0] sm:$0xff]  ;;  %v809_v1 = vld [vmem:[%s3032_s10 + $0x2e8] sm:$0xff] }
  0x74   : > { %2461 = vmatmul.mubr.msk.f32.gmra.mrb[6].mxu0 %vm855_vm0, %v723_v20  ;;  %2557 = vmatmul.mubr.msk.f32.gmra.mrb[6].mxu1 %vm855_vm0, %v787_v21  ;;  %v746_v2 = vld [vmem:[%s3032_s10 + $0xf0] sm:$0xff]  ;;  %v747_v4 = vld [vmem:[%s3032_s10 + $0xf8] sm:$0xff]  ;;  %v748_v6 = vld [vmem:[%s3032_s10 + $0x100] sm:$0xff] }
  0x75   : > { %2463 = vmatprep.mubr.msk.f32.mxu0 %vm855_vm0, %v724_v22  ;;  %2559 = vmatprep.mubr.msk.f32.mxu1 %vm855_vm0, %v788_v23  ;;  %v810_v3 = vld [vmem:[%s3032_s10 + $0x2f0] sm:$0xff]  ;;  %v811_v5 = vld [vmem:[%s3032_s10 + $0x2f8] sm:$0xff]  ;;  %v812_v7 = vld [vmem:[%s3032_s10 + $0x300] sm:$0xff] }
  0x76   : > { %v749_v8 = vld [vmem:[%s3032_s10 + $0x108] sm:$0xff]  ;;  %v750_v10 = vld [vmem:[%s3032_s10 + $0x110] sm:$0xff]  ;;  %v751_v12 = vld [vmem:[%s3032_s10 + $0x118] sm:$0xff] }
  0x77   : > { %v813_v9 = vld [vmem:[%s3032_s10 + $0x308] sm:$0xff]  ;;  %v814_v11 = vld [vmem:[%s3032_s10 + $0x310] sm:$0xff]  ;;  %v815_v13 = vld [vmem:[%s3032_s10 + $0x318] sm:$0xff] }
  0x78   : > { %2464 = vmatmul.mubr.msk.f32.gmra.mrb[8].mxu0 %vm855_vm0, %v725_v24  ;;  %2560 = vmatmul.mubr.msk.f32.gmra.mrb[8].mxu1 %vm855_vm0, %v789_v25  ;;  %v752_v14 = vld [vmem:[%s3032_s10 + $0x120] sm:$0xff]  ;;  %v753_v16 = vld [vmem:[%s3032_s10 + $0x128] sm:$0xff]  ;;  %v754_v18 = vld [vmem:[%s3032_s10 + $0x130] sm:$0xff] }
  0x79   : > { %2466 = vmatprep.mubr.msk.f32.mxu0 %vm855_vm0, %v726_v26  ;;  %2562 = vmatprep.mubr.msk.f32.mxu1 %vm855_vm0, %v790_v27  ;;  %v816_v15 = vld [vmem:[%s3032_s10 + $0x320] sm:$0xff]  ;;  %v817_v17 = vld [vmem:[%s3032_s10 + $0x328] sm:$0xff]  ;;  %v818_v19 = vld [vmem:[%s3032_s10 + $0x330] sm:$0xff] }
  0x7a   : > { %v755_v20 = vld [vmem:[%s3032_s10 + $0x138] sm:$0xff]  ;;  %v756_v22 = vld [vmem:[%s3032_s10 + $0x140] sm:$0xff]  ;;  %v757_v24 = vld [vmem:[%s3032_s10 + $0x148] sm:$0xff] }
  0x7b   : > { %v819_v21 = vld [vmem:[%s3032_s10 + $0x338] sm:$0xff]  ;;  %v820_v23 = vld [vmem:[%s3032_s10 + $0x340] sm:$0xff]  ;;  %v821_v25 = vld [vmem:[%s3032_s10 + $0x348] sm:$0xff] }
  0x7c   : > { %2467 = vmatmul.mubr.msk.f32.gmra.mrb[10].mxu0 %vm855_vm0, %v727_v28  ;;  %2563 = vmatmul.mubr.msk.f32.gmra.mrb[10].mxu1 %vm855_vm0, %v791_v29  ;;  %v758_v26 = vld [vmem:[%s3032_s10 + $0x150] sm:$0xff]  ;;  %v759_v28 = vld [vmem:[%s3032_s10 + $0x158] sm:$0xff] }
  0x7d   : > { %2469 = vmatprep.mubr.msk.f32.mxu0 %vm855_vm0, %v728_v30  ;;  %2565 = vmatprep.mubr.msk.f32.mxu1 %vm855_vm0, %v792_v31  ;;  %v822_v27 = vld [vmem:[%s3032_s10 + $0x350] sm:$0xff]  ;;  %v823_v29 = vld [vmem:[%s3032_s10 + $0x358] sm:$0xff]  ;;  %v760_v30 = vld [vmem:[%s3032_s10 + $0x160] sm:$0xff] }
  0x7e   : > { %v824_v31 = vld [vmem:[%s3032_s10 + $0x360] sm:$0xff] }
  0x80   : > { %2470 = vmatmul.mubr.msk.f32.gmra.mrb[12].mxu0 %vm855_vm0, %v729_v32  ;;  %2566 = vmatmul.mubr.msk.f32.gmra.mrb[12].mxu1 %vm855_vm0, %v793_v33  ;;  %v761_v32 = vld [vmem:[%s3032_s10 + $0x168] sm:$0xff] }
  0x81   : > { %2472 = vmatprep.mubr.msk.f32.mxu0 %vm855_vm0, %v730_v34  ;;  %2568 = vmatprep.mubr.msk.f32.mxu1 %vm855_vm0, %v794_v35  ;;  %v825_v33 = vld [vmem:[%s3032_s10 + $0x368] sm:$0xff]  ;;  %v762_v34 = vld [vmem:[%s3032_s10 + $0x170] sm:$0xff] }
  0x82   : > { %v826_v35 = vld [vmem:[%s3032_s10 + $0x370] sm:$0xff] }
  0x84   : > { %2473 = vmatmul.mubr.msk.f32.gmra.mrb[14].mxu0 %vm855_vm0, %v731_v36  ;;  %2569 = vmatmul.mubr.msk.f32.gmra.mrb[14].mxu1 %vm855_vm0, %v795_v37  ;;  %v763_v36 = vld [vmem:[%s3032_s10 + $0x178] sm:$0xff] }
  0x85   : > { %2475 = vmatprep.mubr.msk.f32.mxu0 %vm855_vm0, %v732_v38  ;;  %2571 = vmatprep.mubr.msk.f32.mxu1 %vm855_vm0, %v796_v39  ;;  %v827_v37 = vld [vmem:[%s3032_s10 + $0x378] sm:$0xff]  ;;  %v764_v38 = vld [vmem:[%s3032_s10 + $0x180] sm:$0xff] }
  0x86   : > { %v828_v39 = vld [vmem:[%s3032_s10 + $0x380] sm:$0xff] }
  0x88   : > { %2476 = vmatmul.mubr.msk.f32.gmra.mrb[16].mxu0 %vm855_vm0, %v733_v40  ;;  %2572 = vmatmul.mubr.msk.f32.gmra.mrb[16].mxu1 %vm855_vm0, %v797_v41  ;;  %v765_v40 = vld [vmem:[%s3032_s10 + $0x188] sm:$0xff] }
  0x89   : > { %2478 = vmatprep.mubr.msk.f32.mxu0 %vm855_vm0, %v734_v42  ;;  %2574 = vmatprep.mubr.msk.f32.mxu1 %vm855_vm0, %v798_v43  ;;  %v829_v41 = vld [vmem:[%s3032_s10 + $0x388] sm:$0xff]  ;;  %v766_v42 = vld [vmem:[%s3032_s10 + $0x190] sm:$0xff] }
  0x8a   : > { %v830_v43 = vld [vmem:[%s3032_s10 + $0x390] sm:$0xff] }
  0x8c   : > { %2479 = vmatmul.mubr.msk.f32.gmra.mrb[18].mxu0 %vm855_vm0, %v735_v44  ;;  %2575 = vmatmul.mubr.msk.f32.gmra.mrb[18].mxu1 %vm855_vm0, %v799_v45  ;;  %v767_v44 = vld [vmem:[%s3032_s10 + $0x198] sm:$0xff] }
  0x8d   : > { %2481 = vmatprep.mubr.msk.f32.mxu0 %vm855_vm0, %v736_v46  ;;  %2577 = vmatprep.mubr.msk.f32.mxu1 %vm855_vm0, %v800_v47  ;;  %v831_v45 = vld [vmem:[%s3032_s10 + $0x398] sm:$0xff]  ;;  %v768_v46 = vld [vmem:[%s3032_s10 + $0x1a0] sm:$0xff] }
  0x8e   : > { %v832_v47 = vld [vmem:[%s3032_s10 + $0x3a0] sm:$0xff] }
  0x90   : > { %2482 = vmatmul.mubr.msk.f32.gmra.mrb[20].mxu0 %vm855_vm0, %v737_v48  ;;  %2578 = vmatmul.mubr.msk.f32.gmra.mrb[20].mxu1 %vm855_vm0, %v801_v49  ;;  %v769_v48 = vld [vmem:[%s3032_s10 + $0x1a8] sm:$0xff] }
  0x91   : > { %2484 = vmatprep.mubr.msk.f32.mxu0 %vm855_vm0, %v738_v50  ;;  %2580 = vmatprep.mubr.msk.f32.mxu1 %vm855_vm0, %v802_v51  ;;  %v833_v49 = vld [vmem:[%s3032_s10 + $0x3a8] sm:$0xff]  ;;  %v770_v50 = vld [vmem:[%s3032_s10 + $0x1b0] sm:$0xff] }
  0x92   : > { %v834_v51 = vld [vmem:[%s3032_s10 + $0x3b0] sm:$0xff] }
  0x94   : > { %2485 = vmatmul.mubr.msk.f32.gmra.mrb[22].mxu0 %vm855_vm0, %v739_v52  ;;  %2581 = vmatmul.mubr.msk.f32.gmra.mrb[22].mxu1 %vm855_vm0, %v803_v53  ;;  %v771_v52 = vld [vmem:[%s3032_s10 + $0x1b8] sm:$0xff] }
  0x95   : > { %2487 = vmatprep.mubr.msk.f32.mxu0 %vm855_vm0, %v740_v54  ;;  %2583 = vmatprep.mubr.msk.f32.mxu1 %vm855_vm0, %v804_v55  ;;  %v835_v53 = vld [vmem:[%s3032_s10 + $0x3b8] sm:$0xff]  ;;  %v772_v54 = vld [vmem:[%s3032_s10 + $0x1c0] sm:$0xff] }
  0x96   : > { %v836_v55 = vld [vmem:[%s3032_s10 + $0x3c0] sm:$0xff] }
  0x98   : > { %2488 = vmatmul.mubr.msk.f32.gmra.mrb[24].mxu0 %vm855_vm0, %v741_v56  ;;  %2584 = vmatmul.mubr.msk.f32.gmra.mrb[24].mxu1 %vm855_vm0, %v805_v57  ;;  %v773_v56 = vld [vmem:[%s3032_s10 + $0x1c8] sm:$0xff] }
  0x99   : > { %2490 = vmatprep.mubr.msk.f32.mxu0 %vm855_vm0, %v742_v58  ;;  %2586 = vmatprep.mubr.msk.f32.mxu1 %vm855_vm0, %v806_v59  ;;  %v837_v57 = vld [vmem:[%s3032_s10 + $0x3c8] sm:$0xff]  ;;  %v774_v58 = vld [vmem:[%s3032_s10 + $0x1d0] sm:$0xff] }
  0x9a   : > { %v838_v59 = vld [vmem:[%s3032_s10 + $0x3d0] sm:$0xff] }
  0x9c   : > { %2491 = vmatmul.mubr.msk.f32.gmra.mrb[26].mxu0 %vm855_vm0, %v743_v60  ;;  %2587 = vmatmul.mubr.msk.f32.gmra.mrb[26].mxu1 %vm855_vm0, %v807_v61  ;;  %v775_v60 = vld [vmem:[%s3032_s10 + $0x1d8] sm:$0xff] }
  0x9d   : > { %2493 = vmatprep.mubr.msk.f32.mxu0 %vm855_vm0, %v744_v62  ;;  %2589 = vmatprep.mubr.msk.f32.mxu1 %vm855_vm0, %v808_v63  ;;  %v839_v61 = vld [vmem:[%s3032_s10 + $0x3d8] sm:$0xff]  ;;  %v776_v62 = vld [vmem:[%s3032_s10 + $0x1e0] sm:$0xff] }
  0x9e   : > { %v840_v63 = vld [vmem:[%s3032_s10 + $0x3e0] sm:$0xff] }
  0xa0   : > { %2494 = vmatmul.mubr.msk.f32.gmra.mrb[28].mxu0 %vm855_vm0, %v745_v0  ;;  %2590 = vmatmul.mubr.msk.f32.gmra.mrb[28].mxu1 %vm855_vm0, %v809_v1  ;;  %v777_v0 = vld [vmem:[%s3032_s10 + $0x1e8] sm:$0xff] }
  0xa1   : > { %2496 = vmatprep.mubr.msk.f32.mxu0 %vm855_vm0, %v746_v2  ;;  %2592 = vmatprep.mubr.msk.f32.mxu1 %vm855_vm0, %v810_v3  ;;  %v841_v1 = vld [vmem:[%s3032_s10 + $0x3e8] sm:$0xff]  ;;  %v778_v2 = vld [vmem:[%s3032_s10 + $0x1f0] sm:$0xff] }
  0xa2   : > { %v842_v3 = vld [vmem:[%s3032_s10 + $0x3f0] sm:$0xff] }
  0xa4   : > { %2497 = vmatmul.mubr.msk.f32.gmra.mrb[30].mxu0 %vm855_vm0, %v747_v4  ;;  %2593 = vmatmul.mubr.msk.f32.gmra.mrb[30].mxu1 %vm855_vm0, %v811_v5  ;;  %v779_v4 = vld [vmem:[%s3032_s10 + $0x1f8] sm:$0xff] }
  0xa5   : > { %2499 = vmatprep.mubr.msk.f32.mxu0 %vm855_vm0, %v748_v6  ;;  %2595 = vmatprep.mubr.msk.f32.mxu1 %vm855_vm0, %v812_v7  ;;  %v843_v5 = vld [vmem:[%s3032_s10 + $0x3f8] sm:$0xff] }
  0xa8   : > { %2500 = vmatmul.mubr.msk.f32.gmra.mrb[32].mxu0 %vm855_vm0, %v749_v8  ;;  %2596 = vmatmul.mubr.msk.f32.gmra.mrb[32].mxu1 %vm855_vm0, %v813_v9 }
  0xa9   : > { %2502 = vmatprep.mubr.msk.f32.mxu0 %vm855_vm0, %v750_v10  ;;  %2598 = vmatprep.mubr.msk.f32.mxu1 %vm855_vm0, %v814_v11 }
  0xac   : > { %2503 = vmatmul.mubr.msk.f32.gmra.mrb[34].mxu0 %vm855_vm0, %v751_v12  ;;  %2599 = vmatmul.mubr.msk.f32.gmra.mrb[34].mxu1 %vm855_vm0, %v815_v13 }
  0xad   : > { %2505 = vmatprep.mubr.msk.f32.mxu0 %vm855_vm0, %v752_v14  ;;  %2601 = vmatprep.mubr.msk.f32.mxu1 %vm855_vm0, %v816_v15 }
  0xb0   : > { %2506 = vmatmul.mubr.msk.f32.gmra.mrb[36].mxu0 %vm855_vm0, %v753_v16  ;;  %2602 = vmatmul.mubr.msk.f32.gmra.mrb[36].mxu1 %vm855_vm0, %v817_v17 }
  0xb1   : > { %2508 = vmatprep.mubr.msk.f32.mxu0 %vm855_vm0, %v754_v18  ;;  %2604 = vmatprep.mubr.msk.f32.mxu1 %vm855_vm0, %v818_v19 }
  0xb4   : > { %2509 = vmatmul.mubr.msk.f32.gmra.mrb[38].mxu0 %vm855_vm0, %v755_v20  ;;  %2605 = vmatmul.mubr.msk.f32.gmra.mrb[38].mxu1 %vm855_vm0, %v819_v21 }
  0xb5   : > { %2511 = vmatprep.mubr.msk.f32.mxu0 %vm855_vm0, %v756_v22  ;;  %2607 = vmatprep.mubr.msk.f32.mxu1 %vm855_vm0, %v820_v23 }
  0xb8   : > { %2512 = vmatmul.mubr.msk.f32.gmra.mrb[40].mxu0 %vm855_vm0, %v757_v24  ;;  %2608 = vmatmul.mubr.msk.f32.gmra.mrb[40].mxu1 %vm855_vm0, %v821_v25 }
  0xb9   : > { %2514 = vmatprep.mubr.msk.f32.mxu0 %vm855_vm0, %v758_v26  ;;  %2610 = vmatprep.mubr.msk.f32.mxu1 %vm855_vm0, %v822_v27 }
  0xbc   : > { %2515 = vmatmul.mubr.msk.f32.gmra.mrb[42].mxu0 %vm855_vm0, %v759_v28  ;;  %2611 = vmatmul.mubr.msk.f32.gmra.mrb[42].mxu1 %vm855_vm0, %v823_v29 }
  0xbd   : > { %2517 = vmatprep.mubr.msk.f32.mxu0 %vm855_vm0, %v760_v30  ;;  %2613 = vmatprep.mubr.msk.f32.mxu1 %vm855_vm0, %v824_v31 }
  0xc0   : > { %2518 = vmatmul.mubr.msk.f32.gmra.mrb[44].mxu0 %vm855_vm0, %v761_v32  ;;  %2614 = vmatmul.mubr.msk.f32.gmra.mrb[44].mxu1 %vm855_vm0, %v825_v33 }
  0xc1   : > { %2520 = vmatprep.mubr.msk.f32.mxu0 %vm855_vm0, %v762_v34  ;;  %2616 = vmatprep.mubr.msk.f32.mxu1 %vm855_vm0, %v826_v35 }
  0xc4   : > { %2521 = vmatmul.mubr.msk.f32.gmra.mrb[46].mxu0 %vm855_vm0, %v763_v36  ;;  %2617 = vmatmul.mubr.msk.f32.gmra.mrb[46].mxu1 %vm855_vm0, %v827_v37 }
  0xc5   : > { %2523 = vmatprep.mubr.msk.f32.mxu0 %vm855_vm0, %v764_v38  ;;  %2619 = vmatprep.mubr.msk.f32.mxu1 %vm855_vm0, %v828_v39 }
  0xc8   : > { %2524 = vmatmul.mubr.msk.f32.gmra.mrb[48].mxu0 %vm855_vm0, %v765_v40  ;;  %2620 = vmatmul.mubr.msk.f32.gmra.mrb[48].mxu1 %vm855_vm0, %v829_v41 }
  0xc9   : > { %2526 = vmatprep.mubr.msk.f32.mxu0 %vm855_vm0, %v766_v42  ;;  %2622 = vmatprep.mubr.msk.f32.mxu1 %vm855_vm0, %v830_v43 }
  0xcc   : > { %2527 = vmatmul.mubr.msk.f32.gmra.mrb[50].mxu0 %vm855_vm0, %v767_v44  ;;  %2623 = vmatmul.mubr.msk.f32.gmra.mrb[50].mxu1 %vm855_vm0, %v831_v45 }
  0xcd   : > { %2529 = vmatprep.mubr.msk.f32.mxu0 %vm855_vm0, %v768_v46  ;;  %2625 = vmatprep.mubr.msk.f32.mxu1 %vm855_vm0, %v832_v47 }
  0xd0   : > { %2530 = vmatmul.mubr.msk.f32.gmra.mrb[52].mxu0 %vm855_vm0, %v769_v48  ;;  %2626 = vmatmul.mubr.msk.f32.gmra.mrb[52].mxu1 %vm855_vm0, %v833_v49 }
  0xd1   : > { %2532 = vmatprep.mubr.msk.f32.mxu0 %vm855_vm0, %v770_v50  ;;  %2628 = vmatprep.mubr.msk.f32.mxu1 %vm855_vm0, %v834_v51 }
  0xd4   : > { %2533 = vmatmul.mubr.msk.f32.gmra.mrb[54].mxu0 %vm855_vm0, %v771_v52  ;;  %2629 = vmatmul.mubr.msk.f32.gmra.mrb[54].mxu1 %vm855_vm0, %v835_v53 }
  0xd5   : > { %2535 = vmatprep.mubr.msk.f32.mxu0 %vm855_vm0, %v772_v54  ;;  %2631 = vmatprep.mubr.msk.f32.mxu1 %vm855_vm0, %v836_v55 }
  0xd8   : > { %2536 = vmatmul.mubr.msk.f32.gmra.mrb[56].mxu0 %vm855_vm0, %v773_v56  ;;  %2632 = vmatmul.mubr.msk.f32.gmra.mrb[56].mxu1 %vm855_vm0, %v837_v57 }
  0xd9   : > { %2538 = vmatprep.mubr.msk.f32.mxu0 %vm855_vm0, %v774_v58  ;;  %2634 = vmatprep.mubr.msk.f32.mxu1 %vm855_vm0, %v838_v59 }
  0xdc   : > { %2539 = vmatmul.mubr.msk.f32.gmra.mrb[58].mxu0 %vm855_vm0, %v775_v60  ;;  %2635 = vmatmul.mubr.msk.f32.gmra.mrb[58].mxu1 %vm855_vm0, %v839_v61 }
  0xdd   : > { %2541 = vmatprep.mubr.msk.f32.mxu0 %vm855_vm0, %v776_v62  ;;  %2637 = vmatprep.mubr.msk.f32.mxu1 %vm855_vm0, %v840_v63 }
  0xe0   : > { %2542 = vmatmul.mubr.msk.f32.gmra.mrb[60].mxu0 %vm855_vm0, %v777_v0  ;;  %2638 = vmatmul.mubr.msk.f32.gmra.mrb[60].mxu1 %vm855_vm0, %v841_v1 }
  0xe1   : > { %2544 = vmatprep.mubr.msk.f32.mxu0 %vm855_vm0, %v778_v2  ;;  %2640 = vmatprep.mubr.msk.f32.mxu1 %vm855_vm0, %v842_v3 }
  0xe4   : > { %2545 = vmatmul.mubr.msk.f32.gmra.mrb[62].mxu0 %vm855_vm0, %v779_v4  ;;  %2641 = vmatmul.mubr.msk.f32.gmra.mrb[62].mxu1 %vm855_vm0, %v843_v5 }
 0x13b   : > { %v3290_v6 = vpop.f32.mrb[0].mxu0  ;;  %v3292_v7 = vpop.f32.mrb[0].mxu1 }
 0x13c   : > { %v3294_v8 = vpop.f32.mrb[1].mxu0  ;;  %v3296_v9 = vpop.f32.mrb[1].mxu1 }
 0x13f   : > { %v3298_v10 = vpop.f32.mrb[2].mxu0  ;;  %v3300_v11 = vpop.f32.mrb[2].mxu1 }
 0x140   : > { %v3302_v12 = vpop.f32.mrb[3].mxu0  ;;  %v3304_v13 = vpop.f32.mrb[3].mxu1 }
 0x143   : > { %v3306_v14 = vpop.f32.mrb[4].mxu0  ;;  %v3308_v15 = vpop.f32.mrb[4].mxu1 }
 0x144   : > { %v3310_v16 = vpop.f32.mrb[5].mxu0  ;;  %v3312_v17 = vpop.f32.mrb[5].mxu1 }
 0x147   : > { %v3314_v18 = vpop.f32.mrb[6].mxu0  ;;  %v3316_v19 = vpop.f32.mrb[6].mxu1 }
 0x148   : > { %v3318_v20 = vpop.f32.mrb[7].mxu0  ;;  %v3320_v21 = vpop.f32.mrb[7].mxu1 }
 0x14b   : > { %v3322_v22 = vpop.f32.mrb[8].mxu0  ;;  %v3324_v23 = vpop.f32.mrb[8].mxu1 }
 0x14c   : > { %v3326_v24 = vpop.f32.mrb[9].mxu0  ;;  %v3328_v25 = vpop.f32.mrb[9].mxu1 }
 0x14f   : > { %v3330_v26 = vpop.f32.mrb[10].mxu0  ;;  %v3332_v27 = vpop.f32.mrb[10].mxu1 }
 0x150   : > { %v3334_v28 = vpop.f32.mrb[11].mxu0  ;;  %v3336_v29 = vpop.f32.mrb[11].mxu1 }
 0x153   : > { %v3338_v30 = vpop.f32.mrb[12].mxu0  ;;  %v3340_v31 = vpop.f32.mrb[12].mxu1 }
 0x154   : > { %v3342_v32 = vpop.f32.mrb[13].mxu0  ;;  %v3344_v33 = vpop.f32.mrb[13].mxu1 }
 0x157   : > { %v3346_v34 = vpop.f32.mrb[14].mxu0  ;;  %v3348_v35 = vpop.f32.mrb[14].mxu1 }
 0x158   : > { %v3350_v36 = vpop.f32.mrb[15].mxu0  ;;  %v3352_v37 = vpop.f32.mrb[15].mxu1 }
 0x15b   : > { %v3354_v38 = vpop.f32.mrb[16].mxu0  ;;  %v3356_v39 = vpop.f32.mrb[16].mxu1 }
 0x15c   : > { %v3358_v40 = vpop.f32.mrb[17].mxu0  ;;  %v3360_v41 = vpop.f32.mrb[17].mxu1 }
 0x15f   : > { %v3362_v42 = vpop.f32.mrb[18].mxu0  ;;  %v3364_v43 = vpop.f32.mrb[18].mxu1 }
 0x160   : > { %v3366_v44 = vpop.f32.mrb[19].mxu0  ;;  %v3368_v45 = vpop.f32.mrb[19].mxu1 }
 0x163   : > { %v3370_v46 = vpop.f32.mrb[20].mxu0  ;;  %v3372_v47 = vpop.f32.mrb[20].mxu1 }
 0x164   : > { %v3374_v48 = vpop.f32.mrb[21].mxu0  ;;  %v3376_v49 = vpop.f32.mrb[21].mxu1 }
 0x167   : > { %v3378_v50 = vpop.f32.mrb[22].mxu0  ;;  %v3380_v51 = vpop.f32.mrb[22].mxu1 }
 0x168   : > { %v3382_v52 = vpop.f32.mrb[23].mxu0  ;;  %v3384_v53 = vpop.f32.mrb[23].mxu1 }
 0x169   : > { %3703 = vst [vmem:[#allocation3_spill] sm:$0xff] %v3384_v53 }
 0x16b   : > { %v3386_v54 = vpop.f32.mrb[24].mxu0  ;;  %v3388_v55 = vpop.f32.mrb[24].mxu1 }
 0x16c   : > { %3704 = vst [vmem:[#allocation4_spill] sm:$0xff] %v3386_v54  ;;  %3705 = vst [vmem:[#allocation5_spill] sm:$0xff] %v3388_v55  ;;  %v3390_v56 = vpop.f32.mrb[25].mxu0  ;;  %v3392_v57 = vpop.f32.mrb[25].mxu1 }
 0x16d   : > { %3706 = vst [vmem:[#allocation6_spill] sm:$0xff] %v3390_v56  ;;  %3707 = vst [vmem:[#allocation7_spill] sm:$0xff] %v3392_v57 }
 0x16f   : > { %v3394_v58 = vpop.f32.mrb[26].mxu0  ;;  %v3396_v59 = vpop.f32.mrb[26].mxu1 }
 0x170   : > { %3708 = vst [vmem:[#allocation8_spill] sm:$0xff] %v3394_v58  ;;  %3709 = vst [vmem:[#allocation9_spill] sm:$0xff] %v3396_v59  ;;  %v3398_v60 = vpop.f32.mrb[27].mxu0  ;;  %v3400_v61 = vpop.f32.mrb[27].mxu1 }
 0x171   : > { %3710 = vst [vmem:[#allocation10_spill] sm:$0xff] %v3398_v60  ;;  %3711 = vst [vmem:[#allocation11_spill] sm:$0xff] %v3400_v61 }
 0x173   : > { %v3402_v62 = vpop.f32.mrb[28].mxu0  ;;  %v3404_v63 = vpop.f32.mrb[28].mxu1 }
 0x174   : > { %3712 = vst [vmem:[#allocation12_spill] sm:$0xff] %v3402_v62  ;;  %3713 = vst [vmem:[#allocation13_spill] sm:$0xff] %v3404_v63  ;;  %v3408_v0 = vpop.f32.mrb[29].mxu0  ;;  %v3410_v1 = vpop.f32.mrb[29].mxu1  ;;  %v3423_v62 = vld [vmem:[%s3701_s2] ss:$0 sm:$0xff] }
 0x175   : > { %3714 = vst [vmem:[#allocation14_spill] sm:$0xff] %v3408_v0  ;;  %3715 = vst [vmem:[#allocation15_spill] sm:$0xff] %v3410_v1  ;;  %v1312_v1 = vadd.f32 %v3290_v6, %v3423_v62  ;;  %v1307_v60 = vadd.f32 %v3423_v62, %v3294_v8  ;;  %v1627_v59 = vadd.f32 %v3423_v62, %v3296_v9 }
 0x176   : > { %v1317_v9 = vadd.f32 %v3423_v62, %v3302_v12 }
 0x177   : > { %v3412_v2 = vpop.f32.mrb[30].mxu0  ;;  %v3414_v3 = vpop.f32.mrb[30].mxu1 }
 0x178   : > { %3716 = vst [vmem:[#allocation16_spill] sm:$0xff] %v3412_v2  ;;  %3717 = vst [vmem:[#allocation17_spill] sm:$0xff] %v3414_v3  ;;  %v3416_v4 = vpop.f32.mrb[31].mxu0  ;;  %v3418_v5 = vpop.f32.mrb[31].mxu1  ;;  %v1632_v3 = vadd.f32 %v3292_v7, %v3423_v62  ;;  %v1322_v7 = vadd.f32 %v3298_v10, %v3423_v62  ;;  %v1637_v10 = vadd.f32 %v3423_v62, %v3304_v13 }
 0x179   : > { %3718 = vst [vmem:[#allocation18_spill] sm:$0xff] %v3416_v4  ;;  %3719 = vst [vmem:[#allocation19_spill] sm:$0xff] %v3418_v5  ;;  %v1652_v13 = vadd.f32 %v3308_v15, %v3423_v62  ;;  %v1647_v15 = vadd.f32 %v3423_v62, %v3312_v17 }
 0x17b   : > { %v2501_v0 = vpop.f32.mrb[32].mxu0  ;;  %v2597_v63 = vpop.f32.mrb[32].mxu1 }
 0x17c   : > { %v1472_v4 = vadd.f32 %v2501_v0, %v3423_v62  ;;  %v1792_v5 = vadd.f32 %v2597_v63, %v3423_v62  ;;  %v1466_v2 = vpop.f32.mrb[33].mxu0  ;;  %v1786_v61 = vpop.f32.mrb[33].mxu1  ;;  %v1642_v63 = vadd.f32 %v3300_v11, %v3423_v62 }
 0x17d   : > { %v1467_v58 = vadd.f32 %v3423_v62, %v1466_v2  ;;  %v1787_v57 = vadd.f32 %v3423_v62, %v1786_v61 }
 0x17e   : > { %v1946_v6 = vmax.f32 %v1312_v1, %v1472_v4  ;;  %v1978_v56 = vmax.f32 %v1632_v3, %v1792_v5 }
 0x17f   : > { %v1945_v0 = vmax.f32 %v1307_v60, %v1467_v58  ;;  %v1977_v55 = vmax.f32 %v1627_v59, %v1787_v57  ;;  %v2504_v8 = vpop.f32.mrb[34].mxu0  ;;  %v2600_v54 = vpop.f32.mrb[34].mxu1 }
 0x180   : > { %v2010_v2 = vmax.f32 %v1946_v6, %v1978_v56  ;;  %v1482_v61 = vadd.f32 %v2504_v8, %v3423_v62  ;;  %v1802_v1 = vadd.f32 %v2600_v54, %v3423_v62  ;;  %v1476_v3 = vpop.f32.mrb[35].mxu0  ;;  %v1796_v4 = vpop.f32.mrb[35].mxu1  ;;  %v1332_v56 = vadd.f32 %v3306_v14, %v3423_v62 }
 0x181   : > { %v2009_v11 = vmax.f32 %v1945_v0, %v1977_v55  ;;  %v1477_v57 = vadd.f32 %v3423_v62, %v1476_v3  ;;  %v1797_v12 = vadd.f32 %v3423_v62, %v1796_v4  ;;  %v1327_v55 = vadd.f32 %v3423_v62, %v3310_v16 }
 0x182   : > { %v2042_v54 = vmax.f32 %v2010_v2, 0.0  ;;  %v1948_v58 = vmax.f32 %v1322_v7, %v1482_v61  ;;  %v1980_v59 = vmax.f32 %v1642_v63, %v1802_v1  ;;  %v1342_v1 = vadd.f32 %v3314_v18, %v3423_v62 }
 0x183   : > { %v2041_v60 = vmax.f32 %v2009_v11, 0.0  ;;  %v1947_v5 = vmax.f32 %v1317_v9, %v1477_v57  ;;  %v1979_v6 = vmax.f32 %v1637_v10, %v1797_v12  ;;  %v2507_v8 = vpop.f32.mrb[36].mxu0  ;;  %v2603_v53 = vpop.f32.mrb[36].mxu1  ;;  %v1662_v10 = vadd.f32 %v3316_v19, %v3423_v62 }
 0x184   : > { %2075 = vst.msk [vmem:[%s3453_s20 + $0x8] sm:$0xff] %vm2073_vm1, %v2042_v54  ;;  %v2012_v0 = vmax.f32 %v1948_v58, %v1980_v59  ;;  %v1492_v14 = vadd.f32 %v2507_v8, %v3423_v62  ;;  %v1812_v7 = vadd.f32 %v2603_v53, %v3423_v62  ;;  %v1486_v2 = vpop.f32.mrb[37].mxu0  ;;  %v1806_v63 = vpop.f32.mrb[37].mxu1  ;;  %v1337_v58 = vadd.f32 %v3423_v62, %v3318_v20 }
 0x185   : > { %2074 = vst.msk [vmem:[%s3453_s20] sm:$0xff] %vm2073_vm1, %v2041_v60  ;;  %v2011_v9 = vmax.f32 %v1947_v5, %v1979_v6  ;;  %v1487_v61 = vadd.f32 %v3423_v62, %v1486_v2  ;;  %v1807_v16 = vadd.f32 %v3423_v62, %v1806_v63  ;;  %v1657_v19 = vadd.f32 %v3423_v62, %v3320_v21 }
 0x186   : > { %v2044_v3 = vmax.f32 %v2012_v0, 0.0  ;;  %v1950_v4 = vmax.f32 %v1332_v56, %v1492_v14  ;;  %v1982_v53 = vmax.f32 %v1652_v13, %v1812_v7  ;;  %v1352_v8 = vadd.f32 %v3322_v22, %v3423_v62 }
 0x187   : > { %v2043_v11 = vmax.f32 %v2011_v9, 0.0  ;;  %v1949_v17 = vmax.f32 %v1327_v55, %v1487_v61  ;;  %v1981_v57 = vmax.f32 %v1647_v15, %v1807_v16  ;;  %v2510_v12 = vpop.f32.mrb[38].mxu0  ;;  %v2606_v54 = vpop.f32.mrb[38].mxu1  ;;  %v1672_v7 = vadd.f32 %v3324_v23, %v3423_v62 }
 0x188   : > { %2077 = vst.msk [vmem:[%s3453_s20 + $0x18] sm:$0xff] %vm2073_vm1, %v2044_v3  ;;  %v2014_v59 = vmax.f32 %v1950_v4, %v1982_v53  ;;  %v1502_v18 = vadd.f32 %v2510_v12, %v3423_v62  ;;  %v1822_v56 = vadd.f32 %v2606_v54, %v3423_v62  ;;  %v1496_v60 = vpop.f32.mrb[39].mxu0  ;;  %v1816_v13 = vpop.f32.mrb[39].mxu1  ;;  %v1347_v61 = vadd.f32 %v3423_v62, %v3326_v24 }
 0x189   : > { %2076 = vst.msk [vmem:[%s3453_s20 + $0x10] sm:$0xff] %vm2073_vm1, %v2043_v11  ;;  %v2013_v5 = vmax.f32 %v1949_v17, %v1981_v57  ;;  %v1497_v6 = vadd.f32 %v3423_v62, %v1496_v60  ;;  %v1817_v20 = vadd.f32 %v3423_v62, %v1816_v13  ;;  %v1667_v23 = vadd.f32 %v3423_v62, %v3328_v25 }
 0x18a   : > { %v2046_v55 = vmax.f32 %v2014_v59, 0.0  ;;  %v1952_v0 = vmax.f32 %v1342_v1, %v1502_v18  ;;  %v1984_v14 = vmax.f32 %v1662_v10, %v1822_v56  ;;  %v1362_v11 = vadd.f32 %v3330_v26, %v3423_v62 }
 0x18b   : > { %v2045_v2 = vmax.f32 %v2013_v5, 0.0  ;;  %v1951_v21 = vmax.f32 %v1337_v58, %v1497_v6  ;;  %v1983_v63 = vmax.f32 %v1657_v19, %v1817_v20  ;;  %v2513_v15 = vpop.f32.mrb[40].mxu0  ;;  %v2609_v9 = vpop.f32.mrb[40].mxu1  ;;  %v1682_v54 = vadd.f32 %v3332_v27, %v3423_v62 }
 0x18c   : > { %2079 = vst.msk [vmem:[%s3453_s20 + $0x28] sm:$0xff] %vm2073_vm1, %v2046_v55  ;;  %v2016_v16 = vmax.f32 %v1952_v0, %v1984_v14  ;;  %v1512_v22 = vadd.f32 %v2513_v15, %v3423_v62  ;;  %v1832_v1 = vadd.f32 %v2609_v9, %v3423_v62  ;;  %v1506_v3 = vpop.f32.mrb[41].mxu0  ;;  %v1826_v4 = vpop.f32.mrb[41].mxu1  ;;  %v1357_v60 = vadd.f32 %v3423_v62, %v3334_v28 }
 0x18d   : > { %2078 = vst.msk [vmem:[%s3453_s20 + $0x20] sm:$0xff] %vm2073_vm1, %v2045_v2  ;;  %v2015_v53 = vmax.f32 %v1951_v21, %v1983_v63  ;;  %v1507_v10 = vadd.f32 %v3423_v62, %v1506_v3  ;;  %v1827_v24 = vadd.f32 %v3423_v62, %v1826_v4  ;;  %v1677_v27 = vadd.f32 %v3423_v62, %v3336_v29 }
 0x18e   : > { %v2048_v17 = vmax.f32 %v2016_v16, 0.0  ;;  %v1954_v57 = vmax.f32 %v1352_v8, %v1512_v22  ;;  %v1986_v12 = vmax.f32 %v1672_v7, %v1832_v1  ;;  %v1372_v55 = vadd.f32 %v3338_v30, %v3423_v62 }
 0x18f   : > { %v2047_v58 = vmax.f32 %v2015_v53, 0.0  ;;  %v1953_v25 = vmax.f32 %v1347_v61, %v1507_v10  ;;  %v1985_v59 = vmax.f32 %v1667_v23, %v1827_v24  ;;  %v2516_v18 = vpop.f32.mrb[42].mxu0  ;;  %v2612_v56 = vpop.f32.mrb[42].mxu1  ;;  %v1692_v2 = vadd.f32 %v3340_v31, %v3423_v62 }
 0x190   : > { %2081 = vst.msk [vmem:[%s3453_s20 + $0x38] sm:$0xff] %vm2073_vm1, %v2048_v17  ;;  %v2018_v13 = vmax.f32 %v1954_v57, %v1986_v12  ;;  %v1522_v26 = vadd.f32 %v2516_v18, %v3423_v62  ;;  %v1842_v19 = vadd.f32 %v2612_v56, %v3423_v62  ;;  %v1516_v5 = vpop.f32.mrb[43].mxu0  ;;  %v1836_v6 = vpop.f32.mrb[43].mxu1  ;;  %v1367_v61 = vadd.f32 %v3423_v62, %v3342_v32 }
 0x191   : > { %2080 = vst.msk [vmem:[%s3453_s20 + $0x30] sm:$0xff] %vm2073_vm1, %v2047_v58  ;;  %v2017_v20 = vmax.f32 %v1953_v25, %v1985_v59  ;;  %v1517_v8 = vadd.f32 %v3423_v62, %v1516_v5  ;;  %v1837_v28 = vadd.f32 %v3423_v62, %v1836_v6  ;;  %v1687_v31 = vadd.f32 %v3423_v62, %v3344_v33 }
 0x192   : > { %v2050_v0 = vmax.f32 %v2018_v13, 0.0  ;;  %v1956_v14 = vmax.f32 %v1362_v11, %v1522_v26  ;;  %v1988_v7 = vmax.f32 %v1682_v54, %v1842_v19  ;;  %v1382_v53 = vadd.f32 %v3346_v34, %v3423_v62 }
 0x193   : > { %v2049_v21 = vmax.f32 %v2017_v20, 0.0  ;;  %v1955_v29 = vmax.f32 %v1357_v60, %v1517_v8  ;;  %v1987_v63 = vmax.f32 %v1677_v27, %v1837_v28  ;;  %v2519_v15 = vpop.f32.mrb[44].mxu0  ;;  %v2615_v9 = vpop.f32.mrb[44].mxu1  ;;  %v1702_v17 = vadd.f32 %v3348_v35, %v3423_v62 }
 0x194   : > { %2083 = vst.msk [vmem:[%s3453_s20 + $0x48] sm:$0xff] %vm2073_vm1, %v2050_v0  ;;  %v2020_v16 = vmax.f32 %v1956_v14, %v1988_v7  ;;  %v1532_v30 = vadd.f32 %v2519_v15, %v3423_v62  ;;  %v1852_v22 = vadd.f32 %v2615_v9, %v3423_v62  ;;  %v1526_v1 = vpop.f32.mrb[45].mxu0  ;;  %v1846_v3 = vpop.f32.mrb[45].mxu1  ;;  %v1377_v25 = vadd.f32 %v3423_v62, %v3350_v36 }
 0x195   : > { %2082 = vst.msk [vmem:[%s3453_s20 + $0x40] sm:$0xff] %vm2073_vm1, %v2049_v21  ;;  %v2019_v4 = vmax.f32 %v1955_v29, %v1987_v63  ;;  %v1527_v23 = vadd.f32 %v3423_v62, %v1526_v1  ;;  %v1847_v32 = vadd.f32 %v3423_v62, %v1846_v3  ;;  %v1697_v35 = vadd.f32 %v3423_v62, %v3352_v37 }
 0x196   : > { %v2052_v10 = vmax.f32 %v2020_v16, 0.0  ;;  %v1958_v24 = vmax.f32 %v1372_v55, %v1532_v30  ;;  %v1990_v11 = vmax.f32 %v1692_v2, %v1852_v22  ;;  %v1392_v19 = vadd.f32 %v3354_v38, %v3423_v62 }
 0x197   : > { %v2051_v57 = vmax.f32 %v2019_v4, 0.0  ;;  %v1957_v33 = vmax.f32 %v1367_v61, %v1527_v23  ;;  %v1989_v12 = vmax.f32 %v1687_v31, %v1847_v32  ;;  %v2522_v54 = vpop.f32.mrb[46].mxu0  ;;  %v2618_v58 = vpop.f32.mrb[46].mxu1  ;;  %v1712_v20 = vadd.f32 %v3356_v39, %v3423_v62 }
 0x198   : > { %2085 = vst.msk [vmem:[%s3453_s20 + $0x58] sm:$0xff] %vm2073_vm1, %v2052_v10  ;;  %v2022_v59 = vmax.f32 %v1958_v24, %v1990_v11  ;;  %v1542_v34 = vadd.f32 %v2522_v54, %v3423_v62  ;;  %v1862_v18 = vadd.f32 %v2618_v58, %v3423_v62  ;;  %v1536_v56 = vpop.f32.mrb[47].mxu0  ;;  %v1856_v60 = vpop.f32.mrb[47].mxu1  ;;  %v1387_v14 = vadd.f32 %v3423_v62, %v3358_v40 }
 0x199   : > { %2084 = vst.msk [vmem:[%s3453_s20 + $0x50] sm:$0xff] %vm2073_vm1, %v2051_v57  ;;  %v2021_v13 = vmax.f32 %v1957_v33, %v1989_v12  ;;  %v1537_v26 = vadd.f32 %v3423_v62, %v1536_v56  ;;  %v1857_v36 = vadd.f32 %v3423_v62, %v1856_v60  ;;  %v1707_v39 = vadd.f32 %v3423_v62, %v3360_v41 }
 0x19a   : > { %v2054_v5 = vmax.f32 %v2022_v59, 0.0  ;;  %v1960_v6 = vmax.f32 %v1382_v53, %v1542_v34  ;;  %v1992_v27 = vmax.f32 %v1702_v17, %v1862_v18  ;;  %v1402_v9 = vadd.f32 %v3362_v42, %v3423_v62 }
 0x19b   : > { %v2053_v8 = vmax.f32 %v2021_v13, 0.0  ;;  %v1959_v37 = vmax.f32 %v1377_v25, %v1537_v26  ;;  %v1991_v28 = vmax.f32 %v1697_v35, %v1857_v36  ;;  %v2525_v55 = vpop.f32.mrb[48].mxu0  ;;  %v2621_v0 = vpop.f32.mrb[48].mxu1  ;;  %v1722_v22 = vadd.f32 %v3364_v43, %v3423_v62 }
 0x19c   : > { %2087 = vst.msk [vmem:[%s3453_s20 + $0x68] sm:$0xff] %vm2073_vm1, %v2054_v5  ;;  %v2024_v7 = vmax.f32 %v1960_v6, %v1992_v27  ;;  %v1552_v38 = vadd.f32 %v2525_v55, %v3423_v62  ;;  %v1872_v2 = vadd.f32 %v2621_v0, %v3423_v62  ;;  %v1546_v21 = vpop.f32.mrb[49].mxu0  ;;  %v1866_v29 = vpop.f32.mrb[49].mxu1  ;;  %v1397_v23 = vadd.f32 %v3423_v62, %v3366_v44 }
 0x19d   : > { %2086 = vst.msk [vmem:[%s3453_s20 + $0x60] sm:$0xff] %vm2073_vm1, %v2053_v8  ;;  %v2023_v63 = vmax.f32 %v1959_v37, %v1991_v28  ;;  %v1547_v15 = vadd.f32 %v3423_v62, %v1546_v21  ;;  %v1867_v40 = vadd.f32 %v3423_v62, %v1866_v29  ;;  %v1717_v43 = vadd.f32 %v3423_v62, %v3368_v45  ;;  %v3720_v29 = vld [vmem:[#allocation3_spill] sm:$0xff] }
 0x19e   : > { %v2056_v61 = vmax.f32 %v2024_v7, 0.0  ;;  %v1962_v16 = vmax.f32 %v1392_v19, %v1552_v38  ;;  %v1994_v30 = vmax.f32 %v1712_v20, %v1872_v2  ;;  %v1412_v57 = vadd.f32 %v3370_v46, %v3423_v62 }
 0x19f   : > { %v2055_v1 = vmax.f32 %v2023_v63, 0.0  ;;  %v1961_v41 = vmax.f32 %v1387_v14, %v1547_v15  ;;  %v1993_v3 = vmax.f32 %v1707_v39, %v1867_v40  ;;  %v2528_v31 = vpop.f32.mrb[50].mxu0  ;;  %v2624_v4 = vpop.f32.mrb[50].mxu1  ;;  %v1732_v58 = vadd.f32 %v3372_v47, %v3423_v62  ;;  %v3721_v15 = vld [vmem:[#allocation4_spill] sm:$0xff] }
 0x1a0   : > { %2089 = vst.msk [vmem:[%s3453_s20 + $0x78] sm:$0xff] %vm2073_vm1, %v2056_v61  ;;  %v2026_v32 = vmax.f32 %v1962_v16, %v1994_v30  ;;  %v1562_v42 = vadd.f32 %v2528_v31, %v3423_v62  ;;  %v1882_v53 = vadd.f32 %v2624_v4, %v3423_v62  ;;  %v1556_v10 = vpop.f32.mrb[51].mxu0  ;;  %v1876_v24 = vpop.f32.mrb[51].mxu1  ;;  %v1407_v56 = vadd.f32 %v3423_v62, %v3374_v48  ;;  %v3722_v30 = vld [vmem:[#allocation5_spill] sm:$0xff] }
 0x1a1   : > { %2088 = vst.msk [vmem:[%s3453_s20 + $0x70] sm:$0xff] %vm2073_vm1, %v2055_v1  ;;  %v2025_v11 = vmax.f32 %v1961_v41, %v1993_v3  ;;  %v1557_v17 = vadd.f32 %v3423_v62, %v1556_v10  ;;  %v1877_v44 = vadd.f32 %v3423_v62, %v1876_v24  ;;  %v1727_v47 = vadd.f32 %v3423_v62, %v3376_v49 }
 0x1a2   : > { %v2058_v33 = vmax.f32 %v2026_v32, 0.0  ;;  %v1964_v12 = vmax.f32 %v1402_v9, %v1562_v42  ;;  %v1996_v54 = vmax.f32 %v1722_v22, %v1882_v53  ;;  %v1422_v5 = vadd.f32 %v3378_v50, %v3423_v62 }
 0x1a3   : > { %v2057_v25 = vmax.f32 %v2025_v11, 0.0  ;;  %v1963_v45 = vmax.f32 %v1397_v23, %v1557_v17  ;;  %v1995_v59 = vmax.f32 %v1717_v43, %v1877_v44  ;;  %v2531_v34 = vpop.f32.mrb[52].mxu0  ;;  %v2627_v18 = vpop.f32.mrb[52].mxu1  ;;  %v1742_v8 = vadd.f32 %v3380_v51, %v3423_v62  ;;  %v3723_v23 = vld [vmem:[#allocation6_spill] sm:$0xff]  ;;  %v3724_v11 = vld [vmem:[#allocation7_spill] sm:$0xff] }
 0x1a4   : > { %2091 = vst.msk [vmem:[%s3453_s20 + $0x88] sm:$0xff] %vm2073_vm1, %v2058_v33  ;;  %v2028_v60 = vmax.f32 %v1964_v12, %v1996_v54  ;;  %v1572_v46 = vadd.f32 %v2531_v34, %v3423_v62  ;;  %v1892_v35 = vadd.f32 %v2627_v18, %v3423_v62  ;;  %v1566_v13 = vpop.f32.mrb[53].mxu0  ;;  %v1886_v26 = vpop.f32.mrb[53].mxu1  ;;  %v1417_v14 = vadd.f32 %v3423_v62, %v3382_v52  ;;  %v3725_v12 = vld [vmem:[#allocation8_spill] sm:$0xff] }
 0x1a5   : > { %2090 = vst.msk [vmem:[%s3453_s20 + $0x80] sm:$0xff] %vm2073_vm1, %v2057_v25  ;;  %v2027_v36 = vmax.f32 %v1963_v45, %v1995_v59  ;;  %v1567_v19 = vadd.f32 %v3423_v62, %v1566_v13  ;;  %v1887_v48 = vadd.f32 %v3423_v62, %v1886_v26  ;;  %v1737_v51 = vadd.f32 %v3423_v62, %v3720_v29  ;;  %v3726_v59 = vld [vmem:[#allocation9_spill] sm:$0xff]  ;;  %v3727_v13 = vld [vmem:[#allocation10_spill] sm:$0xff] }
 0x1a6   : > { %v2060_v6 = vmax.f32 %v2028_v60, 0.0  ;;  %v1966_v27 = vmax.f32 %v1412_v57, %v1572_v46  ;;  %v1998_v20 = vmax.f32 %v1732_v58, %v1892_v35  ;;  %v1432_v40 = vadd.f32 %v3721_v15, %v3423_v62 }
 0x1a7   : > { %v2059_v37 = vmax.f32 %v2027_v36, 0.0  ;;  %v1965_v49 = vmax.f32 %v1407_v56, %v1567_v19  ;;  %v1997_v28 = vmax.f32 %v1727_v47, %v1887_v48  ;;  %v2534_v55 = vpop.f32.mrb[54].mxu0  ;;  %v2630_v0 = vpop.f32.mrb[54].mxu1  ;;  %v1752_v22 = vadd.f32 %v3722_v30, %v3423_v62 }
 0x1a8   : > { %2093 = vst.msk [vmem:[%s3453_s20 + $0x98] sm:$0xff] %vm2073_vm1, %v2060_v6  ;;  %v2030_v7 = vmax.f32 %v1966_v27, %v1998_v20  ;;  %v1582_v50 = vadd.f32 %v2534_v55, %v3423_v62  ;;  %v1902_v38 = vadd.f32 %v2630_v0, %v3423_v62  ;;  %v1576_v2 = vpop.f32.mrb[55].mxu0  ;;  %v1896_v21 = vpop.f32.mrb[55].mxu1  ;;  %v1427_v32 = vadd.f32 %v3423_v62, %v3723_v23  ;;  %v3728_v6 = vld [vmem:[#allocation11_spill] sm:$0xff] }
 0x1a9   : > { %2092 = vst.msk [vmem:[%s3453_s20 + $0x90] sm:$0xff] %vm2073_vm1, %v2059_v37  ;;  %v2029_v39 = vmax.f32 %v1965_v49, %v1997_v28  ;;  %v1577_v63 = vadd.f32 %v3423_v62, %v1576_v2  ;;  %v1897_v52 = vadd.f32 %v3423_v62, %v1896_v21  ;;  %v1747_v17 = vadd.f32 %v3423_v62, %v3724_v11  ;;  %v3729_v49 = vld [vmem:[#allocation12_spill] sm:$0xff] }
 0x1aa   : > { %v2062_v9 = vmax.f32 %v2030_v7, 0.0  ;;  %v1968_v61 = vmax.f32 %v1422_v5, %v1582_v50  ;;  %v2000_v16 = vmax.f32 %v1742_v8, %v1902_v38  ;;  %v1442_v54 = vadd.f32 %v3725_v12, %v3423_v62  ;;  %v3730_v7 = vld [vmem:[#allocation13_spill] sm:$0xff] }
 0x1ab   : > { %v2061_v1 = vmax.f32 %v2029_v39, 0.0  ;;  %v1967_v41 = vmax.f32 %v1417_v14, %v1577_v63  ;;  %v1999_v3 = vmax.f32 %v1737_v51, %v1897_v52  ;;  %v2537_v31 = vpop.f32.mrb[56].mxu0  ;;  %v2633_v4 = vpop.f32.mrb[56].mxu1  ;;  %v1762_v34 = vadd.f32 %v3726_v59, %v3423_v62  ;;  %v3731_v39 = vld [vmem:[#allocation14_spill] sm:$0xff] }
 0x1ac   : > { %2095 = vst.msk [vmem:[%s3453_s20 + $0xa8] sm:$0xff] %vm2073_vm1, %v2062_v9  ;;  %v2032_v42 = vmax.f32 %v1968_v61, %v2000_v16  ;;  %v1592_v53 = vadd.f32 %v2537_v31, %v3423_v62  ;;  %v1912_v10 = vadd.f32 %v2633_v4, %v3423_v62  ;;  %v1586_v24 = vpop.f32.mrb[57].mxu0  ;;  %v1906_v43 = vpop.f32.mrb[57].mxu1  ;;  %v1437_v26 = vadd.f32 %v3423_v62, %v3727_v13  ;;  %v3732_v16 = vld [vmem:[#allocation15_spill] sm:$0xff] }
 0x1ad   : > { %2094 = vst.msk [vmem:[%s3453_s20 + $0xa0] sm:$0xff] %vm2073_vm1, %v2061_v1  ;;  %v2031_v44 = vmax.f32 %v1967_v41, %v1999_v3  ;;  %v1587_v57 = vadd.f32 %v3423_v62, %v1586_v24  ;;  %v1907_v33 = vadd.f32 %v3423_v62, %v1906_v43  ;;  %v1757_v27 = vadd.f32 %v3423_v62, %v3728_v6  ;;  %v3733_v3 = vld [vmem:[#allocation16_spill] sm:$0xff] }
 0x1ae   : > { %v2064_v58 = vmax.f32 %v2032_v42, 0.0  ;;  %v1970_v25 = vmax.f32 %v1432_v40, %v1592_v53  ;;  %v2002_v45 = vmax.f32 %v1752_v22, %v1912_v10  ;;  %v1452_v28 = vadd.f32 %v3729_v49, %v3423_v62  ;;  %v3734_v42 = vld [vmem:[#allocation17_spill] sm:$0xff] }
 0x1af   : > { %v2063_v18 = vmax.f32 %v2031_v44, 0.0  ;;  %v1969_v56 = vmax.f32 %v1427_v32, %v1587_v57  ;;  %v2001_v60 = vmax.f32 %v1747_v17, %v1907_v33  ;;  %v2540_v46 = vpop.f32.mrb[58].mxu0  ;;  %v2636_v35 = vpop.f32.mrb[58].mxu1  ;;  %v1772_v50 = vadd.f32 %v3730_v7, %v3423_v62  ;;  %v3735_v44 = vld [vmem:[#allocation18_spill] sm:$0xff] }
 0x1b0   : > { %2097 = vst.msk [vmem:[%s3453_s20 + $0xb8] sm:$0xff] %vm2073_vm1, %v2064_v58  ;;  %v2034_v47 = vmax.f32 %v1970_v25, %v2002_v45  ;;  %v1602_v36 = vadd.f32 %v2540_v46, %v3423_v62  ;;  %v1922_v19 = vadd.f32 %v2636_v35, %v3423_v62  ;;  %v1596_v48 = vpop.f32.mrb[59].mxu0  ;;  %v1916_v5 = vpop.f32.mrb[59].mxu1  ;;  %v1447_v63 = vadd.f32 %v3423_v62, %v3731_v39  ;;  %v3736_v45 = vld [vmem:[#allocation19_spill] sm:$0xff] }
 0x1b1   : > { %2096 = vst.msk [vmem:[%s3453_s20 + $0xb0] sm:$0xff] %vm2073_vm1, %v2063_v18  ;;  %v2033_v20 = vmax.f32 %v1969_v56, %v2001_v60  ;;  %v1597_v8 = vadd.f32 %v3423_v62, %v1596_v48  ;;  %v1917_v37 = vadd.f32 %v3423_v62, %v1916_v5  ;;  %v1767_v30 = vadd.f32 %v3423_v62, %v3732_v16 }
 0x1b2   : > { %v2066_v55 = vmax.f32 %v2034_v47, 0.0  ;;  %v1972_v0 = vmax.f32 %v1442_v54, %v1602_v36  ;;  %v2004_v14 = vmax.f32 %v1762_v34, %v1922_v19  ;;  %v1462_v31 = vadd.f32 %v3733_v3, %v3423_v62 }
 0x1b3   : > { %v2065_v38 = vmax.f32 %v2033_v20, 0.0  ;;  %v1971_v2 = vmax.f32 %v1437_v26, %v1597_v8  ;;  %v2003_v21 = vmax.f32 %v1757_v27, %v1917_v37  ;;  %v2543_v29 = vpop.f32.mrb[60].mxu0  ;;  %v2639_v51 = vpop.f32.mrb[60].mxu1  ;;  %v1782_v53 = vadd.f32 %v3734_v42, %v3423_v62 }
 0x1b4   : > { %2099 = vst.msk [vmem:[%s3453_s20 + $0xc8] sm:$0xff] %vm2073_vm1, %v2066_v55  ;;  %v2036_v52 = vmax.f32 %v1972_v0, %v2004_v14  ;;  %v1612_v15 = vadd.f32 %v2543_v29, %v3423_v62  ;;  %v1932_v40 = vadd.f32 %v2639_v51, %v3423_v62  ;;  %v1606_v9 = vpop.f32.mrb[61].mxu0  ;;  %v1926_v61 = vpop.f32.mrb[61].mxu1  ;;  %v1457_v57 = vadd.f32 %v3423_v62, %v3735_v44 }
 0x1b5   : > { %2098 = vst.msk [vmem:[%s3453_s20 + $0xc0] sm:$0xff] %vm2073_vm1, %v2065_v38  ;;  %v2035_v22 = vmax.f32 %v1971_v2, %v2003_v21  ;;  %v1607_v1 = vadd.f32 %v3423_v62, %v1606_v9  ;;  %v1927_v41 = vadd.f32 %v3423_v62, %v1926_v61  ;;  %v1777_v59 = vadd.f32 %v3423_v62, %v3736_v45 }
 0x1b6   : > { %v2068_v4 = vmax.f32 %v2036_v52, 0.0  ;;  %v1974_v23 = vmax.f32 %v1452_v28, %v1612_v15  ;;  %v2006_v32 = vmax.f32 %v1772_v50, %v1932_v40 }
 0x1b7   : > { %v2067_v10 = vmax.f32 %v2035_v22, 0.0  ;;  %v1973_v24 = vmax.f32 %v1447_v63, %v1607_v1  ;;  %v2005_v43 = vmax.f32 %v1767_v30, %v1927_v41  ;;  %v2546_v11 = vpop.f32.mrb[62].mxu0  ;;  %v2642_v17 = vpop.f32.mrb[62].mxu1 }
 0x1b8   : > { %2101 = vst.msk [vmem:[%s3453_s20 + $0xd8] sm:$0xff] %vm2073_vm1, %v2068_v4  ;;  %v2038_v33 = vmax.f32 %v1974_v23, %v2006_v32  ;;  %v1622_v12 = vadd.f32 %v2546_v11, %v3423_v62  ;;  %v1942_v54 = vadd.f32 %v2642_v17, %v3423_v62  ;;  %v1616_v58 = vpop.f32.mrb[63].mxu0  ;;  %v1936_v25 = vpop.f32.mrb[63].mxu1 }
 0x1b9   : > { %2100 = vst.msk [vmem:[%s3453_s20 + $0xd0] sm:$0xff] %vm2073_vm1, %v2067_v10  ;;  %v2037_v34 = vmax.f32 %v1973_v24, %v2005_v43  ;;  %v1617_v18 = vadd.f32 %v3423_v62, %v1616_v58  ;;  %v1937_v56 = vadd.f32 %v3423_v62, %v1936_v25 }
 0x1ba   : > { %v2070_v60 = vmax.f32 %v2038_v33, 0.0  ;;  %v1976_v46 = vmax.f32 %v1462_v31, %v1622_v12  ;;  %v2008_v35 = vmax.f32 %v1782_v53, %v1942_v54 }
 0x1bb   : > { %v2069_v13 = vmax.f32 %v2037_v34, 0.0  ;;  %v1975_v26 = vmax.f32 %v1457_v57, %v1617_v18  ;;  %v2007_v47 = vmax.f32 %v1777_v59, %v1937_v56 }
 0x1bc   : > { %2103 = vst.msk [vmem:[%s3453_s20 + $0xe8] sm:$0xff] %vm2073_vm1, %v2070_v60  ;;  %v2040_v36 = vmax.f32 %v1976_v46, %v2008_v35 }
 0x1bd   : > { %2102 = vst.msk [vmem:[%s3453_s20 + $0xe0] sm:$0xff] %vm2073_vm1, %v2069_v13  ;;  %v2039_v19 = vmax.f32 %v1975_v26, %v2007_v47 }
 0x1be   : > { %v2072_v48 = vmax.f32 %v2040_v36, 0.0 }
 0x1bf   : > { %v2071_v5 = vmax.f32 %v2039_v19, 0.0 }
 0x1c0   : > { %2105 = vst.msk [vmem:[%s3453_s20 + $0xf8] sm:$0xff] %vm2073_vm1, %v2072_v48 }
 0x1c1   : > { %2104 = vst.msk [vmem:[%s3453_s20 + $0xf0] sm:$0xff] %vm2073_vm1, %v2071_v5 }
 0x1c2 PF: > { %p10_p9 = scmp.ge.s32.totalorder %s2740_s16, 4   ;;  %s3737_s12 = smov %s2697_s13 }
 0x1c3   : > { %s3738_s13 = smov %s2749_s19  ;;  %s3739_s14 = smov %s2740_s16 }
 0x1c4   :  { %12 = sbr.rel (!%p10_p9) target bundleno = 2 (0x2), region = 105 }

// kernel: _lambda_.5
= control target key start
LH: loop header
LB: loop body
LE: loop exit
PB: predicated region body
PF: predicated region fallthrough
CT: control target
= control target key end

     0   :  { %vm1885_vm0 = vmmov 0   ;;  %vm886_vm1 = vcmask 523264   ;;  %s2333_s1 = inlined_call_operand.vmem [shape: bf16[1600,128], index: 1, kind: input, shape index: {}]   ;;  %s2334_s0 = inlined_call_operand.vmem [shape: bf16[8,1600], index: 0, kind: input, shape index: {}]   ;;  %s2335_s3 = inlined_call_operand.vmem [shape: bf16[128,128], index: 3, kind: input, shape index: {}]   ;;  %s2336_s5 = inlined_call_operand.vmem [shape: bf16[128,128], index: 5, kind: input, shape index: {}]   ;;  %s2337_s2 = inlined_call_operand.vmem [shape: f32[1,128], index: 2, kind: input, shape index: {}]   ;;  %s2338_s4 = inlined_call_operand.vmem [shape: f32[1,128], index: 4, kind: input, shape index: {}]   ;;  %s2339_s6 = inlined_call_operand.vmem [shape: f32[1,128], index: 6, kind: input, shape index: {}]   ;;  %s2340_s7 = inlined_call_operand.vmem [shape: f32[8,128], index: 7, kind: output, shape index: {}]  }
   0x1   :  { %v1751_v0 = vld [vmem:[%s2333_s1 + $0x40] sm:$0xff]   ;;  %v1755_v4 = vld [vmem:[%s2333_s1 + $0x48] sm:$0xff]   ;;  %v1759_v8 = vld [vmem:[%s2333_s1 + $0x50] sm:$0xff]  }
   0x2   :  { %v1752_v1 = vld [vmem:[%s2333_s1] sm:$0xff]   ;;  %1542 = vmatprep.subr.bf16.mxu0 %v1751_v0  ;;  %v1756_v5 = vld [vmem:[%s2333_s1 + $0x8] sm:$0xff]   ;;  %v1760_v9 = vld [vmem:[%s2333_s1 + $0x10] sm:$0xff]  }
   0x3   :  { %v1753_v2 = vld [vmem:[%s2333_s1 + $0xc0] sm:$0xff]   ;;  %1543 = vmatpush3.bf16.msra.mxu0 %v1752_v1  ;;  %v1757_v6 = vld [vmem:[%s2333_s1 + $0xc8] sm:$0xff]   ;;  %v1761_v10 = vld [vmem:[%s2333_s1 + $0xd0] sm:$0xff]  }
   0x4   :  { %v1754_v3 = vld [vmem:[%s2333_s1 + $0x80] sm:$0xff]   ;;  %1564 = vmatprep.subr.bf16.mxu1 %v1753_v2  ;;  %1544 = vmatprep.subr.bf16.mxu0 %v1755_v4  ;;  %v1758_v7 = vld [vmem:[%s2333_s1 + $0x88] sm:$0xff]   ;;  %v1762_v11 = vld [vmem:[%s2333_s1 + $0x90] sm:$0xff]  }
   0x5   :  { %1565 = vmatpush3.bf16.msra.mxu1 %v1754_v3  ;;  %v1763_v12 = vld [vmem:[%s2333_s1 + $0x58] sm:$0xff]   ;;  %v1767_v16 = vld [vmem:[%s2333_s1 + $0x60] sm:$0xff]   ;;  %v1771_v20 = vld [vmem:[%s2333_s1 + $0x68] sm:$0xff]  }
   0x6   :  { %1566 = vmatprep.subr.bf16.mxu1 %v1757_v6  ;;  %v1764_v13 = vld [vmem:[%s2333_s1 + $0x18] sm:$0xff]   ;;  %v1768_v17 = vld [vmem:[%s2333_s1 + $0x20] sm:$0xff]   ;;  %v1772_v21 = vld [vmem:[%s2333_s1 + $0x28] sm:$0xff]  }
   0x7   :  { %1545 = vmatpush3.bf16.msra.mxu0 %v1756_v5  ;;  %v1765_v14 = vld [vmem:[%s2333_s1 + $0xd8] sm:$0xff]   ;;  %v1769_v18 = vld [vmem:[%s2333_s1 + $0xe0] sm:$0xff]   ;;  %v1773_v22 = vld [vmem:[%s2333_s1 + $0xe8] sm:$0xff]  }
   0x8   :  { %1546 = vmatprep.subr.bf16.mxu0 %v1759_v8  ;;  %v1766_v15 = vld [vmem:[%s2333_s1 + $0x98] sm:$0xff]   ;;  %v1770_v19 = vld [vmem:[%s2333_s1 + $0xa0] sm:$0xff]   ;;  %v1774_v23 = vld [vmem:[%s2333_s1 + $0xa8] sm:$0xff]  }
   0x9   :  { %1567 = vmatpush3.bf16.msra.mxu1 %v1758_v7  ;;  %v1775_v24 = vld [vmem:[%s2333_s1 + $0x70] sm:$0xff]   ;;  %v1779_v28 = vld [vmem:[%s2333_s1 + $0x78] sm:$0xff]   ;;  %v27_v31 = vld [vmem:[%s2334_s0] sm:$0xff] }
   0xa   :  { %1568 = vmatprep.subr.bf16.mxu1 %v1761_v10  ;;  %v1776_v25 = vld [vmem:[%s2333_s1 + $0x30] sm:$0xff]   ;;  %v1780_v29 = vld [vmem:[%s2333_s1 + $0x38] sm:$0xff]   ;;  %v1410_v32 = vcombine.low %v27_v31, %v27_v31  ;;  %v1411_v33 = vcombine.high %v27_v31, %v27_v31  ;;  %v1785_v35 = vld [vmem:[%s2333_s1 + $0x140] sm:$0xff]  }
   0xb   :  { %1547 = vmatpush3.bf16.msra.mxu0 %v1760_v9  ;;  %v1777_v26 = vld [vmem:[%s2333_s1 + $0xf0] sm:$0xff]   ;;  %v1781_v30 = vld [vmem:[%s2333_s1 + $0xf8] sm:$0xff]   ;;  %v28_v36 = vld [vmem:[%s2334_s0 + $0x8] sm:$0xff] }
   0xc   :  { %1548 = vmatprep.subr.bf16.mxu0 %v1763_v12  ;;  %v1778_v27 = vld [vmem:[%s2333_s1 + $0xb0] sm:$0xff]   ;;  %v1784_v34 = vld [vmem:[%s2333_s1 + $0xb8] sm:$0xff]   ;;  %922 = vmatprep.mubr.bf16.mxu0 %v1411_v33  ;;  %v1412_v37 = vcombine.low %v28_v36, %v28_v36  ;;  %v1413_v38 = vcombine.high %v28_v36, %v28_v36  ;;  %v1788_v39 = vld [vmem:[%s2333_s1 + $0x100] sm:$0xff]  }
   0xd   :  { %1569 = vmatpush3.bf16.msra.mxu1 %v1762_v11  ;;  %v1789_v40 = vld [vmem:[%s2333_s1 + $0x1c0] sm:$0xff]   ;;  %v1791_v42 = vld [vmem:[%s2333_s1 + $0x148] sm:$0xff]   ;;  %v1795_v46 = vld [vmem:[%s2333_s1 + $0x150] sm:$0xff]  }
   0xe   :  { %1570 = vmatprep.subr.bf16.mxu1 %v1765_v14  ;;  %962 = vmatprep.mubr.bf16.mxu1 %v1413_v38  ;;  %v1790_v41 = vld [vmem:[%s2333_s1 + $0x180] sm:$0xff]   ;;  %v1792_v43 = vld [vmem:[%s2333_s1 + $0x108] sm:$0xff]   ;;  %v1796_v47 = vld [vmem:[%s2333_s1 + $0x110] sm:$0xff]  }
   0xf   :  { %1549 = vmatpush3.bf16.msra.mxu0 %v1764_v13  ;;  %v1793_v44 = vld [vmem:[%s2333_s1 + $0x1c8] sm:$0xff]   ;;  %v1797_v48 = vld [vmem:[%s2333_s1 + $0x1d0] sm:$0xff]   ;;  %v1799_v50 = vld [vmem:[%s2333_s1 + $0x158] sm:$0xff]  }
  0x10   :  { %1550 = vmatprep.subr.bf16.mxu0 %v1767_v16  ;;  %v1794_v45 = vld [vmem:[%s2333_s1 + $0x188] sm:$0xff]   ;;  %v1798_v49 = vld [vmem:[%s2333_s1 + $0x190] sm:$0xff]   ;;  %v1800_v51 = vld [vmem:[%s2333_s1 + $0x118] sm:$0xff]  }
  0x11   :  { %1571 = vmatpush3.bf16.msra.mxu1 %v1766_v15  ;;  %v1801_v52 = vld [vmem:[%s2333_s1 + $0x1d8] sm:$0xff]   ;;  %v1803_v54 = vld [vmem:[%s2333_s1 + $0x160] sm:$0xff]   ;;  %v1807_v58 = vld [vmem:[%s2333_s1 + $0x168] sm:$0xff]  }
  0x12   :  { %1572 = vmatprep.subr.bf16.mxu1 %v1769_v18  ;;  %v1802_v53 = vld [vmem:[%s2333_s1 + $0x198] sm:$0xff]   ;;  %v1804_v55 = vld [vmem:[%s2333_s1 + $0x120] sm:$0xff]   ;;  %v1808_v59 = vld [vmem:[%s2333_s1 + $0x128] sm:$0xff]  }
  0x13   :  { %1551 = vmatpush3.bf16.msra.mxu0 %v1768_v17  ;;  %v1805_v56 = vld [vmem:[%s2333_s1 + $0x1e0] sm:$0xff]   ;;  %v1809_v60 = vld [vmem:[%s2333_s1 + $0x1e8] sm:$0xff]   ;;  %v1811_v62 = vld [vmem:[%s2333_s1 + $0x170] sm:$0xff]  }
  0x14   :  { %1552 = vmatprep.subr.bf16.mxu0 %v1771_v20  ;;  %v1806_v57 = vld [vmem:[%s2333_s1 + $0x1a0] sm:$0xff]   ;;  %v1810_v61 = vld [vmem:[%s2333_s1 + $0x1a8] sm:$0xff]   ;;  %v1812_v63 = vld [vmem:[%s2333_s1 + $0x130] sm:$0xff]  }
  0x15   :  { %1573 = vmatpush3.bf16.msra.mxu1 %v1770_v19  ;;  %v1813_v0 = vld [vmem:[%s2333_s1 + $0x1f0] sm:$0xff]   ;;  %v1815_v2 = vld [vmem:[%s2333_s1 + $0x178] sm:$0xff]   ;;  %v1821_v9 = vld [vmem:[%s2333_s1 + $0x240] sm:$0xff]  }
  0x16   :  { %1574 = vmatprep.subr.bf16.mxu1 %v1773_v22  ;;  %v1814_v1 = vld [vmem:[%s2333_s1 + $0x1b0] sm:$0xff]   ;;  %v1816_v3 = vld [vmem:[%s2333_s1 + $0x138] sm:$0xff]   ;;  %v1824_v13 = vld [vmem:[%s2333_s1 + $0x200] sm:$0xff]  }
  0x17   :  { %1553 = vmatpush3.bf16.msra.mxu0 %v1772_v21  ;;  %v1817_v4 = vld [vmem:[%s2333_s1 + $0x1f8] sm:$0xff]   ;;  %v29_v5 = vld [vmem:[%s2334_s0 + $0x10] sm:$0xff]  ;;  %v1825_v14 = vld [vmem:[%s2333_s1 + $0x2c0] sm:$0xff]  }
  0x18   :  { %1554 = vmatprep.subr.bf16.mxu0 %v1775_v24  ;;  %v1414_v6 = vcombine.low %v29_v5, %v29_v5  ;;  %v1415_v7 = vcombine.high %v29_v5, %v29_v5  ;;  %v1820_v8 = vld [vmem:[%s2333_s1 + $0x1b8] sm:$0xff]   ;;  %v1826_v15 = vld [vmem:[%s2333_s1 + $0x280] sm:$0xff]   ;;  %v1827_v16 = vld [vmem:[%s2333_s1 + $0x248] sm:$0xff]  }
  0x19   :  { %1575 = vmatpush3.bf16.msra.mxu1 %v1774_v23  ;;  %v30_v10 = vld [vmem:[%s2334_s0 + $0x18] sm:$0xff]  ;;  %v1828_v17 = vld [vmem:[%s2333_s1 + $0x208] sm:$0xff]   ;;  %v1831_v20 = vld [vmem:[%s2333_s1 + $0x250] sm:$0xff]  }
  0x1a   :  { %1576 = vmatprep.subr.bf16.mxu1 %v1777_v26  ;;  %v1416_v11 = vcombine.low %v30_v10, %v30_v10  ;;  %v1417_v12 = vcombine.high %v30_v10, %v30_v10  ;;  %v1829_v18 = vld [vmem:[%s2333_s1 + $0x2c8] sm:$0xff]   ;;  %v1832_v21 = vld [vmem:[%s2333_s1 + $0x210] sm:$0xff]   ;;  %v1835_v24 = vld [vmem:[%s2333_s1 + $0x258] sm:$0xff]  }
  0x1b   :  { %1555 = vmatpush3.bf16.msra.mxu0 %v1776_v25  ;;  %v1830_v19 = vld [vmem:[%s2333_s1 + $0x288] sm:$0xff]   ;;  %v1833_v22 = vld [vmem:[%s2333_s1 + $0x2d0] sm:$0xff]   ;;  %v1836_v25 = vld [vmem:[%s2333_s1 + $0x218] sm:$0xff]  }
  0x1c   :  { %1556 = vmatprep.subr.bf16.mxu0 %v1779_v28  ;;  %v1834_v23 = vld [vmem:[%s2333_s1 + $0x290] sm:$0xff]   ;;  %v1837_v26 = vld [vmem:[%s2333_s1 + $0x2d8] sm:$0xff]   ;;  %v1839_v28 = vld [vmem:[%s2333_s1 + $0x260] sm:$0xff]  }
  0x1d   :  { %1577 = vmatpush3.bf16.msra.mxu1 %v1778_v27  ;;  %v1838_v27 = vld [vmem:[%s2333_s1 + $0x298] sm:$0xff]   ;;  %v1842_v31 = vld [vmem:[%s2333_s1 + $0x2a0] sm:$0xff]   ;;  %v1844_v33 = vld [vmem:[%s2333_s1 + $0x228] sm:$0xff]  }
  0x1e   :  { %1578 = vmatprep.subr.bf16.mxu1 %v1781_v30  ;;  %v1841_v30 = vld [vmem:[%s2333_s1 + $0x2e0] sm:$0xff]   ;;  %v1847_v36 = vld [vmem:[%s2333_s1 + $0x270] sm:$0xff]   ;;  %v1877_v5 = vld [vmem:[%s2336_s5 + $0x28] sm:$0xff]  }
  0x1f   :  { %1557 = vmatpush3.bf16.msra.mxu0 %v1780_v29  ;;  %v1840_v29 = vld [vmem:[%s2333_s1 + $0x220] sm:$0xff]   ;;  %v1849_v38 = vld [vmem:[%s2333_s1 + $0x2f0] sm:$0xff]  }
  0x20   :  { %1586 = vmatprep.subr.bf16.mxu0 %v1785_v35  ;;  %v1846_v35 = vld [vmem:[%s2333_s1 + $0x2a8] sm:$0xff]  }
  0x21   :  { %1579 = vmatpush3.bf16.msra.mxu1 %v1784_v34  ;;  %v1845_v34 = vld [vmem:[%s2333_s1 + $0x2e8] sm:$0xff]  }
  0x22   :  { %923 = vmatmul.mubr.bf16.vlgmr.msra.gmra.mrb[0].mxu0 %v1410_v32  ;;  %1608 = vmatprep.subr.bf16.mxu1 %v1789_v40  ;;  %v1843_v32 = vld [vmem:[%s2333_s1 + $0x268] sm:$0xff]   ;;  %v1851_v40 = vld [vmem:[%s2333_s1 + $0x278] sm:$0xff]  }
  0x23   :  { %1587 = vmatpush3.bf16.msra.mxu0 %v1788_v39  ;;  %1002 = vmatprep.mubr.bf16.mxu0 %v1415_v7  ;;  %v1850_v39 = vld [vmem:[%s2333_s1 + $0x2b0] sm:$0xff]  }
  0x24   :  { %963 = vmatmul.mubr.bf16.vlgmr.msra.gmra.mrb[0].mxu1 %v1412_v37  ;;  %1588 = vmatprep.subr.bf16.mxu0 %v1791_v42  ;;  %v1848_v37 = vld [vmem:[%s2333_s1 + $0x230] sm:$0xff]   ;;  %v1853_v42 = vld [vmem:[%s2333_s1 + $0x2f8] sm:$0xff]  }
  0x25   :  { %1609 = vmatpush3.bf16.msra.mxu1 %v1790_v41  ;;  %1042 = vmatprep.mubr.bf16.mxu1 %v1417_v12  ;;  %v1852_v41 = vld [vmem:[%s2333_s1 + $0x238] sm:$0xff]  }
  0x26   :  { %1610 = vmatprep.subr.bf16.mxu1 %v1793_v44 }
  0x27   :  { %1589 = vmatpush3.bf16.msra.mxu0 %v1792_v43  ;;  %v31_v43 = vld [vmem:[%s2334_s0 + $0x20] sm:$0xff] }
  0x28   :  { %1590 = vmatprep.subr.bf16.mxu0 %v1795_v46  ;;  %v1418_v44 = vcombine.low %v31_v43, %v31_v43  ;;  %v1856_v46 = vld [vmem:[%s2333_s1 + $0x2b8] sm:$0xff]  }
  0x29   :  { %1611 = vmatpush3.bf16.msra.mxu1 %v1794_v45  ;;  %v1419_v45 = vcombine.high %v31_v43, %v31_v43 }
  0x2a   :  { %1612 = vmatprep.subr.bf16.mxu1 %v1797_v48  ;;  %v1884_v48 = vmov 0.0  }
  0x2b   :  { %1591 = vmatpush3.bf16.msra.mxu0 %v1796_v47  ;;  %v32_v47 = vld [vmem:[%s2334_s0 + $0x28] sm:$0xff] }
  0x2c   :  { %1592 = vmatprep.subr.bf16.mxu0 %v1799_v50  ;;  %v1421_v50 = vcombine.high %v32_v47, %v32_v47 }
  0x2d   :  { %1613 = vmatpush3.bf16.msra.mxu1 %v1798_v49  ;;  %v1420_v49 = vcombine.low %v32_v47, %v32_v47 }
  0x2e   :  { %1614 = vmatprep.subr.bf16.mxu1 %v1801_v52  ;;  %v1860_v52 = vld [vmem:[%s2333_s1 + $0x308] sm:$0xff]  }
  0x2f   :  { %1593 = vmatpush3.bf16.msra.mxu0 %v1800_v51  ;;  %v1859_v51 = vld [vmem:[%s2333_s1 + $0x300] sm:$0xff]  }
  0x30   :  { %1594 = vmatprep.subr.bf16.mxu0 %v1803_v54  ;;  %v1862_v54 = vld [vmem:[%s2333_s1 + $0x318] sm:$0xff]  }
  0x31   :  { %1615 = vmatpush3.bf16.msra.mxu1 %v1802_v53  ;;  %v1861_v53 = vld [vmem:[%s2333_s1 + $0x310] sm:$0xff]  }
  0x32   :  { %1616 = vmatprep.subr.bf16.mxu1 %v1805_v56  ;;  %v1864_v56 = vld [vmem:[%s2335_s3] sm:$0xff]  }
  0x33   :  { %1595 = vmatpush3.bf16.msra.mxu0 %v1804_v55  ;;  %v1863_v55 = vld [vmem:[%s2334_s0 + $0x30] ss:$0 sps:$4 sm:$0xff]  }
  0x34   :  { %1596 = vmatprep.subr.bf16.mxu0 %v1807_v58  ;;  %v1866_v58 = vld [vmem:[%s2335_s3 + $0x10] sm:$0xff]  }
  0x35   :  { %1617 = vmatpush3.bf16.msra.mxu1 %v1806_v57  ;;  %v1865_v57 = vld [vmem:[%s2335_s3 + $0x8] sm:$0xff]  }
  0x36   :  { %1618 = vmatprep.subr.bf16.mxu1 %v1809_v60  ;;  %v1868_v60 = vld [vmem:[%s2335_s3 + $0x20] sm:$0xff]  }
  0x37   :  { %1597 = vmatpush3.bf16.msra.mxu0 %v1808_v59  ;;  %v1867_v59 = vld [vmem:[%s2335_s3 + $0x18] sm:$0xff]  }
  0x38   :  { %1598 = vmatprep.subr.bf16.mxu0 %v1811_v62  ;;  %v1870_v62 = vld [vmem:[%s2335_s3 + $0x30] sm:$0xff]  }
  0x39   :  { %1619 = vmatpush3.bf16.msra.mxu1 %v1810_v61  ;;  %v1869_v61 = vld [vmem:[%s2335_s3 + $0x28] sm:$0xff]  }
  0x3a   :  { %1620 = vmatprep.subr.bf16.mxu1 %v1813_v0  ;;  %v1872_v0 = vld [vmem:[%s2336_s5] sm:$0xff]  }
  0x3b   :  { %1599 = vmatpush3.bf16.msra.mxu0 %v1812_v63  ;;  %v1871_v63 = vld [vmem:[%s2335_s3 + $0x38] sm:$0xff]  }
  0x3c   :  { %1600 = vmatprep.subr.bf16.mxu0 %v1815_v2  ;;  %v1874_v2 = vld [vmem:[%s2336_s5 + $0x10] sm:$0xff]  }
  0x3d   :  { %1621 = vmatpush3.bf16.msra.mxu1 %v1814_v1  ;;  %v1873_v1 = vld [vmem:[%s2336_s5 + $0x8] sm:$0xff]  }
  0x3e   :  { %1622 = vmatprep.subr.bf16.mxu1 %v1817_v4  ;;  %v1876_v4 = vld [vmem:[%s2336_s5 + $0x20] sm:$0xff]  }
  0x3f   :  { %1601 = vmatpush3.bf16.msra.mxu0 %v1816_v3  ;;  %v1875_v3 = vld [vmem:[%s2336_s5 + $0x18] sm:$0xff]  }
  0x40   :  { %1630 = vmatprep.subr.bf16.mxu0 %v1821_v9 }
  0x41   :  { %1623 = vmatpush3.bf16.msra.mxu1 %v1820_v8  ;;  %v1409_v8 = vld [vmem:[%s2337_s2] ss:$0 sm:$0xff] }
  0x42   :  { %1003 = vmatmul.mubr.bf16.vlgmr.msra.gmra.mrb[4].mxu0 %v1414_v6  ;;  %1652 = vmatprep.subr.bf16.mxu1 %v1825_v14  ;;  %v1878_v6 = vld [vmem:[%s2336_s5 + $0x30] sm:$0xff]  }
  0x43   :  { %1631 = vmatpush3.bf16.msra.mxu0 %v1824_v13  ;;  %1082 = vmatprep.mubr.bf16.mxu0 %v1419_v45 }
  0x44   :  { %1043 = vmatmul.mubr.bf16.vlgmr.msra.gmra.mrb[4].mxu1 %v1416_v11  ;;  %1632 = vmatprep.subr.bf16.mxu0 %v1827_v16 }
  0x45   :  { %1653 = vmatpush3.bf16.msra.mxu1 %v1826_v15  ;;  %1122 = vmatprep.mubr.bf16.mxu1 %v1421_v50  ;;  %v1879_v50 = vld [vmem:[%s2336_s5 + $0x38] sm:$0xff]  }
  0x46   :  { %1654 = vmatprep.subr.bf16.mxu1 %v1829_v18 }
  0x47   :  { %1633 = vmatpush3.bf16.msra.mxu0 %v1828_v17 }
  0x48   :  { %1634 = vmatprep.subr.bf16.mxu0 %v1831_v20 }
  0x49   :  { %1655 = vmatpush3.bf16.msra.mxu1 %v1830_v19 }
  0x4a   :  { %1656 = vmatprep.subr.bf16.mxu1 %v1833_v22 }
  0x4b   :  { %1635 = vmatpush3.bf16.msra.mxu0 %v1832_v21 }
  0x4c   :  { %1636 = vmatprep.subr.bf16.mxu0 %v1835_v24 }
  0x4d   :  { %1657 = vmatpush3.bf16.msra.mxu1 %v1834_v23 }
  0x4e   :  { %1658 = vmatprep.subr.bf16.mxu1 %v1837_v26 }
  0x4f   :  { %1637 = vmatpush3.bf16.msra.mxu0 %v1836_v25 }
  0x50   :  { %1638 = vmatprep.subr.bf16.mxu0 %v1839_v28 }
  0x51   :  { %1659 = vmatpush3.bf16.msra.mxu1 %v1838_v27 }
  0x52   :  { %1660 = vmatprep.subr.bf16.mxu1 %v1841_v30 }
  0x53   :  { %1639 = vmatpush3.bf16.msra.mxu0 %v1840_v29 }
  0x54   :  { %1640 = vmatprep.subr.bf16.mxu0 %v1843_v32 }
  0x55   :  { %1661 = vmatpush3.bf16.msra.mxu1 %v1842_v31 }
  0x56   :  { %1662 = vmatprep.subr.bf16.mxu1 %v1845_v34 }
  0x57   :  { %1641 = vmatpush3.bf16.msra.mxu0 %v1844_v33 }
  0x58   :  { %1642 = vmatprep.subr.bf16.mxu0 %v1847_v36 }
  0x59   :  { %1663 = vmatpush3.bf16.msra.mxu1 %v1846_v35 }
  0x5a   :  { %1664 = vmatprep.subr.bf16.mxu1 %v1849_v38 }
  0x5b   :  { %1643 = vmatpush3.bf16.msra.mxu0 %v1848_v37 }
  0x5c   :  { %1644 = vmatprep.subr.bf16.mxu0 %v1851_v40 }
  0x5d   :  { %1665 = vmatpush3.bf16.msra.mxu1 %v1850_v39 }
  0x5e   :  { %1666 = vmatprep.subr.bf16.mxu1 %v1853_v42 }
  0x5f   :  { %1645 = vmatpush3.bf16.msra.mxu0 %v1852_v41 }
  0x60   :  { %1697 = vmatprep.subr.bf16.mxu0 %v1884_v48 }
  0x61   :  { %1667 = vmatpush3.bf16.msra.mxu1 %v1856_v46 }
  0x62   :  { %1083 = vmatmul.mubr.bf16.vlgmr.msra.gmra.mrb[8].mxu0 %v1418_v44  ;;  %1709 = vmatprep.subr.bf16.mxu1 %v1884_v48 }
  0x63   :  { %1698 = vmatpush3.bf16.msra.mxu0 %v1859_v51  ;;  %1705 = vmatprep.mubr.msk.bf16.mxu0 %vm1885_vm0, %v1884_v48  ;;  %v1524_v51 = vld [vmem:[%s2338_s4] ss:$0 sm:$0xff] }
  0x64   :  { %1123 = vmatmul.mubr.bf16.vlgmr.msra.gmra.mrb[8].mxu1 %v1420_v49  ;;  %1699 = vmatprep.subr.bf16.mxu0 %v1884_v48 }
  0x65   :  { %1725 = vmatprep.mubr.msk.bf16.mxu1 %vm1885_vm0, %v1884_v48  ;;  %1710 = vmatpush3.bf16.msra.mxu1 %v1864_v56 }
  0x66   :  { %1711 = vmatprep.subr.bf16.mxu1 %v1884_v48 }
  0x67   :  { %1700 = vmatpush3.bf16.msra.mxu0 %v1860_v52 }
  0x68   :  { %1701 = vmatprep.subr.bf16.mxu0 %v1884_v48 }
  0x69   :  { %1712 = vmatpush3.bf16.msra.mxu1 %v1865_v57 }
  0x6a   :  { %1713 = vmatprep.subr.bf16.mxu1 %v1884_v48 }
  0x6b   :  { %1702 = vmatpush3.bf16.msra.mxu0 %v1861_v53 }
  0x6c   :  { %1703 = vmatprep.subr.bf16.mxu0 %v1884_v48 }
  0x6d   :  { %1714 = vmatpush3.bf16.msra.mxu1 %v1866_v58  ;;  %v1533_v58 = vld [vmem:[%s2339_s6] ss:$0 sm:$0xff] }
  0x6e   :  { %1715 = vmatprep.subr.bf16.mxu1 %v1884_v48 }
  0x6f   :  { %1704 = vmatpush3.bf16.msra.mxu0 %v1862_v54 }
  0x70   :  { %1729 = vmatprep.subr.bf16.mxu0 %v1884_v48 }
  0x71   :  { %1716 = vmatpush3.bf16.msra.mxu1 %v1867_v59 }
  0x72   :  { %1706 = vmatmul.mubr.msk.bf16.vlgmr.msra.gmra.mrb[12].mxu0 %vm886_vm1, %v1863_v55  ;;  %1717 = vmatprep.subr.bf16.mxu1 %v1884_v48 }
  0x73   :  { %1745 = vmatprep.mubr.msk.bf16.mxu0 %vm1885_vm0, %v1884_v48  ;;  %1730 = vmatpush3.bf16.msra.mxu0 %v1872_v0 }
  0x74   :  { %1731 = vmatprep.subr.bf16.mxu0 %v1884_v48 }
  0x75   :  { %1718 = vmatpush3.bf16.msra.mxu1 %v1868_v60 }
  0x76   :  { %1719 = vmatprep.subr.bf16.mxu1 %v1884_v48 }
  0x77   :  { %1732 = vmatpush3.bf16.msra.mxu0 %v1873_v1 }
  0x78   :  { %1733 = vmatprep.subr.bf16.mxu0 %v1884_v48 }
  0x79   :  { %1720 = vmatpush3.bf16.msra.mxu1 %v1869_v61 }
  0x7a   :  { %1721 = vmatprep.subr.bf16.mxu1 %v1884_v48 }
  0x7b   :  { %1734 = vmatpush3.bf16.msra.mxu0 %v1874_v2 }
  0x7c   :  { %1735 = vmatprep.subr.bf16.mxu0 %v1884_v48 }
  0x7d   :  { %1722 = vmatpush3.bf16.msra.mxu1 %v1870_v62 }
  0x7e   :  { %1723 = vmatprep.subr.bf16.mxu1 %v1884_v48 }
  0x7f   :  { %1736 = vmatpush3.bf16.msra.mxu0 %v1875_v3 }
  0x80   :  { %1737 = vmatprep.subr.bf16.mxu0 %v1884_v48 }
  0x81   :  { %1724 = vmatpush3.bf16.msra.mxu1 %v1871_v63 }
  0x83   :  { %1738 = vmatpush3.bf16.msra.mxu0 %v1876_v4 }
  0x84   :  { %1739 = vmatprep.subr.bf16.mxu0 %v1884_v48 }
  0x87   :  { %1740 = vmatpush3.bf16.msra.mxu0 %v1877_v5 }
  0x88   :  { %1741 = vmatprep.subr.bf16.mxu0 %v1884_v48 }
  0x8b   :  { %1742 = vmatpush3.bf16.msra.mxu0 %v1878_v6 }
  0x8c   :  { %1743 = vmatprep.subr.bf16.mxu0 %v1884_v48 }
  0x8f   :  { %1744 = vmatpush3.bf16.msra.mxu0 %v1879_v50 }
  0xf5   :  { %v1558_v7 = vpop.f32.mrb[0].mxu0 }
  0xf6   :  { %v1559_v9 = vpop.f32.mrb[1].mxu0 }
  0xf7   :  { %v1560_v10 = vadd.f32 %v1559_v9, %v1558_v7  ;;  %v1561_v11 = vpop.f32.mrb[2].mxu0  ;;  %v1580_v12 = vpop.f32.mrb[0].mxu1 }
  0xf8   :  { %v1562_v13 = vpop.f32.mrb[3].mxu0  ;;  %v1581_v14 = vpop.f32.mrb[1].mxu1 }
  0xf9   :  { %v925_v15 = vadd.f32 %v1560_v10, %v1409_v8  ;;  %v1582_v16 = vadd.f32 %v1581_v14, %v1580_v12  ;;  %v1583_v17 = vpop.f32.mrb[2].mxu1 }
  0xfa   :  { %v1584_v18 = vpop.f32.mrb[3].mxu1 }
  0xfb   :  { %v965_v19 = vadd.f32 %v1582_v16, %v925_v15 }
 0x115   :  { %v1602_v20 = vpop.f32.mrb[4].mxu0 }
 0x116   :  { %v1603_v21 = vpop.f32.mrb[5].mxu0 }
 0x117   :  { %v1604_v22 = vadd.f32 %v1603_v21, %v1602_v20  ;;  %v1605_v23 = vpop.f32.mrb[6].mxu0  ;;  %v1624_v24 = vpop.f32.mrb[4].mxu1 }
 0x118   :  { %v1606_v25 = vpop.f32.mrb[7].mxu0  ;;  %v1625_v27 = vpop.f32.mrb[5].mxu1 }
 0x119   :  { %v1005_v26 = vadd.f32 %v1604_v22, %v965_v19  ;;  %v1626_v28 = vadd.f32 %v1625_v27, %v1624_v24  ;;  %v1627_v29 = vpop.f32.mrb[6].mxu1 }
 0x11a   :  { %v1628_v30 = vpop.f32.mrb[7].mxu1 }
 0x11b   :  { %v1045_v31 = vadd.f32 %v1626_v28, %v1005_v26 }
 0x135   :  { %v1646_v32 = vpop.f32.mrb[8].mxu0 }
 0x136   :  { %v1647_v33 = vpop.f32.mrb[9].mxu0 }
 0x137   :  { %v1648_v34 = vadd.f32 %v1647_v33, %v1646_v32  ;;  %v1649_v35 = vpop.f32.mrb[10].mxu0  ;;  %v1668_v36 = vpop.f32.mrb[8].mxu1 }
 0x138   :  { %v1650_v37 = vpop.f32.mrb[11].mxu0  ;;  %v1669_v38 = vpop.f32.mrb[9].mxu1 }
 0x139   :  { %v1085_v39 = vadd.f32 %v1648_v34, %v1045_v31  ;;  %v1670_v40 = vadd.f32 %v1669_v38, %v1668_v36  ;;  %v1671_v41 = vpop.f32.mrb[10].mxu1 }
 0x13a   :  { %v1672_v42 = vpop.f32.mrb[11].mxu1 }
 0x13b   :  { %v1125_v43 = vadd.f32 %v1670_v40, %v1085_v39 }
 0x145   :  { %v1164_v44 = vpop.f32.mrb[12].mxu0 }
 0x146   :  { %v1165_v45 = vadd.f32 %v1164_v44, %v1125_v43  ;;  %v1707_v46 = vpop.f32.mrb[13].mxu0 }
 0x147   :  { %v1167_v47 = vpop.f32.mrb[14].mxu0 }
 0x148   :  { %v1170_v48 = vpack.c.bf16 %v1165_v45, %v1165_v45  ;;  %v1708_v49 = vpop.f32.mrb[15].mxu0 }
 0x14a   :  { %1726 = vmatmul.mubr.bf16.vlgmr.msra.gmra.mrb[12].mxu1 %v1170_v48 }
 0x21d   :  { %v1276_v52 = vpop.f32.mrb[12].mxu1 }
 0x21e   :  { %v1277_v53 = vadd.f32 %v1524_v51, %v1276_v52  ;;  %v1727_v54 = vpop.f32.mrb[13].mxu1 }
 0x21f   :  { %v1279_v55 = vpop.f32.mrb[14].mxu1 }
 0x220   :  { %v1282_v56 = vpack.c.bf16 %v1277_v53, %v1277_v53  ;;  %v1728_v57 = vpop.f32.mrb[15].mxu1 }
 0x222   :  { %1746 = vmatmul.mubr.bf16.vlgmr.msra.gmra.mrb[16].mxu0 %v1282_v56 }
 0x2f5   :  { %v1388_v59 = vpop.f32.mrb[16].mxu0 }
 0x2f6   :  { %v1389_v60 = vadd.f32 %v1533_v58, %v1388_v59  ;;  %v1747_v61 = vpop.f32.mrb[17].mxu0 }
 0x2f7   :  { %v1391_v62 = vpop.f32.mrb[18].mxu0 }
 0x2f8   :  { %1394 = vmax.xlane.f32.xlu0 %v1389_v60  ;;  %v1748_v63 = vpop.f32.mrb[19].mxu0 }
 0x385   :  { %v1395_v0 = vpop.xlane.xlu0 %1394 }
 0x386   :  { %v1396_v1 = vsub.f32 %v1389_v60, %v1395_v0 }
 0x388   :  { %v1397_v2 = vmul.f32 1.442695, %v1396_v1 }
 0x38a   :  { %1880 = vpow2.f32 %v1397_v2 }
 0x394   :  { %v1881_v3 = vpop.eup %1880 }
 0x395   :  { %1399 = vadd.xlane.f32.xlu0 %v1881_v3 }
 0x422   :  { %v1400_v4 = vpop.xlane.xlu0 %1399 }
 0x423   :  { %1882 = vlog2.f32 %v1400_v4 }
 0x42d   :  { %v1883_v5 = vpop.eup %1882 }
 0x42e   :  { %v1402_v6 = vmul.f32 0.6931472, %v1883_v5 }
 0x430   :  { %v1403_v7 = vsub.f32 %v1396_v1, %v1402_v6 }
 0x432   :  { %1404 = vst [vmem:[%s2340_s7] sm:$0xff] %v1403_v7 }

// kernel: _lambda_.4
= control target key start
LH: loop header
LB: loop body
LE: loop exit
PB: predicated region body
PF: predicated region fallthrough
CT: control target
= control target key end

     0   :  { %s7232_s12 = smov 0   ;;  %s8701_s0 = inlined_call_operand.vmem [shape: f32[2,14,24,64], index: 0, kind: input, shape index: {}]   ;;  %s8702_s1 = inlined_call_operand.vmem [shape: bf16[1600,64], index: 1, kind: input, shape index: {}]   ;;  %s8703_s2 = inlined_call_operand.vmem [shape: f32[1,64], index: 2, kind: input, shape index: {}]   ;;  %s8704_s3 = inlined_call_operand.vmem [shape: f32[2,5,15,64], index: 3, kind: output, shape index: {}]  }
   0x1 LB: > { %s5186_s13 = sadd.s32 4294967295, %s7210_s12   ;;  %p5190_p0 = scmp.ge.s32.totalorder %s7210_s12, 1  ;;  %s7210_s12 = sphi %s7232_s12, %s13_s12  }
   0x2   : > { %p137_p1 = scmp.lt.s32.totalorder %s7210_s12, 3 }
   0x4   : > { %p138_p2 = pnand %p5190_p0, %p137_p1 }
   0x6   : > { %141 = sbr.rel (%p138_p2) target bundleno = 755 (0x2f3), region = 32 }
   0xd   : > { %v7094_v0 = vld [vmem:[%s8702_s1 + $0x20] sm:$0xff]   ;;  %p161_p3 = scmp.lt.s32.totalorder %s5186_s13, 1  ;;  %v7096_v2 = vld [vmem:[%s8702_s1 + $0x28] sm:$0xff]   ;;  %v7098_v4 = vld [vmem:[%s8702_s1 + $0x30] sm:$0xff]   ;;  %vm262_vm0 = vcmask 1046528   ;;  %vm375_vm1 = vcmask 523264  }
   0xe   : > { %v7095_v1 = vld [vmem:[%s8702_s1 + $0x180] sm:$0xff]   ;;  %5896 = vmatprep.subr.bf16.mxu1 %v7094_v0  ;;  %v7097_v3 = vld [vmem:[%s8702_s1 + $0x188] sm:$0xff]   ;;  %v7099_v5 = vld [vmem:[%s8702_s1 + $0x190] sm:$0xff]   ;;  %vm686_vm2 = vcmask 1045504   ;;  %vm962_vm3 = vcmask 1044480   ;;  %vm1238_vm4 = vcmask 1043456  }
   0xf   : > { %s8795_s13 = smov (!%p161_p3, %s5186_s13), 1  ;;  %6232 = vmatprep.subr.bf16.mxu0 %v7095_v1  ;;  %5897 = vmatpush3.bf16.msra.mxu1 %v7094_v0  ;;  %v7100_v6 = vld [vmem:[%s8702_s1 + $0x38] sm:$0xff]   ;;  %v7102_v31 = vld [vmem:[%s8702_s1] sm:$0xff]   ;;  %v7104_v46 = vld [vmem:[%s8702_s1 + $0x1a8] sm:$0xff]   ;;  %vm5121_vm5 = vcmask 522240  }
  0x10   : > { %6233 = vmatpush3.bf16.msra.mxu0 %v7095_v1  ;;  %5898 = vmatprep.subr.bf16.mxu1 %v7096_v2  ;;  %s7084_s24 = smul.u32 336, %s8795_s13  ;;  %v7101_v7 = vld [vmem:[%s8702_s1 + $0x198] sm:$0xff]   ;;  %v7103_v37 = vld [vmem:[%s8702_s1 + $0x1a0] sm:$0xff]  }
  0x11   : > { %6234 = vmatprep.subr.bf16.mxu0 %v7097_v3  ;;  %s7085_s7 = smul.u32 80, %s8795_s13 }
  0x12   : > { %s7267_s4 = scalar_lea.vmem %s8701_s0, %s7084_s24 }
  0x13   : > { %5899 = vmatpush3.bf16.msra.mxu1 %v7096_v2  ;;  %v7273_v8 = vld [vmem:[%s7267_s4] sm:$0xff]  ;;  %v7276_v9 = vld [vmem:[%s7267_s4 + $0x8] sm:$0xff]  ;;  %v7279_v10 = vld [vmem:[%s7267_s4 + $0x10] sm:$0xff]  ;;  %s8657_s10 = scalar_lea.vmem %s8704_s3, %s7085_s7 }
  0x14   : > { %6235 = vmatpush3.bf16.msra.mxu0 %v7097_v3  ;;  %5900 = vmatprep.subr.bf16.mxu1 %v7098_v4  ;;  %v263_v11 = vrot.slane %v7273_v8, 1  ;;  %v264_v12 = vrot.slane %v7276_v9, 1  ;;  %v266_v13 = vrot.slane %v7279_v10, 1  ;;  %v7285_v14 = vld [vmem:[%s7267_s4 + $0x30] sm:$0xff]  ;;  %v7288_v15 = vld [vmem:[%s7267_s4 + $0x38] sm:$0xff]  ;;  %v7291_v16 = vld [vmem:[%s7267_s4 + $0x40] sm:$0xff] }
  0x15   : > { %6236 = vmatprep.subr.bf16.mxu0 %v7099_v5  ;;  %v697_v17 = vrot.slane %v7285_v14, 2  ;;  %v698_v18 = vrot.slane %v7288_v15, 2  ;;  %v700_v19 = vrot.slane %v7291_v16, 2  ;;  %v7297_v20 = vld [vmem:[%s7267_s4 + $0x18] sm:$0xff]  ;;  %v7300_v21 = vld [vmem:[%s7267_s4 + $0x20] sm:$0xff]  ;;  %v7303_v22 = vld [vmem:[%s7267_s4 + $0x28] sm:$0xff] }
  0x16   : > { %v265_v23 = vsel %vm262_vm0, %v263_v11, %v264_v12  ;;  %v267_v24 = vsel %vm262_vm0, %v264_v12, %v266_v13  ;;  %v268_v25 = vrot.slane %v7297_v20, 1  ;;  %v269_v26 = vrot.slane %v7300_v21, 1  ;;  %v7316_v32 = vld [vmem:[%s7267_s4 + $0x48] sm:$0xff]  ;;  %v7319_v33 = vld [vmem:[%s7267_s4 + $0x50] sm:$0xff]  ;;  %v7325_v36 = vld [vmem:[%s7267_s4 + $0x58] sm:$0xff] }
  0x17   : > { %5901 = vmatpush3.bf16.msra.mxu1 %v7098_v4  ;;  %v333_v27 = vpack.c.bf16 %v267_v24, %v265_v23  ;;  %v699_v28 = vsel %vm686_vm2, %v697_v17, %v698_v18  ;;  %v701_v29 = vsel %vm686_vm2, %v698_v18, %v700_v19  ;;  %v271_v30 = vrot.slane %v7303_v22, 1  ;;  %v7341_v44 = vld [vmem:[%s7267_s4 + $0x60] sm:$0xff]  ;;  %v7351_v50 = vld [vmem:[%s7267_s4 + $0x68] sm:$0xff]  ;;  %v7355_v52 = vld [vmem:[%s7267_s4 + $0x70] sm:$0xff] }
  0x18   : > { %6237 = vmatpush3.bf16.msra.mxu0 %v7099_v5  ;;  %5902 = vmatprep.subr.bf16.mxu1 %v7100_v6  ;;  %v7321_v34 = vpack.c.bf16 %v701_v29, %v699_v28  ;;  %v270_v35 = vsel %vm262_vm0, %v268_v25, %v269_v26  ;;  %v702_v39 = vrot.slane %v7316_v32, 2  ;;  %v703_v40 = vrot.slane %v7319_v33, 2  ;;  %v7361_v56 = vld [vmem:[%s7267_s4 + $0x78] sm:$0xff]  ;;  %v7364_v57 = vld [vmem:[%s7267_s4 + $0x80] sm:$0xff]  ;;  %v7374_v62 = vld [vmem:[%s7267_s4 + $0x88] sm:$0xff] }
  0x19   : > { %6238 = vmatprep.subr.bf16.mxu0 %v7101_v7  ;;  %5904 = vmatprep.mubr.msk.bf16.mxu1 %vm375_vm1, %v333_v27  ;;  %v272_v38 = vsel %vm262_vm0, %v269_v26, %v271_v30  ;;  %v705_v42 = vrot.slane %v7325_v36, 2  ;;  %v981_v43 = vrot.slane %v7325_v36, 3  ;;  %v273_v47 = vrot.slane %v7285_v14, 1  ;;  %v7106_v3 = vld [vmem:[%s8702_s1 + $0x8] sm:$0xff]   ;;  %v7108_v18 = vld [vmem:[%s8702_s1 + $0x10] sm:$0xff]  }
  0x1a   : > { %6240 = vmatprep.mubr.msk.bf16.mxu0 %vm375_vm1, %v7321_v34  ;;  %v7336_v41 = vpack.c.bf16 %v272_v38, %v270_v35  ;;  %v704_v45 = vsel %vm686_vm2, %v702_v39, %v703_v40  ;;  %v274_v48 = vrot.slane %v7288_v15, 1  ;;  %v276_v49 = vrot.slane %v7291_v16, 1  ;;  %v7105_v25 = vld [vmem:[%s8702_s1 + $0x1b0] sm:$0xff]  }
  0x1b   : > { %5903 = vmatpush3.bf16.msra.mxu1 %v7100_v6  ;;  %v706_v51 = vsel %vm686_vm2, %v703_v40, %v705_v42  ;;  %v707_v53 = vrot.slane %v7341_v44, 2  ;;  %v708_v54 = vrot.slane %v7351_v50, 2  ;;  %v278_v55 = vrot.slane %v7316_v32, 1  ;;  %v7423_v40 = vld [vmem:[%s7267_s4 + $0x90] sm:$0xff]  ;;  %v7426_v42 = vld [vmem:[%s7267_s4 + $0x98] sm:$0xff] }
  0x1c   : > { %8746 = vst [vmem:[#allocation2_spill] sm:$0xff] %v7336_v41  ;;  %6239 = vmatpush3.bf16.msra.mxu0 %v7101_v7  ;;  %5924 = vmatprep.subr.bf16.mxu1 %v7102_v31  ;;  %v7368_v58 = vpack.c.bf16 %v706_v51, %v704_v45  ;;  %v275_v59 = vsel %vm262_vm0, %v273_v47, %v274_v48  ;;  %v710_v61 = vrot.slane %v7355_v52, 2  ;;  %v279_v1 = vrot.slane %v7319_v33, 1  ;;  %v7429_v45 = vld [vmem:[%s7267_s4 + $0xa0] sm:$0xff] }
  0x1d   : > { %6260 = vmatprep.subr.bf16.mxu0 %v7103_v37  ;;  %v277_v60 = vsel %vm262_vm0, %v274_v48, %v276_v49  ;;  %v709_v0 = vsel %vm686_vm2, %v707_v53, %v708_v54  ;;  %v281_v2 = vrot.slane %v7325_v36, 1  ;;  %v712_v5 = vrot.slane %v7361_v56, 2 }
  0x1e   : > { %5905 = vmatmul.mubr.msk.bf16.vlgmr.msra.gmra.mrb[0].mxu1 %vm375_vm1, %v7336_v41  ;;  %v7376_v63 = vpack.c.bf16 %v277_v60, %v275_v59  ;;  %v711_v4 = vsel %vm686_vm2, %v708_v54, %v710_v61  ;;  %v713_v6 = vrot.slane %v7364_v57, 2  ;;  %v715_v7 = vrot.slane %v7374_v62, 2  ;;  %v7110_v59 = vld [vmem:[%s8702_s1 + $0x18] sm:$0xff]  }
  0x1f   : > { %5925 = vmatpush3.bf16.msra.mxu1 %v7102_v31  ;;  %6241 = vmatmul.mubr.msk.bf16.vlgmr.msra.gmra.mrb[0].mxu0 %vm375_vm1, %v7368_v58  ;;  %v7392_v11 = vpack.c.bf16 %v711_v4, %v709_v0  ;;  %v280_v12 = vsel %vm262_vm0, %v278_v55, %v279_v1  ;;  %v282_v13 = vsel %vm262_vm0, %v279_v1, %v281_v2  ;;  %v283_v17 = vrot.slane %v7341_v44, 1  ;;  %v7107_v31 = vld [vmem:[%s8702_s1 + $0x1b8] sm:$0xff]   ;;  %v7451_v2 = vld [vmem:[%s7267_s4 + $0xa8] sm:$0xff] }
  0x20   : > { %8747 = vst [vmem:[#allocation3_spill] sm:$0xff] %v7376_v63  ;;  %6261 = vmatpush3.bf16.msra.mxu0 %v7103_v37  ;;  %5908 = vmatprep.mubr.msk.bf16.mxu1 %vm375_vm1, %v7376_v63  ;;  %v7400_v19 = vpack.c.bf16 %v282_v13, %v280_v12  ;;  %v714_v23 = vsel %vm686_vm2, %v712_v5, %v713_v6  ;;  %v284_v26 = vrot.slane %v7351_v50, 1  ;;  %v286_v28 = vrot.slane %v7355_v52, 1  ;;  %v7460_v5 = vld [vmem:[%s7267_s4 + $0xb0] sm:$0xff]  ;;  %v7582_v63 = vld [vmem:[%s7267_s4 + $0xf8] sm:$0xff] }
  0x21   : > { %6262 = vmatprep.subr.bf16.mxu0 %v7104_v46  ;;  %v716_v24 = vsel %vm686_vm2, %v713_v6, %v715_v7  ;;  %5926 = vmatprep.subr.bf16.mxu1 %v7106_v3  ;;  %v973_v29 = vrot.slane %v7285_v14, 3  ;;  %v974_v30 = vrot.slane %v7288_v15, 3  ;;  %v976_v37 = vrot.slane %v7291_v16, 3  ;;  %v7463_v6 = vld [vmem:[%s7267_s4 + $0xb8] sm:$0xff]  ;;  %v7109_v7 = vld [vmem:[%s8702_s1 + $0x1c0] sm:$0xff]  }
  0x22   : > { %8748 = vst [vmem:[#allocation4_spill] sm:$0xff] %v7400_v19  ;;  %6244 = vmatprep.mubr.msk.bf16.mxu0 %vm375_vm1, %v7392_v11  ;;  %v7410_v27 = vpack.c.bf16 %v716_v24, %v714_v23  ;;  %v285_v35 = vsel %vm262_vm0, %v283_v17, %v284_v26  ;;  %v288_v38 = vrot.slane %v7361_v56, 1  ;;  %v289_v39 = vrot.slane %v7364_v57, 1 }
  0x23   : > { %5927 = vmatpush3.bf16.msra.mxu1 %v7106_v3  ;;  %v287_v47 = vsel %vm262_vm0, %v284_v26, %v286_v28  ;;  %v975_v48 = vsel %vm962_vm3, %v973_v29, %v974_v30  ;;  %v291_v49 = vrot.slane %v7374_v62, 1  ;;  %v978_v51 = vrot.slane %v7316_v32, 3  ;;  %v7482_v28 = vld [vmem:[%s7267_s4 + $0xc0] sm:$0xff] }
  0x24   : > { %5928 = vmatprep.subr.bf16.mxu1 %v7108_v18  ;;  %6263 = vmatpush3.bf16.msra.mxu0 %v7104_v46  ;;  %v7437_v53 = vpack.c.bf16 %v287_v47, %v285_v35  ;;  %v977_v54 = vsel %vm962_vm3, %v974_v30, %v976_v37  ;;  %v290_v46 = vsel %vm262_vm0, %v288_v38, %v289_v39  ;;  %v979_v55 = vrot.slane %v7319_v33, 3  ;;  %v7493_v38 = vld [vmem:[%s7267_s4 + $0xd0] sm:$0xff] }
  0x25   : > { %6264 = vmatprep.subr.bf16.mxu0 %v7105_v25  ;;  %v7445_v60 = vpack.c.bf16 %v977_v54, %v975_v48  ;;  %v292_v61 = vsel %vm262_vm0, %v289_v39, %v291_v49  ;;  %v293_v0 = vrot.slane %v7423_v40, 1  ;;  %v294_v1 = vrot.slane %v7426_v42, 1  ;;  %v7498_v39 = vld [vmem:[%s8702_s1 + $0x40] sm:$0xff]  }
  0x26   : > { %5909 = vmatmul.mubr.msk.bf16.gmra.mrb[4].mxu1 %vm375_vm1, %v7400_v19  ;;  %8749 = vst [vmem:[#allocation5_spill] sm:$0xff] %v7437_v53  ;;  %v980_v3 = vsel %vm962_vm3, %v978_v51, %v979_v55  ;;  %v296_v4 = vrot.slane %v7429_v45, 1  ;;  %v982_v12 = vsel %vm962_vm3, %v979_v55, %v981_v43  ;;  %v983_v17 = vrot.slane %v7341_v44, 3  ;;  %v7485_v43 = vld [vmem:[%s7267_s4 + $0xc8] sm:$0xff] }
  0x27   : > { %5929 = vmatpush3.bf16.msra.mxu1 %v7108_v18  ;;  %6245 = vmatmul.mubr.msk.bf16.gmra.mrb[4].mxu0 %vm375_vm1, %v7410_v27  ;;  %v295_v13 = vsel %vm262_vm0, %v293_v0, %v294_v1  ;;  %v984_v18 = vrot.slane %v7351_v50, 3  ;;  %v7476_v23 = vpack.c.bf16 %v292_v61, %v290_v46  ;;  %v298_v26 = vrot.slane %v7451_v2, 1  ;;  %v7515_v0 = vld [vmem:[%s7267_s4 + $0xd8] sm:$0xff] }
  0x28   : > { %5912 = vmatprep.mubr.msk.bf16.mxu1 %vm375_vm1, %v7437_v53  ;;  %6265 = vmatpush3.bf16.msra.mxu0 %v7105_v25  ;;  %v297_v24 = vsel %vm262_vm0, %v294_v1, %v296_v4  ;;  %v986_v25 = vrot.slane %v7355_v52, 3  ;;  %v299_v35 = vrot.slane %v7460_v5, 1  ;;  %v301_v37 = vrot.slane %v7463_v6, 1 }
  0x29   : > { %6268 = vmatprep.mubr.msk.bf16.mxu0 %vm375_vm1, %v7445_v60  ;;  %6266 = vmatprep.subr.bf16.mxu0 %v7107_v31  ;;  %8750 = vst [vmem:[#allocation6_spill] sm:$0xff] %v7476_v23  ;;  %v7487_v29 = vpack.c.bf16 %v297_v24, %v295_v13  ;;  %v985_v30 = vsel %vm962_vm3, %v983_v17, %v984_v18  ;;  %v988_v49 = vrot.slane %v7361_v56, 3  ;;  %v989_v51 = vrot.slane %v7364_v57, 3  ;;  %v7532_v24 = vld [vmem:[%s7267_s4 + $0xe0] sm:$0xff] }
  0x2a   : > { %5930 = vmatprep.subr.bf16.mxu1 %v7110_v59  ;;  %v7500_v47 = vpack.c.bf16 %v982_v12, %v980_v3  ;;  %v987_v48 = vsel %vm962_vm3, %v984_v18, %v986_v25  ;;  %v991_v46 = vrot.slane %v7374_v62, 3  ;;  %v303_v55 = vrot.slane %v7482_v28, 1  ;;  %v7535_v25 = vld [vmem:[%s7267_s4 + $0xe8] sm:$0xff] }
  0x2b   : > { %8751 = vst [vmem:[#allocation7_spill] sm:$0xff] %v7487_v29  ;;  %5931 = vmatpush3.bf16.msra.mxu1 %v7110_v59  ;;  %v7505_v54 = vpack.c.bf16 %v987_v48, %v985_v30  ;;  %v304_v59 = vrot.slane %v7485_v43, 1  ;;  %v306_v61 = vrot.slane %v7493_v38, 1  ;;  %v300_v1 = vsel %vm262_vm0, %v298_v26, %v299_v35 }
  0x2c   : > { %6267 = vmatpush3.bf16.msra.mxu0 %v7107_v31  ;;  %5952 = vmatprep.subr.bf16.mxu1 %v7498_v39  ;;  %v7111_v31 = vld [vmem:[%s8702_s1 + $0x1c8] sm:$0xff]   ;;  %v302_v3 = vsel %vm262_vm0, %v299_v35, %v301_v37  ;;  %v993_v4 = vrot.slane %v7423_v40, 3  ;;  %v994_v12 = vrot.slane %v7426_v42, 3  ;;  %v996_v18 = vrot.slane %v7429_v45, 3 }
  0x2d   : > { %6288 = vmatprep.subr.bf16.mxu0 %v7109_v7  ;;  %v305_v13 = vsel %vm262_vm0, %v303_v55, %v304_v59  ;;  %v307_v17 = vsel %vm262_vm0, %v304_v59, %v306_v61  ;;  %v990_v26 = vsel %vm962_vm3, %v988_v49, %v989_v51  ;;  %v992_v30 = vsel %vm962_vm3, %v989_v51, %v991_v46  ;;  %v7113_v59 = vld [vmem:[%s8702_s1 + $0x1d0] sm:$0xff]  }
  0x2e   : > { %5913 = vmatmul.mubr.msk.bf16.gmra.mrb[8].mxu1 %vm375_vm1, %v7476_v23  ;;  %v7541_v35 = vpack.c.bf16 %v302_v3, %v300_v1  ;;  %v995_v37 = vsel %vm962_vm3, %v993_v4, %v994_v12  ;;  %v997_v48 = vsel %vm962_vm3, %v994_v12, %v996_v18  ;;  %v308_v55 = vrot.slane %v7515_v0, 1  ;;  %v7115_v18 = vld [vmem:[%s8702_s1 + $0x1d8] sm:$0xff]  }
  0x2f   : > { %5916 = vmatprep.mubr.msk.bf16.mxu1 %vm375_vm1, %v7487_v29  ;;  %6269 = vmatmul.mubr.msk.bf16.vlgmr.msra.gmra.mrb[0].mxu0 %vm375_vm1, %v7500_v47  ;;  %v7549_v61 = vpack.c.bf16 %v307_v17, %v305_v13  ;;  %v309_v49 = vrot.slane %v7532_v24, 1  ;;  %v311_v51 = vrot.slane %v7535_v25, 1  ;;  %v998_v46 = vrot.slane %v7451_v2, 3 }
  0x30   : > { %6272 = vmatprep.mubr.msk.bf16.mxu0 %vm375_vm1, %v7505_v54  ;;  %6289 = vmatpush3.bf16.msra.mxu0 %v7109_v7  ;;  %8752 = vst [vmem:[#allocation8_spill] sm:$0xff] %v7541_v35  ;;  %v7553_v7 = vpack.c.bf16 %v992_v30, %v990_v26  ;;  %v7556_v1 = vpack.c.bf16 %v997_v48, %v995_v37  ;;  %v999_v3 = vrot.slane %v7460_v5, 3  ;;  %v1001_v4 = vrot.slane %v7463_v6, 3  ;;  %v7575_v30 = vld [vmem:[%s7267_s4 + $0xf0] sm:$0xff] }
  0x31   : > { %6290 = vmatprep.subr.bf16.mxu0 %v7111_v31  ;;  %8753 = vst [vmem:[#allocation9_spill] sm:$0xff] %v7549_v61  ;;  %v1003_v12 = vrot.slane %v7482_v28, 3  ;;  %v1004_v13 = vrot.slane %v7485_v43, 3  ;;  %v1006_v17 = vrot.slane %v7493_v38, 3  ;;  %v312_v26 = vsel %vm262_vm0, %v309_v49, %v311_v51  ;;  %v7591_v51 = vld [vmem:[%s8702_s1 + $0x1e0] sm:$0xff]  }
  0x32   : > { %8754 = vst [vmem:[#allocation10_spill] sm:$0xff] %v7556_v1  ;;  %v1000_v37 = vsel %vm962_vm3, %v998_v46, %v999_v3  ;;  %v1002_v48 = vsel %vm962_vm3, %v999_v3, %v1001_v4  ;;  %v214_v46 = vpack.c.bf16 %v7276_v9, %v7273_v8  ;;  %v7596_v3 = vld [vmem:[%s7267_s4 + $0x100] sm:$0xff]  ;;  %v1008_v4 = vrot.slane %v7515_v0, 3 }
  0x33   : > { %v1257_v29 = vrot.slane %v7325_v36, 4  ;;  %v1249_v36 = vrot.slane %v7285_v14, 4  ;;  %v1252_v23 = vrot.slane %v7291_v16, 4  ;;  %v7116_v16 = vld [vmem:[%s8702_s1 + $0x50] sm:$0xff]   ;;  %v1274_v53 = vrot.slane %v7451_v2, 4 }
  0x34   : > { %6291 = vmatpush3.bf16.msra.mxu0 %v7111_v31  ;;  %v310_v31 = vsel %vm262_vm0, %v308_v55, %v309_v49  ;;  %v1005_v55 = vsel %vm962_vm3, %v1003_v12, %v1004_v13  ;;  %v1007_v49 = vsel %vm962_vm3, %v1004_v13, %v1006_v17  ;;  %v1009_v12 = vrot.slane %v7532_v24, 3 }
  0x35   : > { %6292 = vmatprep.subr.bf16.mxu0 %v7113_v59  ;;  %v7584_v41 = vpack.c.bf16 %v312_v26, %v310_v31  ;;  %v7602_v13 = vpack.c.bf16 %v1007_v49, %v1005_v55  ;;  %v1011_v17 = vrot.slane %v7535_v25, 3  ;;  %v2038_v31 = vrot.slane %v7575_v30, 3  ;;  %v7622_v49 = vld [vmem:[%s7267_s4 + $0x110] sm:$0xff] }
  0x36   : > { %5917 = vmatmul.mubr.msk.bf16.gmra.mrb[12].mxu1 %vm375_vm1, %v7541_v35  ;;  %v2039_v26 = vrot.slane %v7582_v63, 3 }
  0x37   : > { %5920 = vmatprep.mubr.msk.bf16.mxu1 %vm375_vm1, %v7549_v61  ;;  %6273 = vmatmul.mubr.msk.bf16.gmra.mrb[4].mxu0 %vm375_vm1, %v7553_v7  ;;  %8755 = vst [vmem:[#allocation11_spill] sm:$0xff] %v7584_v41  ;;  %8757 = vst [vmem:[#allocation13_spill] sm:$0xff] %v7602_v13  ;;  %v1012_v55 = vsel %vm962_vm3, %v1009_v12, %v1011_v17  ;;  %v7629_v61 = vpack.c.bf16 %v7300_v21, %v7297_v20  ;;  %v2915_v17 = vrot.slane %v7622_v49, 3 }
  0x38   : > { %6276 = vmatprep.mubr.msk.bf16.mxu0 %vm375_vm1, %v7556_v1  ;;  %6293 = vmatpush3.bf16.msra.mxu0 %v7113_v59  ;;  %v7598_v59 = vpack.c.bf16 %v1002_v48, %v1000_v37  ;;  %v2041_v37 = vrot.slane %v7596_v3, 3  ;;  %v7615_v48 = vld [vmem:[%s7267_s4 + $0x108] sm:$0xff]  ;;  %v1275_v1 = vrot.slane %v7460_v5, 4 }
  0x39   : > { %6294 = vmatprep.subr.bf16.mxu0 %v7115_v18  ;;  %8758 = vst [vmem:[#allocation14_spill] sm:$0xff] %v7629_v61 }
  0x3a   : > { %8756 = vst [vmem:[#allocation12_spill] sm:$0xff] %v7598_v59  ;;  %v2042_v35 = vsel %vm962_vm3, %v2039_v26, %v2041_v37  ;;  %v1250_v37 = vrot.slane %v7288_v15, 4 }
  0x3c   : > { %6295 = vmatpush3.bf16.msra.mxu0 %v7115_v18  ;;  %v1010_v18 = vsel %vm962_vm3, %v1008_v4, %v1009_v12  ;;  %v2914_v12 = vrot.slane %v7615_v48, 3 }
  0x3d   : > { %6316 = vmatprep.subr.bf16.mxu0 %v7591_v51  ;;  %v7638_v4 = vpack.c.bf16 %v1012_v55, %v1010_v18  ;;  %v1254_v18 = vrot.slane %v7316_v32, 4  ;;  %v1255_v55 = vrot.slane %v7319_v33, 4 }
  0x3e   : > { %5921 = vmatmul.mubr.msk.bf16.gmra.mrb[16].mxu1 %vm375_vm1, %v7584_v41  ;;  %v7625_v41 = vld [vmem:[%s7267_s4 + $0x118] sm:$0xff] }
  0x3f   : > { %5932 = vmatprep.mubr.msk.bf16.mxu1 %vm375_vm1, %v214_v46  ;;  %6277 = vmatmul.mubr.msk.bf16.gmra.mrb[8].mxu0 %vm375_vm1, %v7598_v59  ;;  %v2040_v46 = vsel %vm962_vm3, %v2038_v31, %v2039_v26  ;;  %8760 = vst [vmem:[#allocation16_spill] sm:$0xff] %v7638_v4  ;;  %v2917_v59 = vrot.slane %v7625_v41, 3  ;;  %v7114_v31 = vld [vmem:[%s8702_s1 + $0x48] sm:$0xff]  }
  0x40   : > { %6280 = vmatprep.mubr.msk.bf16.mxu0 %vm375_vm1, %v7602_v13  ;;  %v7636_v13 = vpack.c.bf16 %v7288_v15, %v7285_v14  ;;  %v7646_v26 = vpack.c.bf16 %v2042_v35, %v2040_v46  ;;  %v2916_v14 = vsel %vm962_vm3, %v2914_v12, %v2915_v17  ;;  %v1251_v35 = vsel %vm1238_vm4, %v1249_v36, %v1250_v37 }
  0x41   : > { %v2918_v15 = vsel %vm962_vm3, %v2915_v17, %v2917_v59  ;;  %v1253_v46 = vsel %vm1238_vm4, %v1250_v37, %v1252_v23  ;;  %v1259_v12 = vrot.slane %v7341_v44, 4  ;;  %v1256_v59 = vsel %vm1238_vm4, %v1254_v18, %v1255_v55 }
  0x42   : > { %8759 = vst [vmem:[#allocation15_spill] sm:$0xff] %v7636_v13  ;;  %8761 = vst [vmem:[#allocation17_spill] sm:$0xff] %v7646_v26  ;;  %v1258_v17 = vsel %vm1238_vm4, %v1255_v55, %v1257_v29  ;;  %v7691_v23 = vpack.c.bf16 %v7426_v42, %v7423_v40  ;;  %v1265_v29 = vrot.slane %v7364_v57, 4  ;;  %v718_v37 = vrot.slane %v7426_v42, 2 }
  0x43   : > { %v7701_v36 = vpack.c.bf16 %v1258_v17, %v1256_v59  ;;  %v720_v18 = vrot.slane %v7429_v45, 2  ;;  %v722_v55 = vrot.slane %v7451_v2, 2  ;;  %v725_v59 = vrot.slane %v7463_v6, 2 }
  0x45   : > { %8765 = vst [vmem:[#allocation21_spill] sm:$0xff] %v7701_v36 }
  0x46   : > { %5933 = vmatmul.mubr.msk.bf16.vlgmr.msra.gmra.mrb[0].mxu1 %vm375_vm1, %v7629_v61  ;;  %v1262_v61 = vrot.slane %v7355_v52, 4  ;;  %v1264_v52 = vrot.slane %v7361_v56, 4 }
  0x47   : > { %5953 = vmatpush3.bf16.msra.mxu1 %v7498_v39  ;;  %5936 = vmatprep.mubr.msk.bf16.mxu1 %vm375_vm1, %v7636_v13  ;;  %v7669_v39 = vpack.c.bf16 %v7319_v33, %v7316_v32  ;;  %v1260_v13 = vrot.slane %v7351_v50, 4  ;;  %v7683_v32 = vpack.c.bf16 %v7351_v50, %v7341_v44  ;;  %v7687_v33 = vpack.c.bf16 %v7364_v57, %v7361_v56 }
  0x48   : > { %6281 = vmatmul.mubr.msk.bf16.gmra.mrb[12].mxu0 %vm375_vm1, %v7638_v4  ;;  %5954 = vmatprep.subr.bf16.mxu1 %v7114_v31  ;;  %v7679_v4 = vpack.c.bf16 %v2918_v15, %v2916_v14  ;;  %v717_v44 = vrot.slane %v7423_v40, 2  ;;  %v7699_v50 = vpack.c.bf16 %v1253_v46, %v1251_v35  ;;  %v723_v14 = vrot.slane %v7460_v5, 2 }
  0x49   : > { %6284 = vmatprep.mubr.msk.bf16.mxu0 %vm375_vm1, %v7646_v26  ;;  %8762 = vst [vmem:[#allocation18_spill] sm:$0xff] %v7669_v39  ;;  %v1261_v56 = vsel %vm1238_vm4, %v1259_v12, %v1260_v13  ;;  %v1263_v57 = vsel %vm1238_vm4, %v1260_v13, %v1262_v61  ;;  %v1267_v15 = vrot.slane %v7374_v62, 4  ;;  %v721_v46 = vsel %vm686_vm2, %v718_v37, %v720_v18  ;;  %v7722_v61 = vld [vmem:[%s8702_s1 + $0x60] sm:$0xff]  }
  0x4a   : > { %8763 = vst [vmem:[#allocation19_spill] sm:$0xff] %v7679_v4  ;;  %8764 = vst [vmem:[#allocation20_spill] sm:$0xff] %v7699_v50  ;;  %v719_v35 = vsel %vm686_vm2, %v717_v44, %v718_v37  ;;  %v727_v62 = vrot.slane %v7482_v28, 2  ;;  %v728_v12 = vrot.slane %v7485_v43, 2  ;;  %v726_v17 = vsel %vm686_vm2, %v723_v14, %v725_v59 }
  0x4b   : > { %5955 = vmatpush3.bf16.msra.mxu1 %v7114_v31  ;;  %v7118_v31 = vld [vmem:[%s8702_s1 + $0x58] sm:$0xff]   ;;  %v7724_v13 = vpack.c.bf16 %v721_v46, %v719_v35  ;;  %v730_v44 = vrot.slane %v7493_v38, 2  ;;  %v732_v37 = vrot.slane %v7515_v0, 2  ;;  %v733_v18 = vrot.slane %v7532_v24, 2 }
  0x4c   : > { %5956 = vmatprep.subr.bf16.mxu1 %v7116_v16  ;;  %v1269_v35 = vrot.slane %v7423_v40, 4  ;;  %v735_v26 = vrot.slane %v7535_v25, 2  ;;  %v7119_v40 = vld [vmem:[%s8702_s1 + $0x1e8] sm:$0xff]  }
  0x4d   : > { %v734_v59 = vsel %vm686_vm2, %v732_v37, %v733_v18  ;;  %v1279_v37 = vrot.slane %v7482_v28, 4 }
  0x4e   : > { %5937 = vmatmul.mubr.msk.bf16.gmra.mrb[4].mxu1 %vm375_vm1, %v7669_v39 }
  0x4f   : > { %5940 = vmatprep.mubr.msk.bf16.mxu1 %vm375_vm1, %v7683_v32  ;;  %5957 = vmatpush3.bf16.msra.mxu1 %v7116_v16  ;;  %v724_v16 = vsel %vm686_vm2, %v722_v55, %v723_v14  ;;  %v729_v55 = vsel %vm686_vm2, %v727_v62, %v728_v12  ;;  %v731_v14 = vsel %vm686_vm2, %v728_v12, %v730_v44  ;;  %v687_v44 = vrot.slane %v7273_v8, 2 }
  0x50   : > { %6285 = vmatmul.mubr.msk.bf16.gmra.mrb[16].mxu0 %vm375_vm1, %v7679_v4  ;;  %5958 = vmatprep.subr.bf16.mxu1 %v7118_v31  ;;  %v7736_v46 = vpack.c.bf16 %v726_v17, %v724_v16  ;;  %v1270_v4 = vrot.slane %v7426_v42, 4  ;;  %v7750_v16 = vpack.c.bf16 %v731_v14, %v729_v55  ;;  %v736_v42 = vsel %vm686_vm2, %v733_v18, %v735_v26  ;;  %v7121_v18 = vld [vmem:[%s8702_s1 + $0x1f0] sm:$0xff]  }
  0x51   : > { %6296 = vmatprep.mubr.msk.bf16.mxu0 %vm375_vm1, %v7699_v50  ;;  %v1272_v50 = vrot.slane %v7429_v45, 4  ;;  %v7755_v45 = vpack.c.bf16 %v736_v42, %v734_v59  ;;  %v7759_v62 = vpack.c.bf16 %v7582_v63, %v7575_v30  ;;  %v7765_v12 = vpack.c.bf16 %v7460_v5, %v7451_v2 }
  0x52   : > { %v7769_v17 = vpack.c.bf16 %v7622_v49, %v7615_v48  ;;  %v1266_v26 = vsel %vm1238_vm4, %v1264_v52, %v1265_v29  ;;  %v688_v2 = vrot.slane %v7276_v9, 2  ;;  %v690_v5 = vrot.slane %v7279_v10, 2 }
  0x53   : > { %5959 = vmatpush3.bf16.msra.mxu1 %v7118_v31  ;;  %v7753_v31 = vpack.c.bf16 %v1263_v57, %v1261_v56  ;;  %v1268_v56 = vsel %vm1238_vm4, %v1265_v29, %v1267_v15  ;;  %v1277_v57 = vrot.slane %v7463_v6, 4  ;;  %v1686_v52 = vrot.slane %v7575_v30, 1 }
  0x54   : > { %5980 = vmatprep.subr.bf16.mxu1 %v7722_v61  ;;  %v1280_v8 = vrot.slane %v7485_v43, 4  ;;  %v1687_v6 = vrot.slane %v7582_v63, 1  ;;  %v1689_v9 = vrot.slane %v7596_v3, 1  ;;  %v2562_v10 = vrot.slane %v7615_v48, 1 }
  0x55   : > { %8766 = vst [vmem:[#allocation22_spill] sm:$0xff] %v7753_v31  ;;  %v1271_v29 = vsel %vm1238_vm4, %v1269_v35, %v1270_v4  ;;  %v1273_v15 = vsel %vm1238_vm4, %v1270_v4, %v1272_v50  ;;  %v1282_v55 = vrot.slane %v7493_v38, 4  ;;  %v2563_v14 = vrot.slane %v7622_v49, 1  ;;  %v7123_v4 = vld [vmem:[%s8702_s1 + $0x1f8] sm:$0xff]  }
  0x56   : > { %5941 = vmatmul.mubr.msk.bf16.gmra.mrb[8].mxu1 %vm375_vm1, %v7687_v33  ;;  %v7797_v59 = vpack.c.bf16 %v1268_v56, %v1266_v26  ;;  %v1688_v42 = vsel %vm262_vm0, %v1686_v52, %v1687_v6  ;;  %v2565_v35 = vrot.slane %v7625_v41, 1  ;;  %v7813_v26 = vpack.c.bf16 %v1273_v15, %v1271_v29 }
  0x57   : > { %5944 = vmatprep.mubr.msk.bf16.mxu1 %vm375_vm1, %v7691_v23  ;;  %v2564_v38 = vsel %vm262_vm0, %v2562_v10, %v2563_v14  ;;  %v691_v56 = vsel %vm686_vm2, %v688_v2, %v690_v5  ;;  %v7841_v5 = vpack.c.bf16 %v7532_v24, %v7515_v0  ;;  %v1283_v10 = vsel %vm1238_vm4, %v1280_v8, %v1282_v55 }
  0x58   : > { %6297 = vmatmul.mubr.msk.bf16.vlgmr.msra.gmra.mrb[0].mxu0 %vm375_vm1, %v7701_v36  ;;  %v692_v36 = vrot.slane %v7297_v20, 2  ;;  %v2566_v20 = vsel %vm262_vm0, %v2563_v14, %v2565_v35  ;;  %v2214_v29 = vrot.slane %v7575_v30, 4  ;;  %v1862_v15 = vrot.slane %v7575_v30, 2 }
  0x59   : > { %6300 = vmatprep.mubr.msk.bf16.mxu0 %vm375_vm1, %v7753_v31  ;;  %6317 = vmatpush3.bf16.msra.mxu0 %v7591_v51  ;;  %v7801_v51 = vpack.c.bf16 %v7485_v43, %v7482_v28  ;;  %v1690_v31 = vsel %vm262_vm0, %v1687_v6, %v1689_v9  ;;  %v693_v28 = vrot.slane %v7300_v21, 2  ;;  %v1284_v43 = vrot.slane %v7515_v0, 4  ;;  %v7833_v6 = vld [vmem:[%s8702_s1 + $0x200] sm:$0xff]  }
  0x5a   : > { %6318 = vmatprep.subr.bf16.mxu0 %v7119_v40  ;;  %v7809_v50 = vpack.c.bf16 %v1690_v31, %v1688_v42  ;;  %v689_v31 = vsel %vm686_vm2, %v687_v44, %v688_v2  ;;  %v7824_v52 = vpack.c.bf16 %v2566_v20, %v2564_v38  ;;  %v1285_v21 = vrot.slane %v7532_v24, 4 }
  0x5b   : > { %v1276_v44 = vsel %vm1238_vm4, %v1274_v53, %v1275_v1  ;;  %v1278_v2 = vsel %vm1238_vm4, %v1275_v1, %v1277_v57  ;;  %v757_v9 = vpack.c.bf16 %v691_v56, %v689_v31  ;;  %v1863_v14 = vrot.slane %v7582_v63, 2 }
  0x5c   : > { %v1865_v53 = vrot.slane %v7596_v3, 2  ;;  %v7849_v1 = vpack.c.bf16 %v1278_v2, %v1276_v44  ;;  %v694_v0 = vsel %vm686_vm2, %v692_v36, %v693_v28  ;;  %v8767_v30 = vrot.slane %v7303_v22, 2 }
  0x5d   : > { %6319 = vmatpush3.bf16.msra.mxu0 %v7119_v40  ;;  %v1287_v40 = vrot.slane %v7535_v25, 4  ;;  %v1281_v25 = vsel %vm1238_vm4, %v1279_v37, %v1280_v8  ;;  %v1864_v24 = vsel %vm686_vm2, %v1862_v15, %v1863_v14  ;;  %v2215_v8 = vrot.slane %v7582_v63, 4  ;;  %v7129_v15 = vld [vmem:[%s8702_s1 + $0x210] sm:$0xff]  }
  0x5e   : > { %5945 = vmatmul.mubr.msk.bf16.gmra.mrb[12].mxu1 %vm375_vm1, %v7765_v12  ;;  %6320 = vmatprep.subr.bf16.mxu0 %v7121_v18  ;;  %v7851_v57 = vpack.c.bf16 %v1283_v10, %v1281_v25  ;;  %v1866_v37 = vsel %vm686_vm2, %v1863_v14, %v1865_v53  ;;  %v2217_v55 = vrot.slane %v7596_v3, 4  ;;  %v2738_v36 = vrot.slane %v7615_v48, 2  ;;  %v7128_v10 = vld [vmem:[%s8702_s1 + $0x80] sm:$0xff]  }
  0x5f   : > { %5948 = vmatprep.mubr.msk.bf16.mxu1 %vm375_vm1, %v7801_v51  ;;  %v7864_v42 = vpack.c.bf16 %v1866_v37, %v1864_v24  ;;  %v2741_v22 = vrot.slane %v7625_v41, 2  ;;  %v1286_v3 = vsel %vm1238_vm4, %v1284_v43, %v1285_v21  ;;  %v1288_v38 = vsel %vm1238_vm4, %v1285_v21, %v1287_v40  ;;  %v7122_v43 = vld [vmem:[%s8702_s1 + $0x68] sm:$0xff]   ;;  %v7940_v14 = vld [vmem:[%s7267_s4] sm:$0xff]  ;;  %v7948_v37 = vld [vmem:[%s7267_s4 + $0x10] sm:$0xff] }
  0x60   : > { %6301 = vmatmul.mubr.msk.bf16.gmra.mrb[4].mxu0 %vm375_vm1, %v7797_v59  ;;  %v2216_v35 = vsel %vm1238_vm4, %v2214_v29, %v2215_v8  ;;  %v3090_v56 = vrot.slane %v7615_v48, 4  ;;  %v3091_v44 = vrot.slane %v7622_v49, 4  ;;  %v3093_v2 = vrot.slane %v7625_v41, 4  ;;  %v7124_v41 = vld [vmem:[%s8702_s1 + $0x70] sm:$0xff]   ;;  %v7127_v29 = vld [vmem:[%s8702_s1 + $0x208] sm:$0xff]  }
  0x61   : > { %6304 = vmatprep.mubr.msk.bf16.mxu0 %vm375_vm1, %v7813_v26  ;;  %6321 = vmatpush3.bf16.msra.mxu0 %v7121_v18  ;;  %v696_v18 = vsel %vm686_vm2, %v693_v28, %v8767_v30  ;;  %v2218_v28 = vsel %vm1238_vm4, %v2215_v8, %v2217_v55  ;;  %v7890_v21 = vpack.c.bf16 %v1288_v38, %v1286_v3  ;;  %v963_v53 = vrot.slane %v7940_v14, 3  ;;  %v7133_v55 = vld [vmem:[%s8702_s1 + $0x220] sm:$0xff]   ;;  %v7972_v3 = vld [vmem:[%s7267_s4 + $0x18] sm:$0xff] }
  0x62   : > { %6322 = vmatprep.subr.bf16.mxu0 %v7123_v4  ;;  %v7874_v63 = vpack.c.bf16 %v696_v18, %v694_v0  ;;  %v7892_v40 = vpack.c.bf16 %v2218_v28, %v2216_v35  ;;  %v3092_v48 = vsel %vm1238_vm4, %v3090_v56, %v3091_v44  ;;  %v7944_v0 = vld [vmem:[%s7267_s4 + $0x8] sm:$0xff]  ;;  %v966_v30 = vrot.slane %v7948_v37, 3  ;;  %v7976_v35 = vld [vmem:[%s7267_s4 + $0x20] sm:$0xff] }
  0x63   : > { %v964_v24 = vrot.slane %v7944_v0, 3  ;;  %v968_v38 = vrot.slane %v7972_v3, 3  ;;  %v969_v28 = vrot.slane %v7976_v35, 3 }
  0x65   : > { %6323 = vmatpush3.bf16.msra.mxu0 %v7123_v4  ;;  %v2739_v4 = vrot.slane %v7622_v49, 2  ;;  %v3094_v49 = vsel %vm1238_vm4, %v3091_v44, %v3093_v2  ;;  %v965_v18 = vsel %vm962_vm3, %v963_v53, %v964_v24  ;;  %v967_v8 = vsel %vm962_vm3, %v964_v24, %v966_v30  ;;  %v7130_v44 = vld [vmem:[%s8702_s1 + $0x88] sm:$0xff]   ;;  %v7132_v2 = vld [vmem:[%s8702_s1 + $0x90] sm:$0xff]   ;;  %v8771_v53 = vld [vmem:[#allocation6_spill] sm:$0xff] }
  0x66   : > { %5949 = vmatmul.mubr.msk.bf16.gmra.mrb[16].mxu1 %vm375_vm1, %v7841_v5  ;;  %6344 = vmatprep.subr.bf16.mxu0 %v7833_v6  ;;  %v7911_v25 = vpack.c.bf16 %v3094_v49, %v3092_v48  ;;  %v7134_v49 = vld [vmem:[%s8702_s1 + $0x98] sm:$0xff]   ;;  %v7137_v24 = vld [vmem:[%s8702_s1 + $0x230] sm:$0xff]   ;;  %v1239_v30 = vrot.slane %v7940_v14, 4 }
  0x67   : > { %5960 = vmatprep.mubr.msk.bf16.mxu1 %vm375_vm1, %v757_v9  ;;  %v2740_v20 = vsel %vm686_vm2, %v2738_v36, %v2739_v4  ;;  %v2742_v31 = vsel %vm686_vm2, %v2739_v4, %v2741_v22  ;;  %v7968_v36 = vld [vmem:[%s7267_s4 + $0x28] sm:$0xff]  ;;  %v1033_v22 = vpack.c.bf16 %v967_v8, %v965_v18  ;;  %v1242_v18 = vrot.slane %v7948_v37, 4  ;;  %v8772_v8 = vld [vmem:[#allocation12_spill] sm:$0xff] }
  0x68   : > { %6305 = vmatmul.mubr.msk.bf16.gmra.mrb[8].mxu0 %vm375_vm1, %v7849_v1  ;;  %v7888_v9 = vpack.c.bf16 %v2742_v31, %v2740_v20  ;;  %v971_v4 = vrot.slane %v7968_v36, 3  ;;  %v970_v20 = vsel %vm962_vm3, %v968_v38, %v969_v28  ;;  %v8775_v37 = vld [vmem:[#allocation8_spill] sm:$0xff]  ;;  %v7141_v38 = vld [vmem:[%s8702_s1 + $0x240] sm:$0xff]  }
  0x69   : > { %6308 = vmatprep.mubr.msk.bf16.mxu0 %vm375_vm1, %v7851_v57 }
  0x6a   : > { %8768 = vst [vmem:[#allocation23_spill] sm:$0xff] %v7888_v9  ;;  %v972_v31 = vsel %vm962_vm3, %v969_v28, %v971_v4  ;;  %v8773_v4 = vld [vmem:[#allocation13_spill] sm:$0xff]  ;;  %v1247_v28 = vrot.slane %v7968_v36, 4  ;;  %v8778_v36 = vld [vmem:[#allocation11_spill] sm:$0xff] }
  0x6b   : > { %v7988_v56 = vpack.c.bf16 %v972_v31, %v970_v20  ;;  %v1244_v31 = vrot.slane %v7972_v3, 4 }
  0x6e   : > { %5961 = vmatmul.mubr.msk.bf16.vlgmr.msra.gmra.mrb[0].mxu1 %vm375_vm1, %v7874_v63 }
  0x6f   : > { %5981 = vmatpush3.bf16.msra.mxu1 %v7722_v61  ;;  %5964 = vmatprep.mubr.msk.bf16.mxu1 %vm375_vm1, %v7321_v34  ;;  %v7126_v61 = vld [vmem:[%s8702_s1 + $0x78] sm:$0xff]  }
  0x70   : > { %6309 = vmatmul.mubr.msk.bf16.gmra.mrb[12].mxu0 %vm375_vm1, %v7890_v21  ;;  %5982 = vmatprep.subr.bf16.mxu1 %v7122_v43 }
  0x71   : > { %6312 = vmatprep.mubr.msk.bf16.mxu0 %vm375_vm1, %v7892_v40 }
  0x73   : > { %5983 = vmatpush3.bf16.msra.mxu1 %v7122_v43  ;;  %v8005_v43 = vld [vmem:[%s7267_s4 + $0x120] sm:$0xff] }
  0x74   : > { %5984 = vmatprep.subr.bf16.mxu1 %v7124_v41 }
  0x76   : > { %5965 = vmatmul.mubr.msk.bf16.gmra.mrb[4].mxu1 %vm375_vm1, %v7368_v58 }
  0x77   : > { %5968 = vmatprep.mubr.msk.bf16.mxu1 %vm375_vm1, %v7392_v11  ;;  %5985 = vmatpush3.bf16.msra.mxu1 %v7124_v41  ;;  %v8008_v41 = vld [vmem:[%s7267_s4 + $0x128] sm:$0xff] }
  0x78   : > { %6313 = vmatmul.mubr.msk.bf16.gmra.mrb[16].mxu0 %vm375_vm1, %v7911_v25  ;;  %5986 = vmatprep.subr.bf16.mxu1 %v7126_v61  ;;  %v8012_v48 = vpack.c.bf16 %v8008_v41, %v8005_v43 }
  0x79   : > { %6324 = vmatprep.mubr.msk.bf16.mxu0 %vm375_vm1, %v7669_v39 }
  0x7b   : > { %5987 = vmatpush3.bf16.msra.mxu1 %v7126_v61  ;;  %v7136_v61 = vld [vmem:[%s8702_s1 + $0xa0] sm:$0xff]  }
  0x7c   : > { %6008 = vmatprep.subr.bf16.mxu1 %v7128_v10 }
  0x7e   : > { %5969 = vmatmul.mubr.msk.bf16.gmra.mrb[8].mxu1 %vm375_vm1, %v7410_v27 }
  0x7f   : > { %5972 = vmatprep.mubr.msk.bf16.mxu1 %vm375_vm1, %v7724_v13 }
  0x80   : > { %6325 = vmatmul.mubr.msk.bf16.vlgmr.msra.gmra.mrb[0].mxu0 %vm375_vm1, %v7683_v32 }
  0x81   : > { %6328 = vmatprep.mubr.msk.bf16.mxu0 %vm375_vm1, %v7687_v33  ;;  %6345 = vmatpush3.bf16.msra.mxu0 %v7833_v6  ;;  %v7131_v6 = vld [vmem:[%s8702_s1 + $0x218] sm:$0xff]  }
  0x82   : > { %6346 = vmatprep.subr.bf16.mxu0 %v7127_v29 }
  0x85   : > { %6347 = vmatpush3.bf16.msra.mxu0 %v7127_v29  ;;  %v8769_v29 = vld [vmem:[#allocation10_spill] sm:$0xff] }
  0x86   : > { %5973 = vmatmul.mubr.msk.bf16.gmra.mrb[12].mxu1 %vm375_vm1, %v7736_v46  ;;  %6348 = vmatprep.subr.bf16.mxu0 %v7129_v15 }
  0x87   : > { %5976 = vmatprep.mubr.msk.bf16.mxu1 %vm375_vm1, %v7750_v16 }
  0x88   : > { %6329 = vmatmul.mubr.msk.bf16.gmra.mrb[4].mxu0 %vm375_vm1, %v7691_v23 }
  0x89   : > { %6332 = vmatprep.mubr.msk.bf16.mxu0 %vm375_vm1, %v7765_v12  ;;  %6349 = vmatpush3.bf16.msra.mxu0 %v7129_v15  ;;  %v8770_v15 = vld [vmem:[#allocation5_spill] sm:$0xff] }
  0x8a   : > { %6350 = vmatprep.subr.bf16.mxu0 %v7131_v6 }
  0x8d   : > { %6351 = vmatpush3.bf16.msra.mxu0 %v7131_v6  ;;  %v1240_v6 = vrot.slane %v7944_v0, 4 }
  0x8e   : > { %5977 = vmatmul.mubr.msk.bf16.gmra.mrb[16].mxu1 %vm375_vm1, %v7755_v45  ;;  %6372 = vmatprep.subr.bf16.mxu0 %v7133_v55 }
  0x8f   : > { %5988 = vmatprep.mubr.msk.bf16.mxu1 %vm375_vm1, %v1033_v22  ;;  %v8774_v22 = vld [vmem:[#allocation7_spill] sm:$0xff]  ;;  %v1241_v14 = vsel %vm1238_vm4, %v1239_v30, %v1240_v6  ;;  %v1243_v0 = vsel %vm1238_vm4, %v1240_v6, %v1242_v18  ;;  %v3438_v6 = vrot.slane %v8005_v43, 1  ;;  %v3439_v18 = vrot.slane %v8008_v41, 1 }
  0x90   : > { %6333 = vmatmul.mubr.msk.bf16.gmra.mrb[8].mxu0 %vm375_vm1, %v7801_v51  ;;  %v1309_v20 = vpack.c.bf16 %v1243_v0, %v1241_v14  ;;  %v7138_v30 = vld [vmem:[%s8702_s1 + $0xa8] sm:$0xff]   ;;  %v8779_v14 = vld [vmem:[#allocation20_spill] sm:$0xff] }
  0x91   : > { %6336 = vmatprep.mubr.msk.bf16.mxu0 %vm375_vm1, %v7841_v5  ;;  %v7140_v0 = vld [vmem:[%s8702_s1 + $0xb0] sm:$0xff]  }
  0x96   : > { %5989 = vmatmul.mubr.msk.bf16.vlgmr.msra.gmra.mrb[0].mxu1 %vm375_vm1, %v7988_v56 }
  0x97   : > { %6009 = vmatpush3.bf16.msra.mxu1 %v7128_v10  ;;  %5992 = vmatprep.mubr.msk.bf16.mxu1 %vm375_vm1, %v7445_v60  ;;  %v7135_v10 = vld [vmem:[%s8702_s1 + $0x228] sm:$0xff]  }
  0x98   : > { %6337 = vmatmul.mubr.msk.bf16.gmra.mrb[12].mxu0 %vm375_vm1, %v7759_v62  ;;  %6010 = vmatprep.subr.bf16.mxu1 %v7130_v44 }
  0x99   : > { %6340 = vmatprep.mubr.msk.bf16.mxu0 %vm375_vm1, %v7769_v17 }
  0x9b   : > { %6011 = vmatpush3.bf16.msra.mxu1 %v7130_v44  ;;  %v1245_v44 = vrot.slane %v7976_v35, 4  ;;  %v8076_v35 = vld [vmem:[%s7267_s4 + $0x130] sm:$0xff] }
  0x9c   : > { %6012 = vmatprep.subr.bf16.mxu1 %v7132_v2 }
  0x9e   : > { %5993 = vmatmul.mubr.msk.bf16.gmra.mrb[4].mxu1 %vm375_vm1, %v7500_v47 }
  0x9f   : > { %5996 = vmatprep.mubr.msk.bf16.mxu1 %vm375_vm1, %v7505_v54  ;;  %6013 = vmatpush3.bf16.msra.mxu1 %v7132_v2  ;;  %v8776_v2 = vld [vmem:[#allocation16_spill] sm:$0xff] }
  0xa0   : > { %6341 = vmatmul.mubr.msk.bf16.gmra.mrb[16].mxu0 %vm375_vm1, %v8012_v48  ;;  %6014 = vmatprep.subr.bf16.mxu1 %v7134_v49 }
  0xa1   : > { %6352 = vmatprep.mubr.msk.bf16.mxu0 %vm375_vm1, %v7400_v19 }
  0xa3   : > { %6015 = vmatpush3.bf16.msra.mxu1 %v7134_v49  ;;  %v1246_v49 = vsel %vm1238_vm4, %v1244_v31, %v1245_v44  ;;  %v7142_v31 = vld [vmem:[%s8702_s1 + $0xb8] sm:$0xff]  }
  0xa4   : > { %6036 = vmatprep.subr.bf16.mxu1 %v7136_v61 }
  0xa6   : > { %5997 = vmatmul.mubr.msk.bf16.gmra.mrb[8].mxu1 %vm375_vm1, %v7553_v7 }
  0xa7   : > { %6000 = vmatprep.mubr.msk.bf16.mxu1 %vm375_vm1, %v8769_v29 }
  0xa8   : > { %6353 = vmatmul.mubr.msk.bf16.vlgmr.msra.gmra.mrb[0].mxu0 %vm375_vm1, %v8770_v15 }
  0xa9   : > { %6356 = vmatprep.mubr.msk.bf16.mxu0 %vm375_vm1, %v8771_v53  ;;  %6373 = vmatpush3.bf16.msra.mxu0 %v7133_v55  ;;  %v7139_v55 = vld [vmem:[%s8702_s1 + $0x238] sm:$0xff]  }
  0xaa   : > { %6374 = vmatprep.subr.bf16.mxu0 %v7135_v10 }
  0xad   : > { %6375 = vmatpush3.bf16.msra.mxu0 %v7135_v10  ;;  %v1248_v10 = vsel %vm1238_vm4, %v1245_v44, %v1247_v28  ;;  %v3440_v28 = vsel %vm262_vm0, %v3438_v6, %v3439_v18  ;;  %v8780_v44 = vld [vmem:[#allocation21_spill] sm:$0xff]  ;;  %v7145_v6 = vld [vmem:[%s8702_s1 + $0x250] sm:$0xff]  }
  0xae   : > { %6001 = vmatmul.mubr.msk.bf16.gmra.mrb[12].mxu1 %vm375_vm1, %v8772_v8  ;;  %6376 = vmatprep.subr.bf16.mxu0 %v7137_v24  ;;  %v8073_v3 = vpack.c.bf16 %v1248_v10, %v1246_v49  ;;  %v8781_v49 = vld [vmem:[#allocation22_spill] sm:$0xff] }
  0xaf   : > { %6004 = vmatprep.mubr.msk.bf16.mxu1 %vm375_vm1, %v8773_v4  ;;  %v7144_v10 = vld [vmem:[%s8702_s1 + $0xc0] sm:$0xff]  }
  0xb0   : > { %6357 = vmatmul.mubr.msk.bf16.gmra.mrb[4].mxu0 %vm375_vm1, %v8774_v22 }
  0xb1   : > { %6360 = vmatprep.mubr.msk.bf16.mxu0 %vm375_vm1, %v8775_v37  ;;  %6377 = vmatpush3.bf16.msra.mxu0 %v7137_v24  ;;  %v8777_v24 = vld [vmem:[#allocation9_spill] sm:$0xff] }
  0xb2   : > { %6378 = vmatprep.subr.bf16.mxu0 %v7139_v55 }
  0xb5   : > { %6379 = vmatpush3.bf16.msra.mxu0 %v7139_v55  ;;  %v3441_v55 = vrot.slane %v8076_v35, 1 }
  0xb6   : > { %6005 = vmatmul.mubr.msk.bf16.gmra.mrb[16].mxu1 %vm375_vm1, %v8776_v2  ;;  %6400 = vmatprep.subr.bf16.mxu0 %v7141_v38 }
  0xb7   : > { %6016 = vmatprep.mubr.msk.bf16.mxu1 %vm375_vm1, %v1309_v20  ;;  %v3442_v20 = vsel %vm262_vm0, %v3439_v18, %v3441_v55  ;;  %v7147_v18 = vld [vmem:[%s8702_s1 + $0x258] sm:$0xff]   ;;  %v8782_v55 = vld [vmem:[#allocation14_spill] sm:$0xff] }
  0xb8   : > { %6361 = vmatmul.mubr.msk.bf16.gmra.mrb[8].mxu0 %vm375_vm1, %v8777_v24 }
  0xb9   : > { %6364 = vmatprep.mubr.msk.bf16.mxu0 %vm375_vm1, %v8778_v36 }
  0xbe   : > { %6017 = vmatmul.mubr.msk.bf16.vlgmr.msra.gmra.mrb[0].mxu1 %vm375_vm1, %v8073_v3 }
  0xbf   : > { %6037 = vmatpush3.bf16.msra.mxu1 %v7136_v61  ;;  %6020 = vmatprep.mubr.msk.bf16.mxu1 %vm375_vm1, %v8779_v14  ;;  %v8097_v61 = vpack.c.bf16 %v3442_v20, %v3440_v28  ;;  %v3614_v28 = vrot.slane %v8005_v43, 2  ;;  %v3615_v20 = vrot.slane %v8008_v41, 2 }
  0xc0   : > { %6365 = vmatmul.mubr.msk.bf16.gmra.mrb[12].mxu0 %vm375_vm1, %v7809_v50  ;;  %6038 = vmatprep.subr.bf16.mxu1 %v7138_v30 }
  0xc1   : > { %6368 = vmatprep.mubr.msk.bf16.mxu0 %vm375_vm1, %v7824_v52 }
  0xc3   : > { %6039 = vmatpush3.bf16.msra.mxu1 %v7138_v30  ;;  %v7143_v30 = vld [vmem:[%s8702_s1 + $0x248] sm:$0xff]  }
  0xc4   : > { %6040 = vmatprep.subr.bf16.mxu1 %v7140_v0 }
  0xc6   : > { %6021 = vmatmul.mubr.msk.bf16.gmra.mrb[4].mxu1 %vm375_vm1, %v8780_v44 }
  0xc7   : > { %6024 = vmatprep.mubr.msk.bf16.mxu1 %vm375_vm1, %v8781_v49  ;;  %6041 = vmatpush3.bf16.msra.mxu1 %v7140_v0  ;;  %v7146_v0 = vld [vmem:[%s8702_s1 + $0xc8] sm:$0xff]  }
  0xc8   : > { %6369 = vmatmul.mubr.msk.bf16.gmra.mrb[16].mxu0 %vm375_vm1, %v8097_v61  ;;  %6042 = vmatprep.subr.bf16.mxu1 %v7142_v31 }
  0xc9   : > { %6380 = vmatprep.mubr.msk.bf16.mxu0 %vm375_vm1, %v7368_v58 }
  0xcb   : > { %6043 = vmatpush3.bf16.msra.mxu1 %v7142_v31  ;;  %v3617_v31 = vrot.slane %v8076_v35, 2 }
  0xcc   : > { %6064 = vmatprep.subr.bf16.mxu1 %v7144_v10 }
  0xce   : > { %6025 = vmatmul.mubr.msk.bf16.gmra.mrb[8].mxu1 %vm375_vm1, %v7797_v59 }
  0xcf   : > { %6028 = vmatprep.mubr.msk.bf16.mxu1 %vm375_vm1, %v7813_v26 }
  0xd0   : > { %6381 = vmatmul.mubr.msk.bf16.vlgmr.msra.gmra.mrb[0].mxu0 %vm375_vm1, %v7392_v11 }
  0xd1   : > { %6384 = vmatprep.mubr.msk.bf16.mxu0 %vm375_vm1, %v7410_v27  ;;  %6401 = vmatpush3.bf16.msra.mxu0 %v7141_v38  ;;  %v7149_v38 = vld [vmem:[%s8702_s1 + $0x260] sm:$0xff]  }
  0xd2   : > { %6402 = vmatprep.subr.bf16.mxu0 %v7143_v30 }
  0xd5   : > { %6403 = vmatpush3.bf16.msra.mxu0 %v7143_v30  ;;  %v8783_v30 = vld [vmem:[#allocation15_spill] sm:$0xff] }
  0xd6   : > { %6029 = vmatmul.mubr.msk.bf16.gmra.mrb[12].mxu1 %vm375_vm1, %v7849_v1  ;;  %6404 = vmatprep.subr.bf16.mxu0 %v7145_v6 }
  0xd7   : > { %6032 = vmatprep.mubr.msk.bf16.mxu1 %vm375_vm1, %v7851_v57 }
  0xd8   : > { %6385 = vmatmul.mubr.msk.bf16.gmra.mrb[4].mxu0 %vm375_vm1, %v7724_v13 }
  0xd9   : > { %6388 = vmatprep.mubr.msk.bf16.mxu0 %vm375_vm1, %v7736_v46  ;;  %6405 = vmatpush3.bf16.msra.mxu0 %v7145_v6  ;;  %v7148_v6 = vld [vmem:[%s8702_s1 + $0xd0] sm:$0xff]  }
  0xda   : > { %6406 = vmatprep.subr.bf16.mxu0 %v7147_v18 }
  0xdd   : > { %6407 = vmatpush3.bf16.msra.mxu0 %v7147_v18  ;;  %v3616_v18 = vsel %vm686_vm2, %v3614_v28, %v3615_v20  ;;  %v7151_v28 = vld [vmem:[%s8702_s1 + $0x268] sm:$0xff]  }
  0xde   : > { %6033 = vmatmul.mubr.msk.bf16.gmra.mrb[16].mxu1 %vm375_vm1, %v7890_v21  ;;  %6428 = vmatprep.subr.bf16.mxu0 %v7149_v38 }
  0xdf   : > { %6044 = vmatprep.mubr.msk.bf16.mxu1 %vm375_vm1, %v8782_v55  ;;  %v3618_v55 = vsel %vm686_vm2, %v3615_v20, %v3617_v31  ;;  %v7155_v20 = vld [vmem:[%s8702_s1 + $0x278] sm:$0xff]   ;;  %v8785_v31 = vld [vmem:[#allocation2_spill] sm:$0xff] }
  0xe0   : > { %6389 = vmatmul.mubr.msk.bf16.gmra.mrb[8].mxu0 %vm375_vm1, %v7750_v16 }
  0xe1   : > { %6392 = vmatprep.mubr.msk.bf16.mxu0 %vm375_vm1, %v7755_v45 }
  0xe6   : > { %6045 = vmatmul.mubr.msk.bf16.vlgmr.msra.gmra.mrb[0].mxu1 %vm375_vm1, %v8783_v30 }
  0xe7   : > { %6065 = vmatpush3.bf16.msra.mxu1 %v7144_v10  ;;  %6048 = vmatprep.mubr.msk.bf16.mxu1 %vm375_vm1, %v7669_v39  ;;  %v8168_v10 = vpack.c.bf16 %v3618_v55, %v3616_v18  ;;  %v7150_v39 = vld [vmem:[%s8702_s1 + $0xd8] sm:$0xff]   ;;  %v3790_v18 = vrot.slane %v8005_v43, 3  ;;  %v3791_v55 = vrot.slane %v8008_v41, 3 }
  0xe8   : > { %6393 = vmatmul.mubr.msk.bf16.gmra.mrb[12].mxu0 %vm375_vm1, %v7864_v42  ;;  %6066 = vmatprep.subr.bf16.mxu1 %v7146_v0 }
  0xe9   : > { %6396 = vmatprep.mubr.msk.bf16.mxu0 %vm375_vm1, %v7888_v9  ;;  %8784 = vst [vmem:[#allocation10_spill] sm:$0xff] %v8168_v10  ;;  %v3792_v9 = vsel %vm962_vm3, %v3790_v18, %v3791_v55  ;;  %v7162_v18 = vld [vmem:[%s8702_s1 + $0x108] sm:$0xff]  }
  0xeb   : > { %6067 = vmatpush3.bf16.msra.mxu1 %v7146_v0  ;;  %v7152_v0 = vld [vmem:[%s8702_s1 + $0xe0] sm:$0xff]  }
  0xec   : > { %6068 = vmatprep.subr.bf16.mxu1 %v7148_v6 }
  0xee   : > { %6049 = vmatmul.mubr.msk.bf16.gmra.mrb[4].mxu1 %vm375_vm1, %v7683_v32 }
  0xef   : > { %6052 = vmatprep.mubr.msk.bf16.mxu1 %vm375_vm1, %v7687_v33  ;;  %6069 = vmatpush3.bf16.msra.mxu1 %v7148_v6  ;;  %v7154_v6 = vld [vmem:[%s8702_s1 + $0xe8] sm:$0xff]  }
  0xf0   : > { %6397 = vmatmul.mubr.msk.bf16.gmra.mrb[16].mxu0 %vm375_vm1, %v8168_v10  ;;  %6070 = vmatprep.subr.bf16.mxu1 %v7150_v39  ;;  %v8788_v10 = vld [vmem:[#allocation19_spill] sm:$0xff] }
  0xf1   : > { %6408 = vmatprep.mubr.msk.bf16.mxu0 %vm375_vm1, %v7500_v47 }
  0xf3   : > { %6071 = vmatpush3.bf16.msra.mxu1 %v7150_v39  ;;  %v7153_v39 = vld [vmem:[%s8702_s1 + $0x270] sm:$0xff]  }
  0xf4   : > { %6092 = vmatprep.subr.bf16.mxu1 %v7152_v0 }
  0xf6   : > { %6053 = vmatmul.mubr.msk.bf16.gmra.mrb[8].mxu1 %vm375_vm1, %v7691_v23 }
  0xf7   : > { %6056 = vmatprep.mubr.msk.bf16.mxu1 %vm375_vm1, %v7765_v12 }
  0xf8   : > { %6409 = vmatmul.mubr.msk.bf16.vlgmr.msra.gmra.mrb[0].mxu0 %vm375_vm1, %v7505_v54 }
  0xf9   : > { %6412 = vmatprep.mubr.msk.bf16.mxu0 %vm375_vm1, %v7553_v7  ;;  %6429 = vmatpush3.bf16.msra.mxu0 %v7149_v38  ;;  %v7157_v38 = vld [vmem:[%s8702_s1 + $0x280] sm:$0xff]  }
  0xfa   : > { %6430 = vmatprep.subr.bf16.mxu0 %v7151_v28 }
  0xfd   : > { %6431 = vmatpush3.bf16.msra.mxu0 %v7151_v28  ;;  %v3793_v28 = vrot.slane %v8076_v35, 3 }
  0xfe   : > { %6057 = vmatmul.mubr.msk.bf16.gmra.mrb[12].mxu1 %vm375_vm1, %v7801_v51  ;;  %6432 = vmatprep.subr.bf16.mxu0 %v7153_v39 }
  0xff   : > { %6060 = vmatprep.mubr.msk.bf16.mxu1 %vm375_vm1, %v7841_v5  ;;  %v3794_v30 = vsel %vm962_vm3, %v3791_v55, %v3793_v28  ;;  %v3966_v55 = vrot.slane %v8005_v43, 4  ;;  %v3967_v28 = vrot.slane %v8008_v41, 4 }
 0x100   : > { %6413 = vmatmul.mubr.msk.bf16.gmra.mrb[4].mxu0 %vm375_vm1, %v8769_v29 }
 0x101   : > { %6416 = vmatprep.mubr.msk.bf16.mxu0 %vm375_vm1, %v8772_v8  ;;  %6433 = vmatpush3.bf16.msra.mxu0 %v7153_v39  ;;  %v8786_v39 = vld [vmem:[#allocation3_spill] sm:$0xff]  ;;  %v3968_v43 = vsel %vm1238_vm4, %v3966_v55, %v3967_v28  ;;  %v8380_v55 = vld [vmem:[%s7267_s4 + $0x140] sm:$0xff] }
 0x102   : > { %6434 = vmatprep.subr.bf16.mxu0 %v7155_v20 }
 0x105   : > { %6435 = vmatpush3.bf16.msra.mxu0 %v7155_v20  ;;  %v8787_v20 = vld [vmem:[#allocation17_spill] sm:$0xff] }
 0x106   : > { %6061 = vmatmul.mubr.msk.bf16.gmra.mrb[16].mxu1 %vm375_vm1, %v7759_v62  ;;  %6456 = vmatprep.subr.bf16.mxu0 %v7157_v38 }
 0x107   : > { %6072 = vmatprep.mubr.msk.bf16.mxu1 %vm375_vm1, %v8785_v31  ;;  %v7156_v31 = vld [vmem:[%s8702_s1 + $0xf0] sm:$0xff]  }
 0x108   : > { %6417 = vmatmul.mubr.msk.bf16.gmra.mrb[8].mxu0 %vm375_vm1, %v8773_v4 }
 0x109   : > { %6420 = vmatprep.mubr.msk.bf16.mxu0 %vm375_vm1, %v8776_v2 }
 0x10e   : > { %6073 = vmatmul.mubr.msk.bf16.vlgmr.msra.gmra.mrb[0].mxu1 %vm375_vm1, %v8786_v39 }
 0x10f   : > { %6093 = vmatpush3.bf16.msra.mxu1 %v7152_v0  ;;  %6076 = vmatprep.mubr.msk.bf16.mxu1 %vm375_vm1, %v7400_v19  ;;  %v8239_v0 = vpack.c.bf16 %v3794_v30, %v3792_v9  ;;  %v7158_v19 = vld [vmem:[%s8702_s1 + $0xf8] sm:$0xff]   ;;  %v7160_v9 = vld [vmem:[%s8702_s1 + $0x100] sm:$0xff]   ;;  %v7159_v30 = vld [vmem:[%s8702_s1 + $0x288] sm:$0xff]  }
 0x110   : > { %6421 = vmatmul.mubr.msk.bf16.gmra.mrb[12].mxu0 %vm375_vm1, %v8787_v20  ;;  %6094 = vmatprep.subr.bf16.mxu1 %v7154_v6 }
 0x111   : > { %6424 = vmatprep.mubr.msk.bf16.mxu0 %vm375_vm1, %v8788_v10 }
 0x113   : > { %6095 = vmatpush3.bf16.msra.mxu1 %v7154_v6  ;;  %v7163_v6 = vld [vmem:[%s8702_s1 + $0x298] sm:$0xff]  }
 0x114   : > { %6096 = vmatprep.subr.bf16.mxu1 %v7156_v31 }
 0x116   : > { %6077 = vmatmul.mubr.msk.bf16.gmra.mrb[4].mxu1 %vm375_vm1, %v8770_v15 }
 0x117   : > { %6080 = vmatprep.mubr.msk.bf16.mxu1 %vm375_vm1, %v8771_v53  ;;  %6097 = vmatpush3.bf16.msra.mxu1 %v7156_v31  ;;  %v3969_v31 = vrot.slane %v8076_v35, 4  ;;  %v7168_v35 = vld [vmem:[%s8702_s1 + $0x120] sm:$0xff]  }
 0x118   : > { %6425 = vmatmul.mubr.msk.bf16.gmra.mrb[16].mxu0 %vm375_vm1, %v8239_v0  ;;  %6098 = vmatprep.subr.bf16.mxu1 %v7158_v19 }
 0x119   : > { %6436 = vmatprep.mubr.msk.bf16.mxu0 %vm375_vm1, %v8780_v44  ;;  %v3970_v41 = vsel %vm1238_vm4, %v3967_v28, %v3969_v31  ;;  %v7175_v28 = vld [vmem:[%s8702_s1 + $0x2c8] sm:$0xff]   ;;  %v7177_v31 = vld [vmem:[%s8702_s1 + $0x2d0] sm:$0xff]  }
 0x11b   : > { %6099 = vmatpush3.bf16.msra.mxu1 %v7158_v19  ;;  %v7161_v19 = vld [vmem:[%s8702_s1 + $0x290] sm:$0xff]  }
 0x11c   : > { %6120 = vmatprep.subr.bf16.mxu1 %v7160_v9 }
 0x11e   : > { %6081 = vmatmul.mubr.msk.bf16.gmra.mrb[8].mxu1 %vm375_vm1, %v8774_v22 }
 0x11f   : > { %6084 = vmatprep.mubr.msk.bf16.mxu1 %vm375_vm1, %v8775_v37 }
 0x120   : > { %6437 = vmatmul.mubr.msk.bf16.vlgmr.msra.gmra.mrb[0].mxu0 %vm375_vm1, %v8781_v49 }
 0x121   : > { %6440 = vmatprep.mubr.msk.bf16.mxu0 %vm375_vm1, %v7797_v59  ;;  %6457 = vmatpush3.bf16.msra.mxu0 %v7157_v38  ;;  %v7165_v38 = vld [vmem:[%s8702_s1 + $0x2a0] sm:$0xff]  }
 0x122   : > { %6458 = vmatprep.subr.bf16.mxu0 %v7159_v30 }
 0x125   : > { %6459 = vmatpush3.bf16.msra.mxu0 %v7159_v30  ;;  %v7169_v30 = vld [vmem:[%s8702_s1 + $0x2b0] sm:$0xff]  }
 0x126   : > { %6085 = vmatmul.mubr.msk.bf16.gmra.mrb[12].mxu1 %vm375_vm1, %v8777_v24  ;;  %6460 = vmatprep.subr.bf16.mxu0 %v7161_v19 }
 0x127   : > { %6088 = vmatprep.mubr.msk.bf16.mxu1 %vm375_vm1, %v8778_v36 }
 0x128   : > { %6441 = vmatmul.mubr.msk.bf16.gmra.mrb[4].mxu0 %vm375_vm1, %v7813_v26 }
 0x129   : > { %6444 = vmatprep.mubr.msk.bf16.mxu0 %vm375_vm1, %v7849_v1  ;;  %6461 = vmatpush3.bf16.msra.mxu0 %v7161_v19  ;;  %v7171_v19 = vld [vmem:[%s8702_s1 + $0x2b8] sm:$0xff]  }
 0x12a   : > { %6462 = vmatprep.subr.bf16.mxu0 %v7163_v6 }
 0x12d   : > { %6463 = vmatpush3.bf16.msra.mxu0 %v7163_v6  ;;  %v7173_v6 = vld [vmem:[%s8702_s1 + $0x2c0] sm:$0xff]  }
 0x12e   : > { %6089 = vmatmul.mubr.msk.bf16.gmra.mrb[16].mxu1 %vm375_vm1, %v7809_v50  ;;  %6484 = vmatprep.subr.bf16.mxu0 %v7165_v38 }
 0x12f   : > { %6100 = vmatprep.mubr.msk.bf16.mxu1 %vm375_vm1, %v7874_v63  ;;  %v7164_v63 = vld [vmem:[%s8702_s1 + $0x110] sm:$0xff]  }
 0x130   : > { %6445 = vmatmul.mubr.msk.bf16.gmra.mrb[8].mxu0 %vm375_vm1, %v7851_v57 }
 0x131   : > { %6448 = vmatprep.mubr.msk.bf16.mxu0 %vm375_vm1, %v7890_v21 }
 0x136   : > { %6101 = vmatmul.mubr.msk.bf16.vlgmr.msra.gmra.mrb[0].mxu1 %vm375_vm1, %v7321_v34  ;;  %v8310_v34 = vpack.c.bf16 %v3970_v41, %v3968_v43  ;;  %v7181_v43 = vld [vmem:[%s8702_s1 + $0x2e0] sm:$0xff]   ;;  %v8434_v41 = vld [vmem:[%s7267_s4 + $0x148] sm:$0xff] }
 0x137   : > { %6121 = vmatpush3.bf16.msra.mxu1 %v7160_v9  ;;  %6104 = vmatprep.mubr.msk.bf16.mxu1 %vm375_vm1, %v7368_v58  ;;  %v7166_v58 = vld [vmem:[%s8702_s1 + $0x118] sm:$0xff]   ;;  %v7167_v9 = vld [vmem:[%s8702_s1 + $0x2a8] sm:$0xff]  }
 0x138   : > { %6449 = vmatmul.mubr.msk.bf16.gmra.mrb[12].mxu0 %vm375_vm1, %v7892_v40  ;;  %6122 = vmatprep.subr.bf16.mxu1 %v7162_v18 }
 0x139   : > { %6452 = vmatprep.mubr.msk.bf16.mxu0 %vm375_vm1, %v7911_v25 }
 0x13b   : > { %6123 = vmatpush3.bf16.msra.mxu1 %v7162_v18  ;;  %v8377_v18 = vld [vmem:[%s7267_s4 + $0x138] sm:$0xff] }
 0x13c   : > { %6124 = vmatprep.subr.bf16.mxu1 %v7164_v63 }
 0x13e   : > { %6105 = vmatmul.mubr.msk.bf16.gmra.mrb[4].mxu1 %vm375_vm1, %v7392_v11 }
 0x13f   : > { %6108 = vmatprep.mubr.msk.bf16.mxu1 %vm375_vm1, %v7410_v27  ;;  %6125 = vmatpush3.bf16.msra.mxu1 %v7164_v63  ;;  %v7179_v63 = vld [vmem:[%s8702_s1 + $0x2d8] sm:$0xff]  }
 0x140   : > { %6453 = vmatmul.mubr.msk.bf16.gmra.mrb[16].mxu0 %vm375_vm1, %v8310_v34  ;;  %6126 = vmatprep.subr.bf16.mxu1 %v7166_v58 }
 0x141   : > { %6464 = vmatprep.mubr.msk.bf16.mxu0 %vm375_vm1, %v7683_v32 }
 0x143   : > { %6127 = vmatpush3.bf16.msra.mxu1 %v7166_v58  ;;  %v7178_v58 = vld [vmem:[%s8702_s1 + $0x148] sm:$0xff]  }
 0x144   : > { %6148 = vmatprep.subr.bf16.mxu1 %v7168_v35 }
 0x146   : > { %6109 = vmatmul.mubr.msk.bf16.gmra.mrb[8].mxu1 %vm375_vm1, %v7724_v13 }
 0x147   : > { %6112 = vmatprep.mubr.msk.bf16.mxu1 %vm375_vm1, %v7736_v46 }
 0x148   : > { %6465 = vmatmul.mubr.msk.bf16.vlgmr.msra.gmra.mrb[0].mxu0 %vm375_vm1, %v7687_v33 }
 0x149   : > { %6468 = vmatprep.mubr.msk.bf16.mxu0 %vm375_vm1, %v7691_v23  ;;  %6485 = vmatpush3.bf16.msra.mxu0 %v7165_v38  ;;  %v7170_v38 = vld [vmem:[%s8702_s1 + $0x128] sm:$0xff]  }
 0x14a   : > { %6486 = vmatprep.subr.bf16.mxu0 %v7167_v9 }
 0x14d   : > { %6487 = vmatpush3.bf16.msra.mxu0 %v7167_v9  ;;  %v4315_v9 = vrot.slane %v8380_v55, 1 }
 0x14e   : > { %6113 = vmatmul.mubr.msk.bf16.gmra.mrb[12].mxu1 %vm375_vm1, %v7750_v16  ;;  %6488 = vmatprep.subr.bf16.mxu0 %v7169_v30 }
 0x14f   : > { %6116 = vmatprep.mubr.msk.bf16.mxu1 %vm375_vm1, %v7755_v45 }
 0x150   : > { %6469 = vmatmul.mubr.msk.bf16.gmra.mrb[4].mxu0 %vm375_vm1, %v7765_v12 }
 0x151   : > { %6472 = vmatprep.mubr.msk.bf16.mxu0 %vm375_vm1, %v7801_v51  ;;  %6489 = vmatpush3.bf16.msra.mxu0 %v7169_v30  ;;  %v4317_v30 = vrot.slane %v8434_v41, 1 }
 0x152   : > { %6490 = vmatprep.subr.bf16.mxu0 %v7171_v19 }
 0x155   : > { %6491 = vmatpush3.bf16.msra.mxu0 %v7171_v19 }
 0x156   : > { %6117 = vmatmul.mubr.msk.bf16.gmra.mrb[16].mxu1 %vm375_vm1, %v7864_v42  ;;  %6512 = vmatprep.subr.bf16.mxu0 %v7173_v6 }
 0x157   : > { %6128 = vmatprep.mubr.msk.bf16.mxu1 %vm375_vm1, %v7988_v56  ;;  %v7172_v56 = vld [vmem:[%s8702_s1 + $0x130] sm:$0xff]  }
 0x158   : > { %6473 = vmatmul.mubr.msk.bf16.gmra.mrb[8].mxu0 %vm375_vm1, %v7841_v5 }
 0x159   : > { %6476 = vmatprep.mubr.msk.bf16.mxu0 %vm375_vm1, %v7759_v62 }
 0x15e   : > { %6129 = vmatmul.mubr.msk.bf16.vlgmr.msra.gmra.mrb[0].mxu1 %vm375_vm1, %v7445_v60  ;;  %v4142_v60 = vpack.c.bf16 %v8380_v55, %v8377_v18 }
 0x15f   : > { %6149 = vmatpush3.bf16.msra.mxu1 %v7168_v35  ;;  %6132 = vmatprep.mubr.msk.bf16.mxu1 %vm375_vm1, %v7500_v47  ;;  %v7174_v47 = vld [vmem:[%s8702_s1 + $0x138] sm:$0xff]   ;;  %v4314_v35 = vrot.slane %v8377_v18, 1 }
 0x160   : > { %6477 = vmatmul.mubr.msk.bf16.gmra.mrb[12].mxu0 %vm375_vm1, %v7769_v17  ;;  %6150 = vmatprep.subr.bf16.mxu1 %v7170_v38 }
 0x161   : > { %6480 = vmatprep.mubr.msk.bf16.mxu0 %vm375_vm1, %v8012_v48  ;;  %v7176_v48 = vld [vmem:[%s8702_s1 + $0x140] sm:$0xff]   ;;  %v4316_v19 = vsel %vm262_vm0, %v4314_v35, %v4315_v9 }
 0x162   : > { %v8792_v35 = vld [vmem:[#allocation10_spill] sm:$0xff] }
 0x163   : > { %6151 = vmatpush3.bf16.msra.mxu1 %v7170_v38  ;;  %v7183_v38 = vld [vmem:[%s8702_s1 + $0x2e8] sm:$0xff]  }
 0x164   : > { %6152 = vmatprep.subr.bf16.mxu1 %v7172_v56 }
 0x166   : > { %6133 = vmatmul.mubr.msk.bf16.gmra.mrb[4].mxu1 %vm375_vm1, %v7505_v54 }
 0x167   : > { %6136 = vmatprep.mubr.msk.bf16.mxu1 %vm375_vm1, %v7553_v7  ;;  %6153 = vmatpush3.bf16.msra.mxu1 %v7172_v56  ;;  %v7187_v56 = vld [vmem:[%s8702_s1 + $0x2f8] sm:$0xff]  }
 0x168   : > { %6481 = vmatmul.mubr.msk.bf16.gmra.mrb[16].mxu0 %vm375_vm1, %v4142_v60  ;;  %6154 = vmatprep.subr.bf16.mxu1 %v7174_v47  ;;  %v8789_v60 = vld [vmem:[#allocation15_spill] sm:$0xff] }
 0x169   : > { %6492 = vmatprep.mubr.msk.bf16.mxu0 %vm375_vm1, %v8770_v15 }
 0x16b   : > { %6155 = vmatpush3.bf16.msra.mxu1 %v7174_v47  ;;  %v7186_v47 = vld [vmem:[%s8702_s1 + $0x168] sm:$0xff]  }
 0x16c   : > { %6176 = vmatprep.subr.bf16.mxu1 %v7176_v48 }
 0x16e   : > { %6137 = vmatmul.mubr.msk.bf16.gmra.mrb[8].mxu1 %vm375_vm1, %v8769_v29 }
 0x16f   : > { %6140 = vmatprep.mubr.msk.bf16.mxu1 %vm375_vm1, %v8772_v8 }
 0x170   : > { %6493 = vmatmul.mubr.msk.bf16.vlgmr.msra.gmra.mrb[0].mxu0 %vm375_vm1, %v8771_v53 }
 0x171   : > { %6496 = vmatprep.mubr.msk.bf16.mxu0 %vm375_vm1, %v8774_v22  ;;  %6513 = vmatpush3.bf16.msra.mxu0 %v7173_v6  ;;  %v4318_v6 = vsel %vm262_vm0, %v4315_v9, %v4317_v30 }
 0x172   : > { %6514 = vmatprep.subr.bf16.mxu0 %v7175_v28 }
 0x175   : > { %6515 = vmatpush3.bf16.msra.mxu0 %v7175_v28  ;;  %v4491_v28 = vrot.slane %v8380_v55, 2 }
 0x176   : > { %6141 = vmatmul.mubr.msk.bf16.gmra.mrb[12].mxu1 %vm375_vm1, %v8773_v4  ;;  %6516 = vmatprep.subr.bf16.mxu0 %v7177_v31 }
 0x177   : > { %6144 = vmatprep.mubr.msk.bf16.mxu1 %vm375_vm1, %v8776_v2 }
 0x178   : > { %6497 = vmatmul.mubr.msk.bf16.gmra.mrb[4].mxu0 %vm375_vm1, %v8775_v37 }
 0x179   : > { %6500 = vmatprep.mubr.msk.bf16.mxu0 %vm375_vm1, %v8777_v24  ;;  %6517 = vmatpush3.bf16.msra.mxu0 %v7177_v31  ;;  %v4493_v31 = vrot.slane %v8434_v41, 2 }
 0x17a   : > { %6518 = vmatprep.subr.bf16.mxu0 %v7179_v63 }
 0x17b   : > { %v4494_v30 = vsel %vm686_vm2, %v4491_v28, %v4493_v31 }
 0x17d   : > { %6519 = vmatpush3.bf16.msra.mxu0 %v7179_v63  ;;  %v8790_v63 = vld [vmem:[#allocation18_spill] sm:$0xff] }
 0x17e   : > { %6145 = vmatmul.mubr.msk.bf16.gmra.mrb[16].mxu1 %vm375_vm1, %v8787_v20  ;;  %6540 = vmatprep.subr.bf16.mxu0 %v7181_v43 }
 0x17f   : > { %6156 = vmatprep.mubr.msk.bf16.mxu1 %vm375_vm1, %v8073_v3  ;;  %v7180_v3 = vld [vmem:[%s8702_s1 + $0x150] sm:$0xff]  }
 0x180   : > { %6501 = vmatmul.mubr.msk.bf16.gmra.mrb[8].mxu0 %vm375_vm1, %v8778_v36 }
 0x181   : > { %6504 = vmatprep.mubr.msk.bf16.mxu0 %vm375_vm1, %v7809_v50 }
 0x186   : > { %6157 = vmatmul.mubr.msk.bf16.vlgmr.msra.gmra.mrb[0].mxu1 %vm375_vm1, %v8779_v14  ;;  %v4321_v14 = vpack.c.bf16 %v4318_v6, %v4316_v19  ;;  %v7200_v19 = vld [vmem:[%s8702_s1 + $0x180] sm:$0xff]  }
 0x187   : > { %6177 = vmatpush3.bf16.msra.mxu1 %v7176_v48  ;;  %6160 = vmatprep.mubr.msk.bf16.mxu1 %vm375_vm1, %v8780_v44  ;;  %v7182_v44 = vld [vmem:[%s8702_s1 + $0x158] sm:$0xff]   ;;  %v4490_v48 = vrot.slane %v8377_v18, 2 }
 0x188   : > { %6505 = vmatmul.mubr.msk.bf16.gmra.mrb[12].mxu0 %vm375_vm1, %v7824_v52  ;;  %6178 = vmatprep.subr.bf16.mxu1 %v7178_v58 }
 0x189   : > { %6508 = vmatprep.mubr.msk.bf16.mxu0 %vm375_vm1, %v8097_v61  ;;  %v7184_v61 = vld [vmem:[%s8702_s1 + $0x160] sm:$0xff]   ;;  %v4492_v9 = vsel %vm686_vm2, %v4490_v48, %v4491_v28 }
 0x18b   : > { %6179 = vmatpush3.bf16.msra.mxu1 %v7178_v58  ;;  %v7188_v58 = vld [vmem:[%s8702_s1 + $0x170] sm:$0xff]  }
 0x18c   : > { %6180 = vmatprep.subr.bf16.mxu1 %v7180_v3 }
 0x18e   : > { %6161 = vmatmul.mubr.msk.bf16.gmra.mrb[4].mxu1 %vm375_vm1, %v8781_v49 }
 0x18f   : > { %6164 = vmatprep.mubr.msk.bf16.mxu1 %vm375_vm1, %v7797_v59  ;;  %6181 = vmatpush3.bf16.msra.mxu1 %v7180_v3  ;;  %v4497_v3 = vpack.c.bf16 %v4494_v30, %v4492_v9 }
 0x190   : > { %6509 = vmatmul.mubr.msk.bf16.gmra.mrb[16].mxu0 %vm375_vm1, %v4321_v14  ;;  %6182 = vmatprep.subr.bf16.mxu1 %v7182_v44 }
 0x191   : > { %6520 = vmatprep.mubr.msk.bf16.mxu0 %vm375_vm1, %v7392_v11  ;;  %v7185_v11 = vld [vmem:[%s8702_s1 + $0x2f0] sm:$0xff]  }
 0x193   : > { %6183 = vmatpush3.bf16.msra.mxu1 %v7182_v44 }
 0x194   : > { %6204 = vmatprep.subr.bf16.mxu1 %v7184_v61 }
 0x196   : > { %6165 = vmatmul.mubr.msk.bf16.gmra.mrb[8].mxu1 %vm375_vm1, %v7813_v26 }
 0x197   : > { %6168 = vmatprep.mubr.msk.bf16.mxu1 %vm375_vm1, %v7849_v1 }
 0x198   : > { %6521 = vmatmul.mubr.msk.bf16.vlgmr.msra.gmra.mrb[0].mxu0 %vm375_vm1, %v7410_v27  ;;  %v7189_v27 = vld [vmem:[%s8702_s1 + $0x300] sm:$0xff]  }
 0x199   : > { %6524 = vmatprep.mubr.msk.bf16.mxu0 %vm375_vm1, %v7724_v13  ;;  %6541 = vmatpush3.bf16.msra.mxu0 %v7181_v43  ;;  %v8791_v43 = vld [vmem:[#allocation23_spill] sm:$0xff] }
 0x19a   : > { %6542 = vmatprep.subr.bf16.mxu0 %v7183_v38 }
 0x19d   : > { %6543 = vmatpush3.bf16.msra.mxu0 %v7183_v38 }
 0x19e   : > { %6169 = vmatmul.mubr.msk.bf16.gmra.mrb[12].mxu1 %vm375_vm1, %v7851_v57  ;;  %6544 = vmatprep.subr.bf16.mxu0 %v7185_v11 }
 0x19f   : > { %6172 = vmatprep.mubr.msk.bf16.mxu1 %vm375_vm1, %v7890_v21 }
 0x1a0   : > { %6525 = vmatmul.mubr.msk.bf16.gmra.mrb[4].mxu0 %vm375_vm1, %v7736_v46 }
 0x1a1   : > { %6528 = vmatprep.mubr.msk.bf16.mxu0 %vm375_vm1, %v7750_v16  ;;  %6545 = vmatpush3.bf16.msra.mxu0 %v7185_v11 }
 0x1a2   : > { %6546 = vmatprep.subr.bf16.mxu0 %v7187_v56 }
 0x1a5   : > { %6547 = vmatpush3.bf16.msra.mxu0 %v7187_v56 }
 0x1a6   : > { %6173 = vmatmul.mubr.msk.bf16.gmra.mrb[16].mxu1 %vm375_vm1, %v7892_v40  ;;  %6568 = vmatprep.subr.bf16.mxu0 %v7189_v27 }
 0x1a7   : > { %6184 = vmatprep.mubr.msk.bf16.mxu1 %vm375_vm1, %v8789_v60 }
 0x1a8   : > { %6529 = vmatmul.mubr.msk.bf16.gmra.mrb[8].mxu0 %vm375_vm1, %v7755_v45 }
 0x1a9   : > { %6532 = vmatprep.mubr.msk.bf16.mxu0 %vm375_vm1, %v7864_v42 }
 0x1ae   : > { %6185 = vmatmul.mubr.msk.bf16.vlgmr.msra.gmra.mrb[0].mxu1 %vm375_vm1, %v8790_v63 }
 0x1af   : > { %6205 = vmatpush3.bf16.msra.mxu1 %v7184_v61  ;;  %6188 = vmatprep.mubr.msk.bf16.mxu1 %vm375_vm1, %v7683_v32  ;;  %v7190_v32 = vld [vmem:[%s8702_s1 + $0x178] sm:$0xff]  }
 0x1b0   : > { %6533 = vmatmul.mubr.msk.bf16.gmra.mrb[12].mxu0 %vm375_vm1, %v8791_v43  ;;  %6206 = vmatprep.subr.bf16.mxu1 %v7186_v47 }
 0x1b1   : > { %6536 = vmatprep.mubr.msk.bf16.mxu0 %vm375_vm1, %v8792_v35 }
 0x1b3   : > { %6207 = vmatpush3.bf16.msra.mxu1 %v7186_v47 }
 0x1b4   : > { %6208 = vmatprep.subr.bf16.mxu1 %v7188_v58 }
 0x1b6   : > { %6189 = vmatmul.mubr.msk.bf16.gmra.mrb[4].mxu1 %vm375_vm1, %v7687_v33  ;;  %v7191_v33 = vld [vmem:[%s8702_s1 + $0x308] sm:$0xff]  }
 0x1b7   : > { %6192 = vmatprep.mubr.msk.bf16.mxu1 %vm375_vm1, %v7691_v23  ;;  %6209 = vmatpush3.bf16.msra.mxu1 %v7188_v58  ;;  %v7193_v23 = vld [vmem:[%s8702_s1 + $0x318] sm:$0xff]  }
 0x1b8   : > { %6537 = vmatmul.mubr.msk.bf16.gmra.mrb[16].mxu0 %vm375_vm1, %v4497_v3  ;;  %6210 = vmatprep.subr.bf16.mxu1 %v7190_v32 }
 0x1b9   : > { %6548 = vmatprep.mubr.msk.bf16.mxu0 %vm375_vm1, %v7505_v54  ;;  %v7192_v54 = vld [vmem:[%s8702_s1 + $0x310] sm:$0xff]  }
 0x1bb   : > { %6211 = vmatpush3.bf16.msra.mxu1 %v7190_v32 }
 0x1bc   : > { %6596 = vmatprep.subr.bf16.mxu1 %v7200_v19 }
 0x1be   : > { %6193 = vmatmul.mubr.msk.bf16.gmra.mrb[8].mxu1 %vm375_vm1, %v7765_v12  ;;  %v4669_v12 = vrot.slane %v8434_v41, 3 }
 0x1bf   : > { %6196 = vmatprep.mubr.msk.bf16.mxu1 %vm375_vm1, %v7801_v51  ;;  %v8793_v51 = vld [vmem:[#allocation4_spill] sm:$0xff] }
 0x1c0   : > { %6549 = vmatmul.mubr.msk.bf16.vlgmr.msra.gmra.mrb[0].mxu0 %vm375_vm1, %v7553_v7  ;;  %v4666_v7 = vrot.slane %v8377_v18, 3 }
 0x1c1   : > { %6552 = vmatprep.mubr.msk.bf16.mxu0 %vm375_vm1, %v8769_v29  ;;  %6569 = vmatpush3.bf16.msra.mxu0 %v7189_v27 }
 0x1c2   : > { %6570 = vmatprep.subr.bf16.mxu0 %v7191_v33 }
 0x1c5   : > { %6571 = vmatpush3.bf16.msra.mxu0 %v7191_v33 }
 0x1c6   : > { %6197 = vmatmul.mubr.msk.bf16.gmra.mrb[12].mxu1 %vm375_vm1, %v7841_v5  ;;  %6572 = vmatprep.subr.bf16.mxu0 %v7192_v54 }
 0x1c7   : > { %6200 = vmatprep.mubr.msk.bf16.mxu1 %vm375_vm1, %v7759_v62  ;;  %v4667_v62 = vrot.slane %v8380_v55, 3 }
 0x1c8   : > { %6553 = vmatmul.mubr.msk.bf16.gmra.mrb[4].mxu0 %vm375_vm1, %v8772_v8 }
 0x1c9   : > { %6556 = vmatprep.mubr.msk.bf16.mxu0 %vm375_vm1, %v8773_v4  ;;  %6573 = vmatpush3.bf16.msra.mxu0 %v7192_v54  ;;  %v4668_v5 = vsel %vm962_vm3, %v4666_v7, %v4667_v62  ;;  %v4670_v29 = vsel %vm962_vm3, %v4667_v62, %v4669_v12  ;;  %v7203_v4 = vld [vmem:[%s8702_s1 + $0x198] sm:$0xff]  }
 0x1ca   : > { %6574 = vmatprep.subr.bf16.mxu0 %v7193_v23  ;;  %v4673_v8 = vpack.c.bf16 %v4670_v29, %v4668_v5 }
 0x1cd   : > { %6575 = vmatpush3.bf16.msra.mxu0 %v7193_v23 }
 0x1ce   : > { %6201 = vmatmul.mubr.msk.bf16.gmra.mrb[16].mxu1 %vm375_vm1, %v7769_v17  ;;  %v7201_v17 = vld [vmem:[%s8702_s1 + $0x188] sm:$0xff]  }
 0x1cf   : > { %6212 = vmatprep.mubr.msk.bf16.mxu1 %vm375_vm1, %v8786_v39 }
 0x1d0   : > { %6557 = vmatmul.mubr.msk.bf16.gmra.mrb[8].mxu0 %vm375_vm1, %v8776_v2 }
 0x1d1   : > { %6560 = vmatprep.mubr.msk.bf16.mxu0 %vm375_vm1, %v8787_v20 }
 0x1d6   : > { %6213 = vmatmul.mubr.msk.bf16.vlgmr.msra.gmra.mrb[0].mxu1 %vm375_vm1, %v8793_v51 }
 0x1d7   : > { %6600 = vmatpush3.bf16.msra.mxu1 %v7200_v19  ;;  %6216 = vmatprep.mubr.msk.bf16.mxu1 %vm375_vm1, %v8770_v15  ;;  %v7202_v15 = vld [vmem:[%s8702_s1 + $0x190] sm:$0xff]  }
 0x1d8   : > { %6561 = vmatmul.mubr.msk.bf16.gmra.mrb[12].mxu0 %vm375_vm1, %v8788_v10  ;;  %6597 = vmatprep.subr.bf16.mxu1 %v7201_v17 }
 0x1d9   : > { %6564 = vmatprep.mubr.msk.bf16.mxu0 %vm375_vm1, %v8239_v0 }
 0x1db   : > { %6601 = vmatpush3.bf16.msra.mxu1 %v7201_v17 }
 0x1dc   : > { %6598 = vmatprep.subr.bf16.mxu1 %v7202_v15 }
 0x1de   : > { %6217 = vmatmul.mubr.msk.bf16.gmra.mrb[4].mxu1 %vm375_vm1, %v8771_v53 }
 0x1df   : > { %6220 = vmatprep.mubr.msk.bf16.mxu1 %vm375_vm1, %v8774_v22  ;;  %6602 = vmatpush3.bf16.msra.mxu1 %v7202_v15 }
 0x1e0   : > { %6565 = vmatmul.mubr.msk.bf16.gmra.mrb[16].mxu0 %vm375_vm1, %v4673_v8  ;;  %6599 = vmatprep.subr.bf16.mxu1 %v7203_v4 }
 0x1e1   : > { %6576 = vmatprep.mubr.msk.bf16.mxu0 %vm375_vm1, %v8781_v49 }
 0x1e3   : > { %6603 = vmatpush3.bf16.msra.mxu1 %v7203_v4 }
 0x1e6   : > { %6221 = vmatmul.mubr.msk.bf16.gmra.mrb[8].mxu1 %vm375_vm1, %v8775_v37 }
 0x1e7   : > { %6224 = vmatprep.mubr.msk.bf16.mxu1 %vm375_vm1, %v8777_v24 }
 0x1e8   : > { %6577 = vmatmul.mubr.msk.bf16.vlgmr.msra.gmra.mrb[0].mxu0 %vm375_vm1, %v7797_v59  ;;  %v4842_v59 = vrot.slane %v8377_v18, 4 }
 0x1e9   : > { %6580 = vmatprep.mubr.msk.bf16.mxu0 %vm375_vm1, %v7813_v26  ;;  %v4845_v26 = vrot.slane %v8434_v41, 4 }
 0x1ee   : > { %6225 = vmatmul.mubr.msk.bf16.gmra.mrb[12].mxu1 %vm375_vm1, %v8778_v36 }
 0x1ef   : > { %6228 = vmatprep.mubr.msk.bf16.mxu1 %vm375_vm1, %v7809_v50  ;;  %v4843_v50 = vrot.slane %v8380_v55, 4 }
 0x1f0   : > { %6581 = vmatmul.mubr.msk.bf16.gmra.mrb[4].mxu0 %vm375_vm1, %v7849_v1 }
 0x1f1   : > { %6584 = vmatprep.mubr.msk.bf16.mxu0 %vm375_vm1, %v7851_v57 }
 0x1f6   : > { %6229 = vmatmul.mubr.msk.bf16.gmra.mrb[16].mxu1 %vm375_vm1, %v7824_v52  ;;  %v4846_v52 = vsel %vm1238_vm4, %v4843_v50, %v4845_v26 }
 0x1f7   : > { %6248 = vmatprep.mubr.msk.bf16.mxu1 %vm375_vm1, %v7724_v13  ;;  %v4844_v13 = vsel %vm1238_vm4, %v4842_v59, %v4843_v50 }
 0x1f8   : > { %6585 = vmatmul.mubr.msk.bf16.gmra.mrb[8].mxu0 %vm375_vm1, %v7890_v21  ;;  %v4849_v1 = vpack.c.bf16 %v4846_v52, %v4844_v13 }
 0x1f9   : > { %6588 = vmatprep.mubr.msk.bf16.mxu0 %vm375_vm1, %v7892_v40 }
 0x1fe   : > { %6249 = vmatmul.mubr.msk.bf16.vlgmr.msra.gmra.mrb[8].mxu1 %vm375_vm1, %v7736_v46 }
 0x1ff   : > { %6252 = vmatprep.mubr.msk.bf16.mxu1 %vm375_vm1, %v7750_v16 }
 0x200   : > { %6589 = vmatmul.mubr.msk.bf16.gmra.mrb[12].mxu0 %vm375_vm1, %v7911_v25 }
 0x201   : > { %6592 = vmatprep.mubr.msk.bf16.mxu0 %vm375_vm1, %v8310_v34 }
 0x206   : > { %6253 = vmatmul.mubr.msk.bf16.gmra.mrb[12].mxu1 %vm375_vm1, %v7755_v45  ;;  %v8645_v45 = vld [vmem:[%s8703_s2] ss:$0 sm:$0xff] }
 0x207   : > { %6256 = vmatprep.mubr.msk.bf16.mxu1 %vm375_vm1, %v7864_v42 }
 0x208   : > { %6593 = vmatmul.mubr.msk.bf16.gmra.mrb[16].mxu0 %vm375_vm1, %v4849_v1 }
 0x20e   : > { %6257 = vmatmul.mubr.msk.bf16.gmra.mrb[16].mxu1 %vm375_vm1, %v8791_v43 }
 0x2a9   : > { %v6214_v46 = vpop.f32.mrb[0].mxu1 }
 0x2aa   : > { %v2639_v16 = vpop.f32.mrb[1].mxu1 }
 0x2ab   : > { %v6215_v57 = vpop.f32.mrb[2].mxu1 }
 0x2ac   : > { %v2642_v21 = vpop.f32.mrb[3].mxu1 }
 0x2b1   : > { %v6218_v40 = vpop.f32.mrb[4].mxu1 }
 0x2b2   : > { %v2655_v25 = vpop.f32.mrb[5].mxu1 }
 0x2b3   : > { %v6219_v53 = vpop.f32.mrb[6].mxu1 }
 0x2b4   : > { %v2658_v22 = vpop.f32.mrb[7].mxu1 }
 0x2bb   : > { %v6578_v37 = vpop.f32.mrb[0].mxu0 }
 0x2bc   : > { %v6604_v42 = vadd.f32 %v6578_v37, %v6214_v46  ;;  %v4919_v2 = vpop.f32.mrb[1].mxu0 }
 0x2bd   : > { %v6605_v24 = vadd.f32 %v4919_v2, %v2639_v16  ;;  %v6579_v36 = vpop.f32.mrb[2].mxu0 }
 0x2be   : > { %v5027_v49 = vadd.f32 %v6604_v42, %v8645_v45  ;;  %v6606_v10 = vadd.f32 %v6579_v36, %v6215_v57  ;;  %v4922_v39 = vpop.f32.mrb[3].mxu0 }
 0x2bf   : > { %v5025_v20 = vadd.f32 %v6605_v24, %v8645_v45  ;;  %v6607_v0 = vadd.f32 %v4922_v39, %v2642_v21 }
 0x2c0   : > { %v5047_v34 = vmax.f32 %v5027_v49, 0.0  ;;  %v5028_v18 = vadd.f32 %v6606_v10, %v8645_v45 }
 0x2c1   : > { %v5045_v55 = vmax.f32 %v5025_v20, 0.0  ;;  %v5026_v41 = vadd.f32 %v6607_v0, %v8645_v45 }
 0x2c2   : > { %v5048_v6 = vmax.f32 %v5028_v18, 0.0 }
 0x2c3   : > { %v5065_v14 = vmax.f32 %v5045_v55, %v5047_v34  ;;  %v5046_v44 = vmax.f32 %v5026_v41, 0.0  ;;  %v6582_v61 = vpop.f32.mrb[4].mxu0 }
 0x2c4   : > { %v6608_v38 = vadd.f32 %v6582_v61, %v6218_v40  ;;  %v4935_v11 = vpop.f32.mrb[5].mxu0 }
 0x2c5   : > { %v5066_v56 = vmax.f32 %v5046_v44, %v5048_v6  ;;  %v6609_v27 = vadd.f32 %v4935_v11, %v2655_v25  ;;  %v6583_v60 = vpop.f32.mrb[6].mxu0  ;;  %v5085_v31 = vrot.slane %v5065_v14, 1 }
 0x2c6   : > { %v5031_v47 = vadd.f32 %v6608_v38, %v8645_v45  ;;  %v6610_v48 = vadd.f32 %v6583_v60, %v6219_v53  ;;  %v4938_v28 = vpop.f32.mrb[7].mxu0 }
 0x2c7   : > { %v5086_v63 = vrot.slane %v5066_v56, 1  ;;  %v5029_v43 = vadd.f32 %v6609_v27, %v8645_v45  ;;  %v6611_v58 = vadd.f32 %v4938_v28, %v2658_v22 }
 0x2c8   : > { %v5051_v35 = vmax.f32 %v5031_v47, 0.0  ;;  %v5032_v9 = vadd.f32 %v6610_v48, %v8645_v45 }
 0x2c9   : > { %v5087_v30 = vsel %vm262_vm0, %v5085_v31, %v5086_v63  ;;  %v5111_v3 = vmax.f32 %v5066_v56, %v5086_v63  ;;  %v5049_v32 = vmax.f32 %v5029_v43, 0.0  ;;  %v5030_v19 = vadd.f32 %v6611_v58, %v8645_v45 }
 0x2ca   : > { %v5110_v33 = vmax.f32 %v5065_v14, %v5087_v30  ;;  %v5052_v54 = vmax.f32 %v5032_v9, 0.0 }
 0x2cb   : > { %5122 = vst.msk [vmem:[%s8657_s10 + $0x8] sm:$0x7f] %vm5121_vm5, %v5111_v3  ;;  %v5067_v23 = vmax.f32 %v5049_v32, %v5051_v35  ;;  %v5050_v7 = vmax.f32 %v5030_v19, 0.0  ;;  %v6586_v62 = vpop.f32.mrb[8].mxu0 }
 0x2cc   : > { %5120 = vst.msk [vmem:[%s8657_s10] sm:$0xff] %vm375_vm1, %v5110_v33  ;;  %v4951_v12 = vpop.f32.mrb[9].mxu0 }
 0x2cd   : > { %v5068_v51 = vmax.f32 %v5050_v7, %v5052_v54  ;;  %v6587_v17 = vpop.f32.mrb[10].mxu0  ;;  %v5088_v29 = vrot.slane %v5067_v23, 1 }
 0x2ce   : > { %v4954_v5 = vpop.f32.mrb[11].mxu0 }
 0x2cf   : > { %v5089_v8 = vrot.slane %v5068_v51, 1 }
 0x2d1   : > { %v5090_v15 = vsel %vm262_vm0, %v5088_v29, %v5089_v8  ;;  %v5113_v4 = vmax.f32 %v5068_v51, %v5089_v8  ;;  %v6250_v59 = vpop.f32.mrb[8].mxu1 }
 0x2d2   : > { %v5112_v50 = vmax.f32 %v5067_v23, %v5090_v15  ;;  %v6612_v26 = vadd.f32 %v6586_v62, %v6250_v59  ;;  %v2847_v13 = vpop.f32.mrb[9].mxu1 }
 0x2d3   : > { %5124 = vst.msk [vmem:[%s8657_s10 + $0x18] sm:$0x7f] %vm5121_vm5, %v5113_v4  ;;  %v6590_v52 = vpop.f32.mrb[12].mxu0  ;;  %v6613_v1 = vadd.f32 %v4951_v12, %v2847_v13  ;;  %v6251_v46 = vpop.f32.mrb[10].mxu1 }
 0x2d4   : > { %5123 = vst.msk [vmem:[%s8657_s10 + $0x10] sm:$0xff] %vm375_vm1, %v5112_v50  ;;  %v5035_v16 = vadd.f32 %v6612_v26, %v8645_v45  ;;  %v4967_v57 = vpop.f32.mrb[13].mxu0  ;;  %v6614_v21 = vadd.f32 %v6587_v17, %v6251_v46  ;;  %v2850_v40 = vpop.f32.mrb[11].mxu1 }
 0x2d5   : > { %v5033_v25 = vadd.f32 %v6613_v1, %v8645_v45  ;;  %v6591_v53 = vpop.f32.mrb[14].mxu0  ;;  %v6615_v22 = vadd.f32 %v4954_v5, %v2850_v40 }
 0x2d6   : > { %v5055_v37 = vmax.f32 %v5035_v16, 0.0  ;;  %v5036_v42 = vadd.f32 %v6614_v21, %v8645_v45  ;;  %v4970_v2 = vpop.f32.mrb[15].mxu0 }
 0x2d7   : > { %v5053_v24 = vmax.f32 %v5033_v25, 0.0  ;;  %v5034_v36 = vadd.f32 %v6615_v22, %v8645_v45 }
 0x2d8   : > { %v5056_v49 = vmax.f32 %v5036_v42, 0.0 }
 0x2d9   : > { %v5069_v10 = vmax.f32 %v5053_v24, %v5055_v37  ;;  %v5054_v39 = vmax.f32 %v5034_v36, 0.0  ;;  %v6254_v20 = vpop.f32.mrb[12].mxu1 }
 0x2da   : > { %v6616_v0 = vadd.f32 %v6590_v52, %v6254_v20  ;;  %v2863_v34 = vpop.f32.mrb[13].mxu1 }
 0x2db   : > { %v5070_v18 = vmax.f32 %v5054_v39, %v5056_v49  ;;  %v6594_v55 = vpop.f32.mrb[16].mxu0  ;;  %v6617_v41 = vadd.f32 %v4967_v57, %v2863_v34  ;;  %v6255_v6 = vpop.f32.mrb[14].mxu1  ;;  %v5091_v11 = vrot.slane %v5069_v10, 1 }
 0x2dc   : > { %v5039_v14 = vadd.f32 %v6616_v0, %v8645_v45  ;;  %v4983_v44 = vpop.f32.mrb[17].mxu0  ;;  %v6618_v61 = vadd.f32 %v6591_v53, %v6255_v6  ;;  %v2866_v38 = vpop.f32.mrb[15].mxu1 }
 0x2dd   : > { %v5092_v56 = vrot.slane %v5070_v18, 1  ;;  %v5037_v27 = vadd.f32 %v6617_v41, %v8645_v45  ;;  %v6595_v60 = vpop.f32.mrb[18].mxu0  ;;  %v6619_v47 = vadd.f32 %v4970_v2, %v2866_v38 }
 0x2de   : > { %v5059_v48 = vmax.f32 %v5039_v14, 0.0  ;;  %v5040_v28 = vadd.f32 %v6618_v61, %v8645_v45  ;;  %v4986_v31 = vpop.f32.mrb[19].mxu0 }
 0x2df   : > { %v5093_v63 = vsel %vm262_vm0, %v5091_v11, %v5092_v56  ;;  %v5115_v43 = vmax.f32 %v5070_v18, %v5092_v56  ;;  %v5057_v58 = vmax.f32 %v5037_v27, 0.0  ;;  %v5038_v35 = vadd.f32 %v6619_v47, %v8645_v45 }
 0x2e0   : > { %v5114_v9 = vmax.f32 %v5069_v10, %v5093_v63  ;;  %v5060_v30 = vmax.f32 %v5040_v28, 0.0 }
 0x2e1   : > { %5126 = vst.msk [vmem:[%s8657_s10 + $0x28] sm:$0x7f] %vm5121_vm5, %v5115_v43  ;;  %v5071_v3 = vmax.f32 %v5057_v58, %v5059_v48  ;;  %v5058_v32 = vmax.f32 %v5038_v35, 0.0  ;;  %v6258_v19 = vpop.f32.mrb[16].mxu1 }
 0x2e2   : > { %5125 = vst.msk [vmem:[%s8657_s10 + $0x20] sm:$0xff] %vm375_vm1, %v5114_v9  ;;  %v6620_v33 = vadd.f32 %v6594_v55, %v6258_v19  ;;  %v2879_v54 = vpop.f32.mrb[17].mxu1 }
 0x2e3   : > { %v5072_v23 = vmax.f32 %v5058_v32, %v5060_v30  ;;  %v6621_v7 = vadd.f32 %v4983_v44, %v2879_v54  ;;  %v6259_v62 = vpop.f32.mrb[18].mxu1  ;;  %v5094_v5 = vrot.slane %v5071_v3, 1 }
 0x2e4   : > { %v5043_v12 = vadd.f32 %v6620_v33, %v8645_v45  ;;  %v6622_v51 = vadd.f32 %v6595_v60, %v6259_v62  ;;  %v2882_v17 = vpop.f32.mrb[19].mxu1 }
 0x2e5   : > { %v5095_v29 = vrot.slane %v5072_v23, 1  ;;  %v5041_v8 = vadd.f32 %v6621_v7, %v8645_v45  ;;  %v6623_v15 = vadd.f32 %v4986_v31, %v2882_v17 }
 0x2e6   : > { %v5063_v4 = vmax.f32 %v5043_v12, 0.0  ;;  %v5044_v59 = vadd.f32 %v6622_v51, %v8645_v45 }
 0x2e7   : > { %v5096_v50 = vsel %vm262_vm0, %v5094_v5, %v5095_v29  ;;  %v5117_v26 = vmax.f32 %v5072_v23, %v5095_v29  ;;  %v5061_v13 = vmax.f32 %v5041_v8, 0.0  ;;  %v5042_v52 = vadd.f32 %v6623_v15, %v8645_v45 }
 0x2e8   : > { %v5116_v1 = vmax.f32 %v5071_v3, %v5096_v50  ;;  %v5064_v46 = vmax.f32 %v5044_v59, 0.0 }
 0x2e9   : > { %5128 = vst.msk [vmem:[%s8657_s10 + $0x38] sm:$0x7f] %vm5121_vm5, %v5117_v26  ;;  %v5073_v16 = vmax.f32 %v5061_v13, %v5063_v4  ;;  %v5062_v57 = vmax.f32 %v5042_v52, 0.0 }
 0x2ea   : > { %5127 = vst.msk [vmem:[%s8657_s10 + $0x30] sm:$0xff] %vm375_vm1, %v5116_v1 }
 0x2eb   : > { %v5074_v21 = vmax.f32 %v5062_v57, %v5064_v46  ;;  %v5097_v40 = vrot.slane %v5073_v16, 1 }
 0x2ed   : > { %v5098_v25 = vrot.slane %v5074_v21, 1 }
 0x2ef   : > { %v5099_v53 = vsel %vm262_vm0, %v5097_v40, %v5098_v25  ;;  %v5119_v22 = vmax.f32 %v5074_v21, %v5098_v25 }
 0x2f0   : > { %v5118_v37 = vmax.f32 %v5073_v16, %v5099_v53 }
 0x2f1   : > { %5130 = vst.msk [vmem:[%s8657_s10 + $0x48] sm:$0x7f] %vm5121_vm5, %v5119_v22 }
 0x2f2   : > { %5129 = vst.msk [vmem:[%s8657_s10 + $0x40] sm:$0xff] %vm375_vm1, %v5118_v37 }
 0x2f3 PF: > { %s13_s12 = sadd.s32 1, %s7210_s12  }
 0x2f4   : > { %p10_p4 = scmp.ge.s32.totalorder %s13_s12, 4  }
 0x2f6   :  { %12 = sbr.rel (!%p10_p4) target bundleno = 1 (0x1), region = 62 }

</bundles_post_ra>
